<compile_context>
chip_gen: v6e
topology: v6e:2x2x1
jax: 0.10.0
libtpu: 0.0.40
codegen_flags: <defaults>
</compile_context>

<pallas_src>
import functools

import jax
import jax.numpy as jnp
from jax import lax
from jax.experimental import pallas as pl
from jax.experimental.pallas import tpu as pltpu

_NEG = -1e30
_LN_EPS = 1e-5


# ----------------------------------------------------------------------------
# generation-aware tiling / VMEM limits
# ----------------------------------------------------------------------------
def _query_vmem_capacity():
    try:
        info = pltpu.get_tpu_info()
        cap = getattr(info, "vmem_capacity_bytes", None)
        if cap:
            return int(cap)
    except Exception:
        pass
    return 64 << 20                      # conservative (v7x-class) fallback


_VMEM_CAP = _query_vmem_capacity()
_SMALL_VMEM = _VMEM_CAP <= (64 << 20)    # v7x: 64 MiB per TC
_VMEM_LIMIT = int(min(_VMEM_CAP * 3 // 4, 100 << 20))


def _compiler_params(dims):
    return pltpu.CompilerParams(dimension_semantics=dims,
                                vmem_limit_bytes=_VMEM_LIMIT)


def _pick_tile(n, cap, must_divide=False):
    if n <= cap:
        return n                         # single block == full dim
    for t in (cap, 512, 256, 128):
        if t <= cap and n % t == 0:
            return t
    # no nice divisor: partial trailing blocks are safe only for M/N (masked
    # stores); reduction (K / Tk) axes must use the full extent instead.
    return n if must_divide else cap


def _row_tile(m):
    return _pick_tile(m, 256 if _SMALL_VMEM else 512)


def _col_tile(n):
    return _pick_tile(n, 512 if _SMALL_VMEM else 1024)


def _k_tile(k):
    return _pick_tile(k, 512, must_divide=True)


# ----------------------------------------------------------------------------
# fused LayerNorm -> Linear (+ optional ReLU)
#   grid = (row tiles, col tiles); the normalized row tile is computed once
#   (under j == 0) into a bf16 VMEM scratch and reused for every column tile.
# ----------------------------------------------------------------------------
def _ln_linear_kernel(x_ref, g_ref, b_ref, w_ref, wb_ref, o_ref, xn_ref,
                      *, eps, relu):
    @pl.when(pl.program_id(1) == 0)
    def _():
        x = x_ref[...].astype(jnp.float32)
        mean = jnp.mean(x, axis=-1, keepdims=True)
        var = jnp.mean(jnp.square(x - mean), axis=-1, keepdims=True)
        xn = (x - mean) * lax.rsqrt(var + eps) * g_ref[...] + b_ref[...]
        xn_ref[...] = xn.astype(jnp.bfloat16)

    y = jnp.dot(xn_ref[...], w_ref[...],
                preferred_element_type=jnp.float32) + wb_ref[...]
    if relu:
        y = jnp.maximum(y, 0.0)
    o_ref[...] = y.astype(o_ref.dtype)


def pallas_ln_linear(x, g, b, w, wb, relu=False, eps=_LN_EPS,
                     out_dtype=jnp.bfloat16):
    M, K = x.shape
    N = w.shape[1]
    tm, tn = _row_tile(M), _col_tile(N)
    cost = pl.CostEstimate(
        flops=2 * M * N * K + 8 * M * K,
        transcendentals=M,
        bytes_accessed=int(M * K * x.dtype.itemsize + K * N * 2 + M * N * 2))
    return pl.pallas_call(
        functools.partial(_ln_linear_kernel, eps=eps, relu=relu),
        out_shape=jax.ShapeDtypeStruct((M, N), out_dtype),
        grid=(pl.cdiv(M, tm), pl.cdiv(N, tn)),
        in_specs=[
            pl.BlockSpec((tm, K), lambda i, j: (i, 0)),
            pl.BlockSpec((1, K), lambda i, j: (0, 0)),
            pl.BlockSpec((1, K), lambda i, j: (0, 0)),
            pl.BlockSpec((K, tn), lambda i, j: (0, j)),
            pl.BlockSpec((1, tn), lambda i, j: (0, j)),
        ],
        out_specs=pl.BlockSpec((tm, tn), lambda i, j: (i, j)),
        scratch_shapes=[pltpu.VMEM((tm, K), jnp.bfloat16)],
        compiler_params=_compiler_params(("parallel", "arbitrary")),
        cost_estimate=cost,
    )(x, g.reshape(1, K), b.reshape(1, K), w, wb.reshape(1, N))


# ----------------------------------------------------------------------------
# plain Linear (+ optional ReLU, optional fused residual add)
#   grid = (col tiles, row tiles, K tiles) — K innermost ("arbitrary") with a
#   f32 VMEM accumulator, so large-K GEMMs (FF2, K = dff) never need a full-K
#   block in VMEM.
# ----------------------------------------------------------------------------
def _linear_kernel(*refs, relu, has_resid, n_k):
    if has_resid:
        x_ref, w_ref, wb_ref, r_ref, o_ref, acc_ref = refs
    else:
        x_ref, w_ref, wb_ref, o_ref, acc_ref = refs
    k = pl.program_id(2)

    @pl.when(k == 0)
    def _():
        acc_ref[...] = jnp.zeros_like(acc_ref)

    acc_ref[...] += jnp.dot(x_ref[...].astype(jnp.bfloat16), w_ref[...],
                            preferred_element_type=jnp.float32)

    @pl.when(k == n_k - 1)
    def _():
        y = acc_ref[...] + wb_ref[...]
        if relu:
            y = jnp.maximum(y, 0.0)
        if has_resid:
            y = y + r_ref[...].astype(jnp.float32)
        o_ref[...] = y.astype(o_ref.dtype)


def pallas_linear(x, w, wb, residual=None, relu=False, out_dtype=jnp.bfloat16):
    M, K = x.shape
    N = w.shape[1]
    tm, tn, tk = _row_tile(M), _col_tile(N), _k_tile(K)
    gm, gn, gk = pl.cdiv(M, tm), pl.cdiv(N, tn), pl.cdiv(K, tk)
    in_specs = [
        pl.BlockSpec((tm, tk), lambda j, i, k: (i, k)),
        pl.BlockSpec((tk, tn), lambda j, i, k: (k, j)),
        pl.BlockSpec((1, tn), lambda j, i, k: (0, j)),
    ]
    args = [x, w, wb.reshape(1, N)]
    if residual is not None:
        in_specs.append(pl.BlockSpec((tm, tn), lambda j, i, k: (i, j)))
        args.append(residual)
    cost = pl.CostEstimate(
        flops=2 * M * N * K, transcendentals=0,
        bytes_accessed=int(M * K * x.dtype.itemsize + K * N * 2 + M * N * 2))
    return pl.pallas_call(
        functools.partial(_linear_kernel, relu=relu,
                          has_resid=residual is not None, n_k=gk),
        out_shape=jax.ShapeDtypeStruct((M, N), out_dtype),
        grid=(gn, gm, gk),
        in_specs=in_specs,
        out_specs=pl.BlockSpec((tm, tn), lambda j, i, k: (i, j)),
        scratch_shapes=[pltpu.VMEM((tm, tn), jnp.float32)],
        compiler_params=_compiler_params(("parallel", "parallel", "arbitrary")),
        cost_estimate=cost,
    )(*args)


# ----------------------------------------------------------------------------
# LayerNorm (final norm of the decoder stack)
# ----------------------------------------------------------------------------
def _layernorm_kernel(x_ref, g_ref, b_ref, o_ref, *, eps):
    x = x_ref[...].astype(jnp.float32)
    mean = jnp.mean(x, axis=-1, keepdims=True)
    var = jnp.mean(jnp.square(x - mean), axis=-1, keepdims=True)
    o_ref[...] = ((x - mean) * lax.rsqrt(var + eps) * g_ref[...]
                  + b_ref[...]).astype(o_ref.dtype)


def pallas_layernorm(x, g, b, eps=_LN_EPS, out_dtype=jnp.float32):
    M, D = x.shape
    tm = _row_tile(M)
    return pl.pallas_call(
        functools.partial(_layernorm_kernel, eps=eps),
        out_shape=jax.ShapeDtypeStruct((M, D), out_dtype),
        grid=(pl.cdiv(M, tm),),
        in_specs=[
            pl.BlockSpec((tm, D), lambda i: (i, 0)),
            pl.BlockSpec((1, D), lambda i: (0, 0)),
            pl.BlockSpec((1, D), lambda i: (0, 0)),
        ],
        out_specs=pl.BlockSpec((tm, D), lambda i: (i, 0)),
        compiler_params=_compiler_params(("parallel",)),
    )(x, g.reshape(1, D), b.reshape(1, D))


# ----------------------------------------------------------------------------
# fused multi-head attention + output projection + residual  (flash-style)
#   grid = (batch, Tk tiles).  Online softmax (m/l per head, lane-dense (Tq, D)
#   f32 accumulator) so K/V blocks stay tile-sized regardless of cache length.
#   All H heads handled in-kernel -> lane-dense (Tq, D) stores.
# ----------------------------------------------------------------------------
def _mha_kernel(q_ref, k_ref, v_ref, m_ref, wo_ref, bo_ref, r_ref, o_ref,
                m_sc, l_sc, acc_sc, *, H, scale, n_kv):
    kv = pl.program_id(1)
    D = q_ref.shape[-1]
    dh = D // H

    @pl.when(kv == 0)
    def _():
        m_sc[...] = jnp.full_like(m_sc, -jnp.inf)
        l_sc[...] = jnp.zeros_like(l_sc)
        acc_sc[...] = jnp.zeros_like(acc_sc)

    q = (q_ref[0].astype(jnp.float32) * scale).astype(jnp.bfloat16)   # (Tq, D)
    k = k_ref[0].astype(jnp.bfloat16)                                 # (tkv, D)
    v = v_ref[0].astype(jnp.bfloat16)                                 # (tkv, D)
    add_mask = jnp.where(m_ref[0].astype(jnp.float32) > 0.5, 0.0, _NEG)

    # TODO(synk): pack heads (block-diagonal) or fori_loop for large H so the
    # QK^T / PV contraction depth exceeds the MXU systolic depth.
    for h in range(H):
        sl = slice(h * dh, (h + 1) * dh)
        s = lax.dot_general(q[:, sl], k[:, sl], (((1,), (1,)), ((), ())),
                            preferred_element_type=jnp.float32)       # (Tq, tkv)
        s = s + add_mask
        m_prev = m_sc[h]                                               # (Tq, 1)
        m_new = jnp.maximum(m_prev, jnp.max(s, axis=-1, keepdims=True))
        alpha = jnp.exp(m_prev - m_new)
        p = jnp.exp(s - m_new)
        l_sc[h] = alpha * l_sc[h] + jnp.sum(p, axis=-1, keepdims=True)
        acc_sc[:, sl] = alpha * acc_sc[:, sl] + jnp.dot(
            p.astype(jnp.bfloat16), v[:, sl], preferred_element_type=jnp.float32)
        m_sc[h] = m_new

    @pl.when(kv == n_kv - 1)
    def _():
        for h in range(H):
            sl = slice(h * dh, (h + 1) * dh)
            acc_sc[:, sl] = acc_sc[:, sl] * pl.reciprocal(l_sc[h], approx=True)
        y = jnp.dot(acc_sc[...].astype(jnp.bfloat16), wo_ref[...],
                    preferred_element_type=jnp.float32) + bo_ref[...]
        o_ref[0] = (r_ref[0].astype(jnp.float32) + y).astype(o_ref.dtype)


def _col_view(arr, col, D):
    """Present D columns at offset col*D as an (array, col-block-index) pair."""
    if arr.shape[-1] == D:
        return arr, 0
    if D % 128 == 0:                    # BlockSpec picks the column block directly
        return arr, col
    return lax.slice_in_dim(arr, col * D, (col + 1) * D, axis=-1), 0


def pallas_mha(q_src, k_src, v_src, mask, wo, bo, residual, *, num_heads,
               out_dtype=jnp.bfloat16):
    D = wo.shape[0]
    B, Tq, _ = q_src[0].shape
    Tk = k_src[0].shape[1]
    q_arr, q_col = _col_view(*q_src, D)
    k_arr, k_col = _col_view(*k_src, D)
    v_arr, v_col = _col_view(*v_src, D)
    mrows = mask.shape[1]
    tkv = _pick_tile(Tk, 512, must_divide=True)
    n_kv = Tk // tkv
    scale = 1.0 / float(D // num_heads) ** 0.5
    cost = pl.CostEstimate(
        flops=4 * B * Tq * Tk * D + 2 * B * Tq * D * D,
        transcendentals=B * num_heads * Tq * Tk,
        bytes_accessed=int(B * (Tq + 2 * Tk) * D * 2 + B * mrows * Tk
                           + 2 * B * Tq * D * 2 + D * D * 2))
    return pl.pallas_call(
        functools.partial(_mha_kernel, H=num_heads, scale=scale, n_kv=n_kv),
        out_shape=jax.ShapeDtypeStruct((B, Tq, D), out_dtype),
        grid=(B, n_kv),
        in_specs=[
            pl.BlockSpec((1, Tq, D), lambda b, kv: (b, 0, q_col)),
            pl.BlockSpec((1, tkv, D), lambda b, kv: (b, kv, k_col)),
            pl.BlockSpec((1, tkv, D), lambda b, kv: (b, kv, v_col)),
            pl.BlockSpec((1, mrows, tkv), lambda b, kv: (b, 0, kv)),
            pl.BlockSpec((D, D), lambda b, kv: (0, 0)),
            pl.BlockSpec((1, D), lambda b, kv: (0, 0)),
            pl.BlockSpec((1, Tq, D), lambda b, kv: (b, 0, 0)),
        ],
        out_specs=pl.BlockSpec((1, Tq, D), lambda b, kv: (b, 0, 0)),
        scratch_shapes=[
            pltpu.VMEM((num_heads, Tq, 1), jnp.float32),   # running max
            pltpu.VMEM((num_heads, Tq, 1), jnp.float32),   # running denom
            pltpu.VMEM((Tq, D), jnp.float32),              # lane-dense acc
        ],
        compiler_params=_compiler_params(("parallel", "arbitrary")),
        cost_estimate=cost,
    )(q_arr, k_arr, v_arr, mask, wo, bo.reshape(1, D), residual)


# ----------------------------------------------------------------------------
# fused, domain-routed classifier adapter:
#   LN -> down-proj -> ReLU -> up-proj -> gate -> residual, one kernel.
#   Per-example adapter weights selected with scalar-prefetch (dom_idx) via a
#   data-dependent index_map — only ONE adapter is computed per token.
# ----------------------------------------------------------------------------
def _adapter_kernel(dom_ref, gate_ref, x_ref, g_ref, b_ref,
                    wd_ref, bd_ref, wu_ref, bu_ref, o_ref, *, eps):
    i = pl.program_id(0)
    x = x_ref[0].astype(jnp.float32)                             # (T, D)
    mean = jnp.mean(x, axis=-1, keepdims=True)
    var = jnp.mean(jnp.square(x - mean), axis=-1, keepdims=True)
    xn = (x - mean) * lax.rsqrt(var + eps) * g_ref[...] + b_ref[...]
    h = jnp.dot(xn.astype(jnp.bfloat16), wd_ref[0],
                preferred_element_type=jnp.float32) + bd_ref[0]
    h = jnp.maximum(h, 0.0)
    up = jnp.dot(h.astype(jnp.bfloat16), wu_ref[0],
                 preferred_element_type=jnp.float32) + bu_ref[0]
    gate = gate_ref[i].astype(jnp.float32)    # 0 if the example matched no domain
    o_ref[0] = (x + up * gate).astype(o_ref.dtype)


def pallas_adapter(x, g, b, wd, bd, wu, bu, dom_idx, gate, eps=_LN_EPS,
                   out_dtype=jnp.bfloat16):
    B, T, D = x.shape
    n_dom, _, A = wd.shape
    grid_spec = pltpu.PrefetchScalarGridSpec(
        num_scalar_prefetch=2,
        grid=(B,),
        in_specs=[
            pl.BlockSpec((1, T, D), lambda i, dom, gt: (i, 0, 0)),
            pl.BlockSpec((1, D), lambda i, dom, gt: (0, 0)),
            pl.BlockSpec((1, D), lambda i, dom, gt: (0, 0)),
            pl.BlockSpec((1, D, A), lambda i, dom, gt: (dom[i], 0, 0)),
            pl.BlockSpec((1, 1, A), lambda i, dom, gt: (dom[i], 0, 0)),
            pl.BlockSpec((1, A, D), lambda i, dom, gt: (dom[i], 0, 0)),
            pl.BlockSpec((1, 1, D), lambda i, dom, gt: (dom[i], 0, 0)),
        ],
        out_specs=pl.BlockSpec((1, T, D), lambda i, dom, gt: (i, 0, 0)),
    )
    return pl.pallas_call(
        functools.partial(_adapter_kernel, eps=eps),
        out_shape=jax.ShapeDtypeStruct((B, T, D), out_dtype),
        grid_spec=grid_spec,
        compiler_params=_compiler_params(("parallel",)),
    )(dom_idx, gate, x, g.reshape(1, D), b.reshape(1, D),
      wd, bd.reshape(n_dom, 1, A), wu, bu.reshape(n_dom, 1, D))


# ----------------------------------------------------------------------------
# glue: decoder layer / full decoder
# ----------------------------------------------------------------------------
def _fit_mask(mask, tk):
    """Pad the mask on the left with ones when a KV cache makes Tk > mask width."""
    if mask.shape[-1] == tk:
        return mask
    pad = jnp.ones(mask.shape[:-1] + (tk - mask.shape[-1],), mask.dtype)
    return jnp.concatenate([pad, mask], axis=-1)


def decoder_layer_forward(p, x, memory, src_mask, trg_mask,
                          enc_cache, self_cache, dom_idx, dom_gate, H):
    B, T, D = x.shape
    S = memory.shape[1]
    x2d = x.reshape(B * T, D)

    # ---- self-attention: LN1 + fused QKV projection, then flash MHA+Wo+residual
    qkv = pallas_ln_linear(x2d, p["ln1_g"], p["ln1_b"],
                           p["w_qkv_s"], p["b_qkv_s"]).reshape(B, T, 3 * D)
    k_new = lax.slice_in_dim(qkv, D, 2 * D, axis=-1)
    v_new = lax.slice_in_dim(qkv, 2 * D, 3 * D, axis=-1)
    if self_cache is not None:
        k_self = jnp.concatenate([self_cache[0].astype(jnp.bfloat16), k_new], axis=1)
        v_self = jnp.concatenate([self_cache[1].astype(jnp.bfloat16), v_new], axis=1)
        k_src, v_src = (k_self, 0), (v_self, 0)
    else:
        k_self, v_self = k_new, v_new
        k_src, v_src = (qkv, 1), (qkv, 2)      # views via BlockSpec column index
    new_self_cache = (k_self, v_self)
    # TODO(synk): for long-context decode preallocate the KV cache in HBM, append
    # in place (input_output_aliases) and stream pages with make_async_copy
    # instead of rebuilding it with jnp.concatenate every step.
    tk = k_self.shape[1]
    x = pallas_mha((qkv, 0), k_src, v_src, _fit_mask(trg_mask, tk),
                   p["wo_s"], p["bo_s"], x, num_heads=H)

    # ---- cross-attention: LN2 + Q projection; fused KV projection of memory
    x2d = x.reshape(B * T, D)
    q_c = pallas_ln_linear(x2d, p["ln2_g"], p["ln2_b"],
                           p["w_q_c"], p["b_q_c"]).reshape(B, T, D)
    if enc_cache is None:
        kv_c = pallas_linear(memory.reshape(B * S, D),
                             p["w_kv_c"], p["b_kv_c"]).reshape(B, S, 2 * D)
    else:
        kv_c = enc_cache
    new_enc_cache = kv_c
    x = pallas_mha((q_c, 0), (kv_c, 0), (kv_c, 1), src_mask,
                   p["wo_c"], p["bo_c"], x, num_heads=H)

    # ---- feed-forward: LN3+FF1+ReLU fused; FF2(K-tiled)+residual fused
    x2d = x.reshape(B * T, D)
    h = pallas_ln_linear(x2d, p["ln3_g"], p["ln3_b"],
                         p["w_ff1"], p["b_ff1"], relu=True)
    x2d = pallas_linear(h, p["w_ff2"], p["b_ff2"], residual=x2d)

    # ---- domain-routed classifier adapter (single fused kernel)
    x = pallas_adapter(x2d.reshape(B, T, D), p["lna_g"], p["lna_b"],
                       p["ad_wd"], p["ad_bd"], p["ad_wu"], p["ad_bu"],
                       dom_idx, dom_gate)
    return x, new_enc_cache, new_self_cache


def _route_domains(target_domain, params, B):
    """Map per-example domain labels -> adapter-stack index + validity gate."""
    order = params["domain_order"]
    labels = params["domain_labels"]                    # (n_dom,) int32
    if isinstance(target_domain, str):
        idx = order.index(target_domain)
        return jnp.full((B,), idx, jnp.int32), jnp.ones((B,), jnp.int32)
    if target_domain is None:
        return jnp.zeros((B,), jnp.int32), jnp.zeros((B,), jnp.int32)
    td = jnp.asarray(target_domain, jnp.int32).reshape(B)
    eq = td[:, None] == labels[None, :]                 # (B, n_dom)
    gate = jnp.any(eq, axis=-1).astype(jnp.int32)
    idx = jnp.argmax(eq, axis=-1).astype(jnp.int32)
    return idx, gate


def transformer_decoder_forward(params, x, memory, src_mask, trg_mask,
                                enc_attn_cache_list=None,
                                self_attn_cache_list=None,
                                target_domain=None):
    num_layers = params["num_layers"]
    H = params["num_heads"]
    B = x.shape[0]
    S = memory.shape[1]
    dom_idx, dom_gate = _route_domains(target_domain, params, B)

    # bf16 residual stream & encoder memory (halves inter-kernel HBM traffic);
    # LayerNorm / softmax math stays f32 inside the kernels, MXU accumulates f32.
    x = x.astype(jnp.bfloat16)
    memory = memory.astype(jnp.bfloat16)
    # int8 masks, converted/fitted once per forward (not per layer).
    src_mask = _fit_mask((jnp.asarray(src_mask) > 0).astype(jnp.int8), S)
    trg_mask = (jnp.asarray(trg_mask) > 0).astype(jnp.int8)

    if self_attn_cache_list is None:
        self_attn_cache_list = [None] * num_layers
    if enc_attn_cache_list is None:
        enc_attn_cache_list = [None] * num_layers

    new_enc_attn_cache_list = []
    new_self_attn_cache_list = []
    layers_adapter_output = []
    for i in range(num_layers):
        # clones() deep-copies one layer => identical params for every layer.
        x, new_enc, new_self = decoder_layer_forward(
            params["layer"], x, memory, src_mask, trg_mask,
            enc_attn_cache_list[i], self_attn_cache_list[i],
            dom_idx, dom_gate, H)
        layers_adapter_output.append(x)
        new_self_attn_cache_list.append(new_self)
        new_enc_attn_cache_list.append(new_enc)

    B, T, D = x.shape
    out = pallas_layernorm(x.reshape(B * T, D),
                           params["final_ln_g"],
                           params["final_ln_b"]).reshape(B, T, D)
    return out, layers_adapter_output, new_enc_attn_cache_list, new_self_attn_cache_list


# ----------------------------------------------------------------------------
# deterministic parameter init (synthetic; matmul weights in bf16)
# ----------------------------------------------------------------------------
def init_params(key, D, H, dff, adapter_dim, num_layers, domain_label_dict):
    keys = iter(jax.random.split(key, 64))

    def dense(din, dout):
        w = (jax.random.normal(next(keys), (din, dout), jnp.float32) * 0.02
             ).astype(jnp.bfloat16)
        return w, jnp.zeros((dout,), jnp.float32)

    layer = {}
    layer["w_qkv_s"], layer["b_qkv_s"] = dense(D, 3 * D)   # fused Q|K|V (self)
    layer["wo_s"], layer["bo_s"] = dense(D, D)
    layer["w_q_c"], layer["b_q_c"] = dense(D, D)
    layer["w_kv_c"], layer["b_kv_c"] = dense(D, 2 * D)     # fused K|V (cross)
    layer["wo_c"], layer["bo_c"] = dense(D, D)
    layer["w_ff1"], layer["b_ff1"] = dense(D, dff)
    layer["w_ff2"], layer["b_ff2"] = dense(dff, D)
    for ln in ("ln1", "ln2", "ln3", "lna"):
        layer[ln + "_g"] = jnp.ones((D,), jnp.float32)
        layer[ln + "_b"] = jnp.zeros((D,), jnp.float32)

    order = list(domain_label_dict.keys())
    wds, bds, wus, bus = [], [], [], []
    for _ in order:
        wd, bd = dense(D, adapter_dim)
        wu, bu = dense(adapter_dim, D)
        wds.append(wd); bds.append(bd); wus.append(wu); bus.append(bu)
    layer["ad_wd"] = jnp.stack(wds)      # (n_dom, D, A)
    layer["ad_bd"] = jnp.stack(bds)      # (n_dom, A)
    layer["ad_wu"] = jnp.stack(wus)      # (n_dom, A, D)
    layer["ad_bu"] = jnp.stack(bus)      # (n_dom, D)

    return {
        "layer": layer,
        "num_layers": num_layers,
        "num_heads": H,
        "domain_order": order,
        "domain_labels": jnp.array([domain_label_dict[d] for d in order], jnp.int32),
        "domain_label_dict": domain_label_dict,
        # nn.LayerNorm default init: ones / zeros
        "final_ln_g": jnp.ones((D,), jnp.float32),
        "final_ln_b": jnp.zeros((D,), jnp.float32),
    }


# ----------------------------------------------------------------------------
if __name__ == "__main__":
    # D=128 keeps every kernel's output lane-dense (last dim a multiple of 128).
    B, T, S, D, H, dff, adapter_dim, L = 2, 8, 8, 128, 4, 256, 64, 2
    domain_label_dict = {"news": 0, "tech": 1}

    key = jax.random.PRNGKey(0)
    k_par, k_x, k_mem = jax.random.split(key, 3)
    params = init_params(k_par, D, H, dff, adapter_dim, L, domain_label_dict)

    x = jax.random.normal(k_x, (B, T, D), jnp.float32)
    memory = jax.random.normal(k_mem, (B, S, D), jnp.float32)
    trg_mask = jnp.broadcast_to(jnp.tril(jnp.ones((T, T), jnp.float32))[None],
                                (B, T, T))
    src_mask = jnp.ones((B, 1, S), jnp.float32)
    target_domain = jnp.array([0, 1], dtype=jnp.int32)   # one example per domain

    fwd = jax.jit(functools.partial(transformer_decoder_forward, params))
    out, layers_adapter_output, enc_caches, self_caches = fwd(
        x, memory, src_mask, trg_mask, target_domain=target_domain)

    jax.block_until_ready(out)
    assert out.shape == (B, T, D)
    assert len(layers_adapter_output) == L
    assert len(enc_caches) == L and len(self_caches) == L
    print("KERNEL_OK")
</pallas_src>

<mosaic_0001>
module attributes {stable_mosaic.version = 11 : i64} {
  func.func @_ln_linear_kernel(%arg0: i32, %arg1: i32, %arg2: memref<16x128xbf16, #tpu.memory_space<vmem>>, %arg3: memref<1x128xf32, #tpu.memory_space<vmem>>, %arg4: memref<1x128xf32, #tpu.memory_space<vmem>>, %arg5: memref<128x384xbf16, #tpu.memory_space<vmem>>, %arg6: memref<1x384xf32, #tpu.memory_space<vmem>>, %arg7: memref<16x384xbf16, #tpu.memory_space<vmem>>, %arg8: memref<16x128xbf16, #tpu.memory_space<vmem>>) attributes {dimension_semantics = [#tpu.dimension_semantics<parallel>, #tpu.dimension_semantics<arbitrary>], iteration_bounds = array<i64: 1, 1>, scalar_prefetch = 0 : i64, scratch_operands = 1 : i64, tpu.core_type = #tpu.core_type<tc>, window_params = [{transform_indices = @transform_0, window_bounds = array<i64: 16, 128>}, {pipeline_mode = #tpu.pipeline_mode<synchronous>, transform_indices = @transform_1, window_bounds = array<i64: 1, 128>}, {pipeline_mode = #tpu.pipeline_mode<synchronous>, transform_indices = @transform_2, window_bounds = array<i64: 1, 128>}, {transform_indices = @transform_3, window_bounds = array<i64: 128, 384>}, {transform_indices = @transform_4, window_bounds = array<i64: 1, 384>}, {transform_indices = @transform_5, window_bounds = array<i64: 16, 384>}]} {
    %c0_i32 = arith.constant 0 : i32
    %0 = arith.cmpi eq, %arg1, %c0_i32 : i32
    %1 = arith.extui %0 : i1 to i32
    %c0_i32_0 = arith.constant 0 : i32
    %2 = arith.cmpi ne, %1, %c0_i32_0 : i32
    scf.if %2 {
      %c0_8 = arith.constant 0 : index
      %c0_9 = arith.constant 0 : index
      %11 = vector.load %arg2[%c0_8, %c0_9] : memref<16x128xbf16, #tpu.memory_space<vmem>>, vector<16x128xbf16>
      %12 = arith.extf %11 : vector<16x128xbf16> to vector<16x128xf32>
      %cst_10 = arith.constant dense<0.000000e+00> : vector<16xf32>
      %13 = vector.multi_reduction <add>, %12, %cst_10 [1] : vector<16x128xf32> to vector<16xf32>
      %14 = vector.shape_cast %13 : vector<16xf32> to vector<16x1xf32>
      %cst_11 = arith.constant 1.280000e+02 : f32
      %15 = vector.broadcast %cst_11 : f32 to vector<16x1xf32>
      %16 = arith.divf %14, %15 : vector<16x1xf32>
      %17 = vector.broadcast %16 : vector<16x1xf32> to vector<16x128xf32>
      %18 = arith.subf %12, %17 : vector<16x128xf32>
      %19 = arith.mulf %18, %18 : vector<16x128xf32>
      %cst_12 = arith.constant dense<0.000000e+00> : vector<16xf32>
      %20 = vector.multi_reduction <add>, %19, %cst_12 [1] : vector<16x128xf32> to vector<16xf32>
      %21 = vector.shape_cast %20 : vector<16xf32> to vector<16x1xf32>
      %cst_13 = arith.constant 1.280000e+02 : f32
      %22 = vector.broadcast %cst_13 : f32 to vector<16x1xf32>
      %23 = arith.divf %21, %22 : vector<16x1xf32>
      %24 = vector.broadcast %16 : vector<16x1xf32> to vector<16x128xf32>
      %25 = arith.subf %12, %24 : vector<16x128xf32>
      %cst_14 = arith.constant 9.99999974E-6 : f32
      %26 = vector.broadcast %cst_14 : f32 to vector<16x1xf32>
      %27 = arith.addf %23, %26 : vector<16x1xf32>
      %28 = math.rsqrt %27 : vector<16x1xf32>
      %29 = vector.broadcast %28 : vector<16x1xf32> to vector<16x128xf32>
      %30 = arith.mulf %25, %29 : vector<16x128xf32>
      %c0_15 = arith.constant 0 : index
      %c0_16 = arith.constant 0 : index
      %31 = vector.load %arg3[%c0_15, %c0_16] : memref<1x128xf32, #tpu.memory_space<vmem>>, vector<1x128xf32>
      %32 = vector.broadcast %31 : vector<1x128xf32> to vector<16x128xf32>
      %33 = arith.mulf %30, %32 : vector<16x128xf32>
      %c0_17 = arith.constant 0 : index
      %c0_18 = arith.constant 0 : index
      %34 = vector.load %arg4[%c0_17, %c0_18] : memref<1x128xf32, #tpu.memory_space<vmem>>, vector<1x128xf32>
      %35 = vector.broadcast %34 : vector<1x128xf32> to vector<16x128xf32>
      %36 = arith.addf %33, %35 : vector<16x128xf32>
      %37 = arith.truncf %36 : vector<16x128xf32> to vector<16x128xbf16>
      %c0_19 = arith.constant 0 : index
      %c0_20 = arith.constant 0 : index
      %38 = vector.load %arg8[%c0_19, %c0_20] : memref<16x128xbf16, #tpu.memory_space<vmem>>, vector<16x128xbf16>
      tpu.vector_store %arg8[%c0_19, %c0_20], %37 {strides = array<i32>} : memref<16x128xbf16, #tpu.memory_space<vmem>>, vector<16x128xbf16>,
    } else {
    }
    %c0 = arith.constant 0 : index
    %c0_1 = arith.constant 0 : index
    %3 = vector.load %arg8[%c0, %c0_1] : memref<16x128xbf16, #tpu.memory_space<vmem>>, vector<16x128xbf16>
    %c0_2 = arith.constant 0 : index
    %c0_3 = arith.constant 0 : index
    %4 = vector.load %arg5[%c0_2, %c0_3] : memref<128x384xbf16, #tpu.memory_space<vmem>>, vector<128x384xbf16>
    %cst = arith.constant dense<0.000000e+00> : vector<16x384xf32>
    %5 = tpu.matmul %3, %4, %cst {dimension_numbers = #tpu.dot_dimension_numbers<[1], [0], [0], [1], [0, 0, 1, 1], [], []>} : vector<16x128xbf16>, vector<128x384xbf16>, vector<16x384xf32> -> vector<16x384xf32>
    %c0_4 = arith.constant 0 : index
    %c0_5 = arith.constant 0 : index
    %6 = vector.load %arg6[%c0_4, %c0_5] : memref<1x384xf32, #tpu.memory_space<vmem>>, vector<1x384xf32>
    %7 = vector.broadcast %6 : vector<1x384xf32> to vector<16x384xf32>
    %8 = arith.addf %5, %7 : vector<16x384xf32>
    %9 = arith.truncf %8 : vector<16x384xf32> to vector<16x384xbf16>
    %c0_6 = arith.constant 0 : index
    %c0_7 = arith.constant 0 : index
    %10 = vector.load %arg7[%c0_6, %c0_7] : memref<16x384xbf16, #tpu.memory_space<vmem>>, vector<16x384xbf16>
    tpu.vector_store %arg7[%c0_6, %c0_7], %9 {strides = array<i32>} : memref<16x384xbf16, #tpu.memory_space<vmem>>, vector<16x384xbf16>,
    return
  }
  func.func @transform_0(%arg0: i32, %arg1: i32) -> (i32, i32) {
    %c0_i32 = arith.constant 0 : i32
    %c0_i32_0 = arith.constant 0 : i32
    return %arg0, %c0_i32 : i32, i32
  }
  func.func @transform_1(%arg0: i32, %arg1: i32) -> (i32, i32) {
    %c0_i32 = arith.constant 0 : i32
    %c0_i32_0 = arith.constant 0 : i32
    %c0_i32_1 = arith.constant 0 : i32
    return %c0_i32, %c0_i32_0 : i32, i32
  }
  func.func @transform_2(%arg0: i32, %arg1: i32) -> (i32, i32) {
    %c0_i32 = arith.constant 0 : i32
    %c0_i32_0 = arith.constant 0 : i32
    %c0_i32_1 = arith.constant 0 : i32
    return %c0_i32, %c0_i32_0 : i32, i32
  }
  func.func @transform_3(%arg0: i32, %arg1: i32) -> (i32, i32) {
    %c0_i32 = arith.constant 0 : i32
    %c0_i32_0 = arith.constant 0 : i32
    return %c0_i32, %arg1 : i32, i32
  }
  func.func @transform_4(%arg0: i32, %arg1: i32) -> (i32, i32) {
    %c0_i32 = arith.constant 0 : i32
    %c0_i32_0 = arith.constant 0 : i32
    return %c0_i32, %arg1 : i32, i32
  }
  func.func @transform_5(%arg0: i32, %arg1: i32) -> (i32, i32) {
    %c0_i32 = arith.constant 0 : i32
    return %arg0, %arg1 : i32, i32
  }
}

module attributes {stable_mosaic.version = 11 : i64} {
  func.func @_ln_linear_kernel(%arg0: i32, %arg1: i32, %arg2: memref<16x128xbf16, #tpu.memory_space<vmem>>, %arg3: memref<1x128xf32, #tpu.memory_space<vmem>>, %arg4: memref<1x128xf32, #tpu.memory_space<vmem>>, %arg5: memref<128x128xbf16, #tpu.memory_space<vmem>>, %arg6: memref<1x128xf32, #tpu.memory_space<vmem>>, %arg7: memref<16x128xbf16, #tpu.memory_space<vmem>>, %arg8: memref<16x128xbf16, #tpu.memory_space<vmem>>) attributes {dimension_semantics = [#tpu.dimension_semantics<parallel>, #tpu.dimension_semantics<arbitrary>], iteration_bounds = array<i64: 1, 1>, scalar_prefetch = 0 : i64, scratch_operands = 1 : i64, tpu.core_type = #tpu.core_type<tc>, window_params = [{transform_indices = @transform_0, window_bounds = array<i64: 16, 128>}, {pipeline_mode = #tpu.pipeline_mode<synchronous>, transform_indices = @transform_1, window_bounds = array<i64: 1, 128>}, {pipeline_mode = #tpu.pipeline_mode<synchronous>, transform_indices = @transform_2, window_bounds = array<i64: 1, 128>}, {transform_indices = @transform_3, window_bounds = array<i64: 128, 128>}, {transform_indices = @transform_4, window_bounds = array<i64: 1, 128>}, {transform_indices = @transform_5, window_bounds = array<i64: 16, 128>}]} {
    %c0_i32 = arith.constant 0 : i32
    %0 = arith.cmpi eq, %arg1, %c0_i32 : i32
    %1 = arith.extui %0 : i1 to i32
    %c0_i32_0 = arith.constant 0 : i32
    %2 = arith.cmpi ne, %1, %c0_i32_0 : i32
    scf.if %2 {
      %c0_8 = arith.constant 0 : index
      %c0_9 = arith.constant 0 : index
      %11 = vector.load %arg2[%c0_8, %c0_9] : memref<16x128xbf16, #tpu.memory_space<vmem>>, vector<16x128xbf16>
      %12 = arith.extf %11 : vector<16x128xbf16> to vector<16x128xf32>
      %cst_10 = arith.constant dense<0.000000e+00> : vector<16xf32>
      %13 = vector.multi_reduction <add>, %12, %cst_10 [1] : vector<16x128xf32> to vector<16xf32>
      %14 = vector.shape_cast %13 : vector<16xf32> to vector<16x1xf32>
      %cst_11 = arith.constant 1.280000e+02 : f32
      %15 = vector.broadcast %cst_11 : f32 to vector<16x1xf32>
      %16 = arith.divf %14, %15 : vector<16x1xf32>
      %17 = vector.broadcast %16 : vector<16x1xf32> to vector<16x128xf32>
      %18 = arith.subf %12, %17 : vector<16x128xf32>
      %19 = arith.mulf %18, %18 : vector<16x128xf32>
      %cst_12 = arith.constant dense<0.000000e+00> : vector<16xf32>
      %20 = vector.multi_reduction <add>, %19, %cst_12 [1] : vector<16x128xf32> to vector<16xf32>
      %21 = vector.shape_cast %20 : vector<16xf32> to vector<16x1xf32>
      %cst_13 = arith.constant 1.280000e+02 : f32
      %22 = vector.broadcast %cst_13 : f32 to vector<16x1xf32>
      %23 = arith.divf %21, %22 : vector<16x1xf32>
      %24 = vector.broadcast %16 : vector<16x1xf32> to vector<16x128xf32>
      %25 = arith.subf %12, %24 : vector<16x128xf32>
      %cst_14 = arith.constant 9.99999974E-6 : f32
      %26 = vector.broadcast %cst_14 : f32 to vector<16x1xf32>
      %27 = arith.addf %23, %26 : vector<16x1xf32>
      %28 = math.rsqrt %27 : vector<16x1xf32>
      %29 = vector.broadcast %28 : vector<16x1xf32> to vector<16x128xf32>
      %30 = arith.mulf %25, %29 : vector<16x128xf32>
      %c0_15 = arith.constant 0 : index
      %c0_16 = arith.constant 0 : index
      %31 = vector.load %arg3[%c0_15, %c0_16] : memref<1x128xf32, #tpu.memory_space<vmem>>, vector<1x128xf32>
      %32 = vector.broadcast %31 : vector<1x128xf32> to vector<16x128xf32>
      %33 = arith.mulf %30, %32 : vector<16x128xf32>
      %c0_17 = arith.constant 0 : index
      %c0_18 = arith.constant 0 : index
      %34 = vector.load %arg4[%c0_17, %c0_18] : memref<1x128xf32, #tpu.memory_space<vmem>>, vector<1x128xf32>
      %35 = vector.broadcast %34 : vector<1x128xf32> to vector<16x128xf32>
      %36 = arith.addf %33, %35 : vector<16x128xf32>
      %37 = arith.truncf %36 : vector<16x128xf32> to vector<16x128xbf16>
      %c0_19 = arith.constant 0 : index
      %c0_20 = arith.constant 0 : index
      %38 = vector.load %arg8[%c0_19, %c0_20] : memref<16x128xbf16, #tpu.memory_space<vmem>>, vector<16x128xbf16>
      tpu.vector_store %arg8[%c0_19, %c0_20], %37 {strides = array<i32>} : memref<16x128xbf16, #tpu.memory_space<vmem>>, vector<16x128xbf16>,
    } else {
    }
    %c0 = arith.constant 0 : index
    %c0_1 = arith.constant 0 : index
    %3 = vector.load %arg8[%c0, %c0_1] : memref<16x128xbf16, #tpu.memory_space<vmem>>, vector<16x128xbf16>
    %c0_2 = arith.constant 0 : index
    %c0_3 = arith.constant 0 : index
    %4 = vector.load %arg5[%c0_2, %c0_3] : memref<128x128xbf16, #tpu.memory_space<vmem>>, vector<128x128xbf16>
    %cst = arith.constant dense<0.000000e+00> : vector<16x128xf32>
    %5 = tpu.matmul %3, %4, %cst {dimension_numbers = #tpu.dot_dimension_numbers<[1], [0], [0], [1], [0, 0, 1, 1], [], []>} : vector<16x128xbf16>, vector<128x128xbf16>, vector<16x128xf32> -> vector<16x128xf32>
    %c0_4 = arith.constant 0 : index
    %c0_5 = arith.constant 0 : index
    %6 = vector.load %arg6[%c0_4, %c0_5] : memref<1x128xf32, #tpu.memory_space<vmem>>, vector<1x128xf32>
    %7 = vector.broadcast %6 : vector<1x128xf32> to vector<16x128xf32>
    %8 = arith.addf %5, %7 : vector<16x128xf32>
    %9 = arith.truncf %8 : vector<16x128xf32> to vector<16x128xbf16>
    %c0_6 = arith.constant 0 : index
    %c0_7 = arith.constant 0 : index
    %10 = vector.load %arg7[%c0_6, %c0_7] : memref<16x128xbf16, #tpu.memory_space<vmem>>, vector<16x128xbf16>
    tpu.vector_store %arg7[%c0_6, %c0_7], %9 {strides = array<i32>} : memref<16x128xbf16, #tpu.memory_space<vmem>>, vector<16x128xbf16>,
    return
  }
  func.func @transform_0(%arg0: i32, %arg1: i32) -> (i32, i32) {
    %c0_i32 = arith.constant 0 : i32
    %c0_i32_0 = arith.constant 0 : i32
    return %arg0, %c0_i32 : i32, i32
  }
  func.func @transform_1(%arg0: i32, %arg1: i32) -> (i32, i32) {
    %c0_i32 = arith.constant 0 : i32
    %c0_i32_0 = arith.constant 0 : i32
    %c0_i32_1 = arith.constant 0 : i32
    return %c0_i32, %c0_i32_0 : i32, i32
  }
  func.func @transform_2(%arg0: i32, %arg1: i32) -> (i32, i32) {
    %c0_i32 = arith.constant 0 : i32
    %c0_i32_0 = arith.constant 0 : i32
    %c0_i32_1 = arith.constant 0 : i32
    return %c0_i32, %c0_i32_0 : i32, i32
  }
  func.func @transform_3(%arg0: i32, %arg1: i32) -> (i32, i32) {
    %c0_i32 = arith.constant 0 : i32
    %c0_i32_0 = arith.constant 0 : i32
    return %c0_i32, %arg1 : i32, i32
  }
  func.func @transform_4(%arg0: i32, %arg1: i32) -> (i32, i32) {
    %c0_i32 = arith.constant 0 : i32
    %c0_i32_0 = arith.constant 0 : i32
    return %c0_i32, %arg1 : i32, i32
  }
  func.func @transform_5(%arg0: i32, %arg1: i32) -> (i32, i32) {
    %c0_i32 = arith.constant 0 : i32
    return %arg0, %arg1 : i32, i32
  }
}

module attributes {stable_mosaic.version = 11 : i64} {
  func.func @_mha_kernel(%arg0: i32, %arg1: i32, %arg2: memref<1x8x128xbf16, #tpu.memory_space<vmem>>, %arg3: memref<1x8x128xbf16, #tpu.memory_space<vmem>>, %arg4: memref<1x8x128xbf16, #tpu.memory_space<vmem>>, %arg5: memref<1x8x8xi8, #tpu.memory_space<vmem>>, %arg6: memref<128x128xbf16, #tpu.memory_space<vmem>>, %arg7: memref<1x128xf32, #tpu.memory_space<vmem>>, %arg8: memref<1x8x128xbf16, #tpu.memory_space<vmem>>, %arg9: memref<1x8x128xbf16, #tpu.memory_space<vmem>>, %arg10: memref<4x8x1xf32, #tpu.memory_space<vmem>>, %arg11: memref<4x8x1xf32, #tpu.memory_space<vmem>>, %arg12: memref<8x128xf32, #tpu.memory_space<vmem>>) attributes {dimension_semantics = [#tpu.dimension_semantics<parallel>, #tpu.dimension_semantics<arbitrary>], iteration_bounds = array<i64: 2, 1>, scalar_prefetch = 0 : i64, scratch_operands = 3 : i64, tpu.core_type = #tpu.core_type<tc>, window_params = [{transform_indices = @transform_0, window_bounds = array<i64: 1, 8, 128>}, {transform_indices = @transform_1, window_bounds = array<i64: 1, 8, 128>}, {transform_indices = @transform_2, window_bounds = array<i64: 1, 8, 128>}, {transform_indices = @transform_3, window_bounds = array<i64: 1, 8, 8>}, {pipeline_mode = #tpu.pipeline_mode<synchronous>, transform_indices = @transform_4, window_bounds = array<i64: 128, 128>}, {pipeline_mode = #tpu.pipeline_mode<synchronous>, transform_indices = @transform_5, window_bounds = array<i64: 1, 128>}, {transform_indices = @transform_6, window_bounds = array<i64: 1, 8, 128>}, {transform_indices = @transform_7, window_bounds = array<i64: 1, 8, 128>}]} {
    %c0_i32 = arith.constant 0 : i32
    %0 = arith.cmpi eq, %arg1, %c0_i32 : i32
    %1 = arith.extui %0 : i1 to i32
    %c0_i32_0 = arith.constant 0 : i32
    %2 = arith.cmpi ne, %1, %c0_i32_0 : i32
    scf.if %2 {
      %cst_91 = arith.constant 0xFF800000 : f32
      %160 = vector.broadcast %cst_91 : f32 to vector<4x8x1xf32>
      %c0_92 = arith.constant 0 : index
      %c0_93 = arith.constant 0 : index
      %c0_94 = arith.constant 0 : index
      %161 = vector.load %arg10[%c0_92, %c0_93, %c0_94] : memref<4x8x1xf32, #tpu.memory_space<vmem>>, vector<4x8x1xf32>
      tpu.vector_store %arg10[%c0_92, %c0_93, %c0_94], %160 {strides = array<i32>} : memref<4x8x1xf32, #tpu.memory_space<vmem>>, vector<4x8x1xf32>,
      %cst_95 = arith.constant 0.000000e+00 : f32
      %162 = vector.broadcast %cst_95 : f32 to vector<4x8x1xf32>
      %c0_96 = arith.constant 0 : index
      %c0_97 = arith.constant 0 : index
      %c0_98 = arith.constant 0 : index
      %163 = vector.load %arg11[%c0_96, %c0_97, %c0_98] : memref<4x8x1xf32, #tpu.memory_space<vmem>>, vector<4x8x1xf32>
      tpu.vector_store %arg11[%c0_96, %c0_97, %c0_98], %162 {strides = array<i32>} : memref<4x8x1xf32, #tpu.memory_space<vmem>>, vector<4x8x1xf32>,
      %cst_99 = arith.constant 0.000000e+00 : f32
      %164 = vector.broadcast %cst_99 : f32 to vector<8x128xf32>
      %c0_100 = arith.constant 0 : index
      %c0_101 = arith.constant 0 : index
      %165 = vector.load %arg12[%c0_100, %c0_101] : memref<8x128xf32, #tpu.memory_space<vmem>>, vector<8x128xf32>
      tpu.vector_store %arg12[%c0_100, %c0_101], %164 {strides = array<i32>} : memref<8x128xf32, #tpu.memory_space<vmem>>, vector<8x128xf32>,
    } else {
    }
    %c0 = arith.constant 0 : index
    %c0_1 = arith.constant 0 : index
    %c0_2 = arith.constant 0 : index
    %3 = vector.load %arg2[%c0, %c0_1, %c0_2] : memref<1x8x128xbf16, #tpu.memory_space<vmem>>, vector<1x8x128xbf16>
    %4 = vector.shape_cast %3 : vector<1x8x128xbf16> to vector<8x128xbf16>
    %5 = arith.extf %4 : vector<8x128xbf16> to vector<8x128xf32>
    %cst = arith.constant 0.176776692 : f32
    %6 = vector.broadcast %cst : f32 to vector<8x128xf32>
    %7 = arith.mulf %5, %6 : vector<8x128xf32>
    %8 = arith.truncf %7 : vector<8x128xf32> to vector<8x128xbf16>
    %c0_3 = arith.constant 0 : index
    %c0_4 = arith.constant 0 : index
    %c0_5 = arith.constant 0 : index
    %9 = vector.load %arg3[%c0_3, %c0_4, %c0_5] : memref<1x8x128xbf16, #tpu.memory_space<vmem>>, vector<1x8x128xbf16>
    %10 = vector.shape_cast %9 : vector<1x8x128xbf16> to vector<8x128xbf16>
    %c0_6 = arith.constant 0 : index
    %c0_7 = arith.constant 0 : index
    %c0_8 = arith.constant 0 : index
    %11 = vector.load %arg4[%c0_6, %c0_7, %c0_8] : memref<1x8x128xbf16, #tpu.memory_space<vmem>>, vector<1x8x128xbf16>
    %12 = vector.shape_cast %11 : vector<1x8x128xbf16> to vector<8x128xbf16>
    %c0_9 = arith.constant 0 : index
    %c0_10 = arith.constant 0 : index
    %c0_11 = arith.constant 0 : index
    %13 = vector.load %arg5[%c0_9, %c0_10, %c0_11] : memref<1x8x8xi8, #tpu.memory_space<vmem>>, vector<1x8x8xi8>
    %14 = vector.shape_cast %13 : vector<1x8x8xi8> to vector<8x8xi8>
    %15 = arith.sitofp %14 : vector<8x8xi8> to vector<8x8xf32>
    %cst_12 = arith.constant 5.000000e-01 : f32
    %16 = vector.broadcast %cst_12 : f32 to vector<8x8xf32>
    %17 = arith.cmpf ogt, %15, %16 : vector<8x8xf32>
    %cst_13 = arith.constant 0.000000e+00 : f32
    %cst_14 = arith.constant -1.000000e+30 : f32
    %18 = vector.broadcast %cst_13 : f32 to vector<8x8xf32>
    %19 = vector.broadcast %cst_14 : f32 to vector<8x8xf32>
    %20 = arith.select %17, %18, %19 : vector<8x8xi1>, vector<8x8xf32>
    %21 = vector.extract_strided_slice %8 {offsets = [0, 0], sizes = [8, 32], strides = [1, 1]} : vector<8x128xbf16> to vector<8x32xbf16>
    %22 = vector.extract_strided_slice %10 {offsets = [0, 0], sizes = [8, 32], strides = [1, 1]} : vector<8x128xbf16> to vector<8x32xbf16>
    %cst_15 = arith.constant dense<0.000000e+00> : vector<8x8xf32>
    %23 = tpu.matmul %21, %22, %cst_15 {dimension_numbers = #tpu.dot_dimension_numbers<[1], [1], [0], [0], [0, 0, 1, 0], [], []>} : vector<8x32xbf16>, vector<8x32xbf16>, vector<8x8xf32> -> vector<8x8xf32>
    %24 = arith.addf %23, %20 : vector<8x8xf32>
    %c0_16 = arith.constant 0 : index
    %c0_17 = arith.constant 0 : index
    %c0_18 = arith.constant 0 : index
    %25 = vector.load %arg10[%c0_16, %c0_17, %c0_18] : memref<4x8x1xf32, #tpu.memory_space<vmem>>, vector<1x8x1xf32>
    %26 = vector.shape_cast %25 : vector<1x8x1xf32> to vector<8x1xf32>
    %cst_19 = arith.constant dense<0xFF800000> : vector<8xf32>
    %27 = vector.multi_reduction <maximumf>, %24, %cst_19 [1] : vector<8x8xf32> to vector<8xf32>
    %28 = vector.shape_cast %27 : vector<8xf32> to vector<8x1xf32>
    %29 = arith.maximumf %26, %28 : vector<8x1xf32>
    %30 = arith.subf %26, %29 : vector<8x1xf32>
    %31 = math.exp %30 : vector<8x1xf32>
    %32 = vector.broadcast %29 : vector<8x1xf32> to vector<8x8xf32>
    %33 = arith.subf %24, %32 : vector<8x8xf32>
    %34 = math.exp %33 : vector<8x8xf32>
    %c0_20 = arith.constant 0 : index
    %c0_21 = arith.constant 0 : index
    %c0_22 = arith.constant 0 : index
    %35 = vector.load %arg11[%c0_20, %c0_21, %c0_22] : memref<4x8x1xf32, #tpu.memory_space<vmem>>, vector<1x8x1xf32>
    %36 = vector.shape_cast %35 : vector<1x8x1xf32> to vector<8x1xf32>
    %37 = arith.mulf %31, %36 : vector<8x1xf32>
    %cst_23 = arith.constant dense<0.000000e+00> : vector<8xf32>
    %38 = vector.multi_reduction <add>, %34, %cst_23 [1] : vector<8x8xf32> to vector<8xf32>
    %39 = vector.shape_cast %38 : vector<8xf32> to vector<8x1xf32>
    %40 = arith.addf %37, %39 : vector<8x1xf32>
    %c0_24 = arith.constant 0 : index
    %c0_25 = arith.constant 0 : index
    %c0_26 = arith.constant 0 : index
    %41 = vector.load %arg11[%c0_24, %c0_25, %c0_26] : memref<4x8x1xf32, #tpu.memory_space<vmem>>, vector<1x8x1xf32>
    %42 = vector.shape_cast %41 : vector<1x8x1xf32> to vector<8x1xf32>
    %43 = vector.shape_cast %40 : vector<8x1xf32> to vector<1x8x1xf32>
    tpu.vector_store %arg11[%c0_24, %c0_25, %c0_26], %43 {strides = array<i32>} : memref<4x8x1xf32, #tpu.memory_space<vmem>>, vector<1x8x1xf32>,
    %c0_27 = arith.constant 0 : index
    %c0_28 = arith.constant 0 : index
    %44 = vector.load %arg12[%c0_27, %c0_28] : memref<8x128xf32, #tpu.memory_space<vmem>>, vector<8x32xf32>
    %45 = vector.broadcast %31 : vector<8x1xf32> to vector<8x32xf32>
    %46 = arith.mulf %45, %44 : vector<8x32xf32>
    %47 = arith.truncf %34 : vector<8x8xf32> to vector<8x8xbf16>
    %48 = vector.extract_strided_slice %12 {offsets = [0, 0], sizes = [8, 32], strides = [1, 1]} : vector<8x128xbf16> to vector<8x32xbf16>
    %cst_29 = arith.constant dense<0.000000e+00> : vector<8x32xf32>
    %49 = tpu.matmul %47, %48, %cst_29 {dimension_numbers = #tpu.dot_dimension_numbers<[1], [0], [0], [1], [0, 0, 1, 1], [], []>} : vector<8x8xbf16>, vector<8x32xbf16>, vector<8x32xf32> -> vector<8x32xf32>
    %50 = arith.addf %46, %49 : vector<8x32xf32>
    %c0_30 = arith.constant 0 : index
    %c0_31 = arith.constant 0 : index
    %51 = vector.load %arg12[%c0_30, %c0_31] : memref<8x128xf32, #tpu.memory_space<vmem>>, vector<8x32xf32>
    tpu.vector_store %arg12[%c0_30, %c0_31], %50 {strides = array<i32>} : memref<8x128xf32, #tpu.memory_space<vmem>>, vector<8x32xf32>,
    %c0_32 = arith.constant 0 : index
    %c0_33 = arith.constant 0 : index
    %c0_34 = arith.constant 0 : index
    %52 = vector.load %arg10[%c0_32, %c0_33, %c0_34] : memref<4x8x1xf32, #tpu.memory_space<vmem>>, vector<1x8x1xf32>
    %53 = vector.shape_cast %52 : vector<1x8x1xf32> to vector<8x1xf32>
    %54 = vector.shape_cast %29 : vector<8x1xf32> to vector<1x8x1xf32>
    tpu.vector_store %arg10[%c0_32, %c0_33, %c0_34], %54 {strides = array<i32>} : memref<4x8x1xf32, #tpu.memory_space<vmem>>, vector<1x8x1xf32>,
    %55 = vector.extract_strided_slice %8 {offsets = [0, 32], sizes = [8, 32], strides = [1, 1]} : vector<8x128xbf16> to vector<8x32xbf16>
    %56 = vector.extract_strided_slice %10 {offsets = [0, 32], sizes = [8, 32], strides = [1, 1]} : vector<8x128xbf16> to vector<8x32xbf16>
    %cst_35 = arith.constant dense<0.000000e+00> : vector<8x8xf32>
    %57 = tpu.matmul %55, %56, %cst_35 {dimension_numbers = #tpu.dot_dimension_numbers<[1], [1], [0], [0], [0, 0, 1, 0], [], []>} : vector<8x32xbf16>, vector<8x32xbf16>, vector<8x8xf32> -> vector<8x8xf32>
    %58 = arith.addf %57, %20 : vector<8x8xf32>
    %c1 = arith.constant 1 : index
    %c0_36 = arith.constant 0 : index
    %c0_37 = arith.constant 0 : index
    %59 = vector.load %arg10[%c1, %c0_36, %c0_37] : memref<4x8x1xf32, #tpu.memory_space<vmem>>, vector<1x8x1xf32>
    %60 = vector.shape_cast %59 : vector<1x8x1xf32> to vector<8x1xf32>
    %cst_38 = arith.constant dense<0xFF800000> : vector<8xf32>
    %61 = vector.multi_reduction <maximumf>, %58, %cst_38 [1] : vector<8x8xf32> to vector<8xf32>
    %62 = vector.shape_cast %61 : vector<8xf32> to vector<8x1xf32>
    %63 = arith.maximumf %60, %62 : vector<8x1xf32>
    %64 = arith.subf %60, %63 : vector<8x1xf32>
    %65 = math.exp %64 : vector<8x1xf32>
    %66 = vector.broadcast %63 : vector<8x1xf32> to vector<8x8xf32>
    %67 = arith.subf %58, %66 : vector<8x8xf32>
    %68 = math.exp %67 : vector<8x8xf32>
    %c1_39 = arith.constant 1 : index
    %c0_40 = arith.constant 0 : index
    %c0_41 = arith.constant 0 : index
    %69 = vector.load %arg11[%c1_39, %c0_40, %c0_41] : memref<4x8x1xf32, #tpu.memory_space<vmem>>, vector<1x8x1xf32>
    %70 = vector.shape_cast %69 : vector<1x8x1xf32> to vector<8x1xf32>
    %71 = arith.mulf %65, %70 : vector<8x1xf32>
    %cst_42 = arith.constant dense<0.000000e+00> : vector<8xf32>
    %72 = vector.multi_reduction <add>, %68, %cst_42 [1] : vector<8x8xf32> to vector<8xf32>
    %73 = vector.shape_cast %72 : vector<8xf32> to vector<8x1xf32>
    %74 = arith.addf %71, %73 : vector<8x1xf32>
    %c1_43 = arith.constant 1 : index
    %c0_44 = arith.constant 0 : index
    %c0_45 = arith.constant 0 : index
    %75 = vector.load %arg11[%c1_43, %c0_44, %c0_45] : memref<4x8x1xf32, #tpu.memory_space<vmem>>, vector<1x8x1xf32>
    %76 = vector.shape_cast %75 : vector<1x8x1xf32> to vector<8x1xf32>
    %77 = vector.shape_cast %74 : vector<8x1xf32> to vector<1x8x1xf32>
    tpu.vector_store %arg11[%c1_43, %c0_44, %c0_45], %77 {strides = array<i32>} : memref<4x8x1xf32, #tpu.memory_space<vmem>>, vector<1x8x1xf32>,
    %c0_46 = arith.constant 0 : index
    %c32 = arith.constant 32 : index
    %78 = vector.load %arg12[%c0_46, %c32] : memref<8x128xf32, #tpu.memory_space<vmem>>, vector<8x32xf32>
    %79 = vector.broadcast %65 : vector<8x1xf32> to vector<8x32xf32>
    %80 = arith.mulf %79, %78 : vector<8x32xf32>
    %81 = arith.truncf %68 : vector<8x8xf32> to vector<8x8xbf16>
    %82 = vector.extract_strided_slice %12 {offsets = [0, 32], sizes = [8, 32], strides = [1, 1]} : vector<8x128xbf16> to vector<8x32xbf16>
    %cst_47 = arith.constant dense<0.000000e+00> : vector<8x32xf32>
    %83 = tpu.matmul %81, %82, %cst_47 {dimension_numbers = #tpu.dot_dimension_numbers<[1], [0], [0], [1], [0, 0, 1, 1], [], []>} : vector<8x8xbf16>, vector<8x32xbf16>, vector<8x32xf32> -> vector<8x32xf32>
    %84 = arith.addf %80, %83 : vector<8x32xf32>
    %c0_48 = arith.constant 0 : index
    %c32_49 = arith.constant 32 : index
    %85 = vector.load %arg12[%c0_48, %c32_49] : memref<8x128xf32, #tpu.memory_space<vmem>>, vector<8x32xf32>
    tpu.vector_store %arg12[%c0_48, %c32_49], %84 {strides = array<i32>} : memref<8x128xf32, #tpu.memory_space<vmem>>, vector<8x32xf32>,
    %c1_50 = arith.constant 1 : index
    %c0_51 = arith.constant 0 : index
    %c0_52 = arith.constant 0 : index
    %86 = vector.load %arg10[%c1_50, %c0_51, %c0_52] : memref<4x8x1xf32, #tpu.memory_space<vmem>>, vector<1x8x1xf32>
    %87 = vector.shape_cast %86 : vector<1x8x1xf32> to vector<8x1xf32>
    %88 = vector.shape_cast %63 : vector<8x1xf32> to vector<1x8x1xf32>
    tpu.vector_store %arg10[%c1_50, %c0_51, %c0_52], %88 {strides = array<i32>} : memref<4x8x1xf32, #tpu.memory_space<vmem>>, vector<1x8x1xf32>,
    %89 = vector.extract_strided_slice %8 {offsets = [0, 64], sizes = [8, 32], strides = [1, 1]} : vector<8x128xbf16> to vector<8x32xbf16>
    %90 = vector.extract_strided_slice %10 {offsets = [0, 64], sizes = [8, 32], strides = [1, 1]} : vector<8x128xbf16> to vector<8x32xbf16>
    %cst_53 = arith.constant dense<0.000000e+00> : vector<8x8xf32>
    %91 = tpu.matmul %89, %90, %cst_53 {dimension_numbers = #tpu.dot_dimension_numbers<[1], [1], [0], [0], [0, 0, 1, 0], [], []>} : vector<8x32xbf16>, vector<8x32xbf16>, vector<8x8xf32> -> vector<8x8xf32>
    %92 = arith.addf %91, %20 : vector<8x8xf32>
    %c2 = arith.constant 2 : index
    %c0_54 = arith.constant 0 : index
    %c0_55 = arith.constant 0 : index
    %93 = vector.load %arg10[%c2, %c0_54, %c0_55] : memref<4x8x1xf32, #tpu.memory_space<vmem>>, vector<1x8x1xf32>
    %94 = vector.shape_cast %93 : vector<1x8x1xf32> to vector<8x1xf32>
    %cst_56 = arith.constant dense<0xFF800000> : vector<8xf32>
    %95 = vector.multi_reduction <maximumf>, %92, %cst_56 [1] : vector<8x8xf32> to vector<8xf32>
    %96 = vector.shape_cast %95 : vector<8xf32> to vector<8x1xf32>
    %97 = arith.maximumf %94, %96 : vector<8x1xf32>
    %98 = arith.subf %94, %97 : vector<8x1xf32>
    %99 = math.exp %98 : vector<8x1xf32>
    %100 = vector.broadcast %97 : vector<8x1xf32> to vector<8x8xf32>
    %101 = arith.subf %92, %100 : vector<8x8xf32>
    %102 = math.exp %101 : vector<8x8xf32>
    %c2_57 = arith.constant 2 : index
    %c0_58 = arith.constant 0 : index
    %c0_59 = arith.constant 0 : index
    %103 = vector.load %arg11[%c2_57, %c0_58, %c0_59] : memref<4x8x1xf32, #tpu.memory_space<vmem>>, vector<1x8x1xf32>
    %104 = vector.shape_cast %103 : vector<1x8x1xf32> to vector<8x1xf32>
    %105 = arith.mulf %99, %104 : vector<8x1xf32>
    %cst_60 = arith.constant dense<0.000000e+00> : vector<8xf32>
    %106 = vector.multi_reduction <add>, %102, %cst_60 [1] : vector<8x8xf32> to vector<8xf32>
    %107 = vector.shape_cast %106 : vector<8xf32> to vector<8x1xf32>
    %108 = arith.addf %105, %107 : vector<8x1xf32>
    %c2_61 = arith.constant 2 : index
    %c0_62 = arith.constant 0 : index
    %c0_63 = arith.constant 0 : index
    %109 = vector.load %arg11[%c2_61, %c0_62, %c0_63] : memref<4x8x1xf32, #tpu.memory_space<vmem>>, vector<1x8x1xf32>
    %110 = vector.shape_cast %109 : vector<1x8x1xf32> to vector<8x1xf32>
    %111 = vector.shape_cast %108 : vector<8x1xf32> to vector<1x8x1xf32>
    tpu.vector_store %arg11[%c2_61, %c0_62, %c0_63], %111 {strides = array<i32>} : memref<4x8x1xf32, #tpu.memory_space<vmem>>, vector<1x8x1xf32>,
    %c0_64 = arith.constant 0 : index
    %c64 = arith.constant 64 : index
    %112 = vector.load %arg12[%c0_64, %c64] : memref<8x128xf32, #tpu.memory_space<vmem>>, vector<8x32xf32>
    %113 = vector.broadcast %99 : vector<8x1xf32> to vector<8x32xf32>
    %114 = arith.mulf %113, %112 : vector<8x32xf32>
    %115 = arith.truncf %102 : vector<8x8xf32> to vector<8x8xbf16>
    %116 = vector.extract_strided_slice %12 {offsets = [0, 64], sizes = [8, 32], strides = [1, 1]} : vector<8x128xbf16> to vector<8x32xbf16>
    %cst_65 = arith.constant dense<0.000000e+00> : vector<8x32xf32>
    %117 = tpu.matmul %115, %116, %cst_65 {dimension_numbers = #tpu.dot_dimension_numbers<[1], [0], [0], [1], [0, 0, 1, 1], [], []>} : vector<8x8xbf16>, vector<8x32xbf16>, vector<8x32xf32> -> vector<8x32xf32>
    %118 = arith.addf %114, %117 : vector<8x32xf32>
    %c0_66 = arith.constant 0 : index
    %c64_67 = arith.constant 64 : index
    %119 = vector.load %arg12[%c0_66, %c64_67] : memref<8x128xf32, #tpu.memory_space<vmem>>, vector<8x32xf32>
    tpu.vector_store %arg12[%c0_66, %c64_67], %118 {strides = array<i32>} : memref<8x128xf32, #tpu.memory_space<vmem>>, vector<8x32xf32>,
    %c2_68 = arith.constant 2 : index
    %c0_69 = arith.constant 0 : index
    %c0_70 = arith.constant 0 : index
    %120 = vector.load %arg10[%c2_68, %c0_69, %c0_70] : memref<4x8x1xf32, #tpu.memory_space<vmem>>, vector<1x8x1xf32>
    %121 = vector.shape_cast %120 : vector<1x8x1xf32> to vector<8x1xf32>
    %122 = vector.shape_cast %97 : vector<8x1xf32> to vector<1x8x1xf32>
    tpu.vector_store %arg10[%c2_68, %c0_69, %c0_70], %122 {strides = array<i32>} : memref<4x8x1xf32, #tpu.memory_space<vmem>>, vector<1x8x1xf32>,
    %123 = vector.extract_strided_slice %8 {offsets = [0, 96], sizes = [8, 32], strides = [1, 1]} : vector<8x128xbf16> to vector<8x32xbf16>
    %124 = vector.extract_strided_slice %10 {offsets = [0, 96], sizes = [8, 32], strides = [1, 1]} : vector<8x128xbf16> to vector<8x32xbf16>
    %cst_71 = arith.constant dense<0.000000e+00> : vector<8x8xf32>
    %125 = tpu.matmul %123, %124, %cst_71 {dimension_numbers = #tpu.dot_dimension_numbers<[1], [1], [0], [0], [0, 0, 1, 0], [], []>} : vector<8x32xbf16>, vector<8x32xbf16>, vector<8x8xf32> -> vector<8x8xf32>
    %126 = arith.addf %125, %20 : vector<8x8xf32>
    %c3 = arith.constant 3 : index
    %c0_72 = arith.constant 0 : index
    %c0_73 = arith.constant 0 : index
    %127 = vector.load %arg10[%c3, %c0_72, %c0_73] : memref<4x8x1xf32, #tpu.memory_space<vmem>>, vector<1x8x1xf32>
    %128 = vector.shape_cast %127 : vector<1x8x1xf32> to vector<8x1xf32>
    %cst_74 = arith.constant dense<0xFF800000> : vector<8xf32>
    %129 = vector.multi_reduction <maximumf>, %126, %cst_74 [1] : vector<8x8xf32> to vector<8xf32>
    %130 = vector.shape_cast %129 : vector<8xf32> to vector<8x1xf32>
    %131 = arith.maximumf %128, %130 : vector<8x1xf32>
    %132 = arith.subf %128, %131 : vector<8x1xf32>
    %133 = math.exp %132 : vector<8x1xf32>
    %134 = vector.broadcast %131 : vector<8x1xf32> to vector<8x8xf32>
    %135 = arith.subf %126, %134 : vector<8x8xf32>
    %136 = math.exp %135 : vector<8x8xf32>
    %c3_75 = arith.constant 3 : index
    %c0_76 = arith.constant 0 : index
    %c0_77 = arith.constant 0 : index
    %137 = vector.load %arg11[%c3_75, %c0_76, %c0_77] : memref<4x8x1xf32, #tpu.memory_space<vmem>>, vector<1x8x1xf32>
    %138 = vector.shape_cast %137 : vector<1x8x1xf32> to vector<8x1xf32>
    %139 = arith.mulf %133, %138 : vector<8x1xf32>
    %cst_78 = arith.constant dense<0.000000e+00> : vector<8xf32>
    %140 = vector.multi_reduction <add>, %136, %cst_78 [1] : vector<8x8xf32> to vector<8xf32>
    %141 = vector.shape_cast %140 : vector<8xf32> to vector<8x1xf32>
    %142 = arith.addf %139, %141 : vector<8x1xf32>
    %c3_79 = arith.constant 3 : index
    %c0_80 = arith.constant 0 : index
    %c0_81 = arith.constant 0 : index
    %143 = vector.load %arg11[%c3_79, %c0_80, %c0_81] : memref<4x8x1xf32, #tpu.memory_space<vmem>>, vector<1x8x1xf32>
    %144 = vector.shape_cast %143 : vector<1x8x1xf32> to vector<8x1xf32>
    %145 = vector.shape_cast %142 : vector<8x1xf32> to vector<1x8x1xf32>
    tpu.vector_store %arg11[%c3_79, %c0_80, %c0_81], %145 {strides = array<i32>} : memref<4x8x1xf32, #tpu.memory_space<vmem>>, vector<1x8x1xf32>,
    %c0_82 = arith.constant 0 : index
    %c96 = arith.constant 96 : index
    %146 = vector.load %arg12[%c0_82, %c96] : memref<8x128xf32, #tpu.memory_space<vmem>>, vector<8x32xf32>
    %147 = vector.broadcast %133 : vector<8x1xf32> to vector<8x32xf32>
    %148 = arith.mulf %147, %146 : vector<8x32xf32>
    %149 = arith.truncf %136 : vector<8x8xf32> to vector<8x8xbf16>
    %150 = vector.extract_strided_slice %12 {offsets = [0, 96], sizes = [8, 32], strides = [1, 1]} : vector<8x128xbf16> to vector<8x32xbf16>
    %cst_83 = arith.constant dense<0.000000e+00> : vector<8x32xf32>
    %151 = tpu.matmul %149, %150, %cst_83 {dimension_numbers = #tpu.dot_dimension_numbers<[1], [0], [0], [1], [0, 0, 1, 1], [], []>} : vector<8x8xbf16>, vector<8x32xbf16>, vector<8x32xf32> -> vector<8x32xf32>
    %152 = arith.addf %148, %151 : vector<8x32xf32>
    %c0_84 = arith.constant 0 : index
    %c96_85 = arith.constant 96 : index
    %153 = vector.load %arg12[%c0_84, %c96_85] : memref<8x128xf32, #tpu.memory_space<vmem>>, vector<8x32xf32>
    tpu.vector_store %arg12[%c0_84, %c96_85], %152 {strides = array<i32>} : memref<8x128xf32, #tpu.memory_space<vmem>>, vector<8x32xf32>,
    %c3_86 = arith.constant 3 : index
    %c0_87 = arith.constant 0 : index
    %c0_88 = arith.constant 0 : index
    %154 = vector.load %arg10[%c3_86, %c0_87, %c0_88] : memref<4x8x1xf32, #tpu.memory_space<vmem>>, vector<1x8x1xf32>
    %155 = vector.shape_cast %154 : vector<1x8x1xf32> to vector<8x1xf32>
    %156 = vector.shape_cast %131 : vector<8x1xf32> to vector<1x8x1xf32>
    tpu.vector_store %arg10[%c3_86, %c0_87, %c0_88], %156 {strides = array<i32>} : memref<4x8x1xf32, #tpu.memory_space<vmem>>, vector<1x8x1xf32>,
    %c0_i32_89 = arith.constant 0 : i32
    %157 = arith.cmpi eq, %arg1, %c0_i32_89 : i32
    %158 = arith.extui %157 : i1 to i32
    %c0_i32_90 = arith.constant 0 : i32
    %159 = arith.cmpi ne, %158, %c0_i32_90 : i32
    scf.if %159 {
      %c0_91 = arith.constant 0 : index
      %c0_92 = arith.constant 0 : index
      %160 = vector.load %arg12[%c0_91, %c0_92] : memref<8x128xf32, #tpu.memory_space<vmem>>, vector<8x32xf32>
      %c0_93 = arith.constant 0 : index
      %c0_94 = arith.constant 0 : index
      %c0_95 = arith.constant 0 : index
      %161 = vector.load %arg11[%c0_93, %c0_94, %c0_95] : memref<4x8x1xf32, #tpu.memory_space<vmem>>, vector<1x8x1xf32>
      %162 = vector.shape_cast %161 : vector<1x8x1xf32> to vector<8x1xf32>
      %163 = tpu.reciprocal %162 {approx = true} : vector<8x1xf32> -> vector<8x1xf32>
      %164 = vector.broadcast %163 : vector<8x1xf32> to vector<8x32xf32>
      %165 = arith.mulf %160, %164 : vector<8x32xf32>
      %c0_96 = arith.constant 0 : index
      %c0_97 = arith.constant 0 : index
      %166 = vector.load %arg12[%c0_96, %c0_97] : memref<8x128xf32, #tpu.memory_space<vmem>>, vector<8x32xf32>
      tpu.vector_store %arg12[%c0_96, %c0_97], %165 {strides = array<i32>} : memref<8x128xf32, #tpu.memory_space<vmem>>, vector<8x32xf32>,
      %c0_98 = arith.constant 0 : index
      %c32_99 = arith.constant 32 : index
      %167 = vector.load %arg12[%c0_98, %c32_99] : memref<8x128xf32, #tpu.memory_space<vmem>>, vector<8x32xf32>
      %c1_100 = arith.constant 1 : index
      %c0_101 = arith.constant 0 : index
      %c0_102 = arith.constant 0 : index
      %168 = vector.load %arg11[%c1_100, %c0_101, %c0_102] : memref<4x8x1xf32, #tpu.memory_space<vmem>>, vector<1x8x1xf32>
      %169 = vector.shape_cast %168 : vector<1x8x1xf32> to vector<8x1xf32>
      %170 = tpu.reciprocal %169 {approx = true} : vector<8x1xf32> -> vector<8x1xf32>
      %171 = vector.broadcast %170 : vector<8x1xf32> to vector<8x32xf32>
      %172 = arith.mulf %167, %171 : vector<8x32xf32>
      %c0_103 = arith.constant 0 : index
      %c32_104 = arith.constant 32 : index
      %173 = vector.load %arg12[%c0_103, %c32_104] : memref<8x128xf32, #tpu.memory_space<vmem>>, vector<8x32xf32>
      tpu.vector_store %arg12[%c0_103, %c32_104], %172 {strides = array<i32>} : memref<8x128xf32, #tpu.memory_space<vmem>>, vector<8x32xf32>,
      %c0_105 = arith.constant 0 : index
      %c64_106 = arith.constant 64 : index
      %174 = vector.load %arg12[%c0_105, %c64_106] : memref<8x128xf32, #tpu.memory_space<vmem>>, vector<8x32xf32>
      %c2_107 = arith.constant 2 : index
      %c0_108 = arith.constant 0 : index
      %c0_109 = arith.constant 0 : index
      %175 = vector.load %arg11[%c2_107, %c0_108, %c0_109] : memref<4x8x1xf32, #tpu.memory_space<vmem>>, vector<1x8x1xf32>
      %176 = vector.shape_cast %175 : vector<1x8x1xf32> to vector<8x1xf32>
      %177 = tpu.reciprocal %176 {approx = true} : vector<8x1xf32> -> vector<8x1xf32>
      %178 = vector.broadcast %177 : vector<8x1xf32> to vector<8x32xf32>
      %179 = arith.mulf %174, %178 : vector<8x32xf32>
      %c0_110 = arith.constant 0 : index
      %c64_111 = arith.constant 64 : index
      %180 = vector.load %arg12[%c0_110, %c64_111] : memref<8x128xf32, #tpu.memory_space<vmem>>, vector<8x32xf32>
      tpu.vector_store %arg12[%c0_110, %c64_111], %179 {strides = array<i32>} : memref<8x128xf32, #tpu.memory_space<vmem>>, vector<8x32xf32>,
      %c0_112 = arith.constant 0 : index
      %c96_113 = arith.constant 96 : index
      %181 = vector.load %arg12[%c0_112, %c96_113] : memref<8x128xf32, #tpu.memory_space<vmem>>, vector<8x32xf32>
      %c3_114 = arith.constant 3 : index
      %c0_115 = arith.constant 0 : index
      %c0_116 = arith.constant 0 : index
      %182 = vector.load %arg11[%c3_114, %c0_115, %c0_116] : memref<4x8x1xf32, #tpu.memory_space<vmem>>, vector<1x8x1xf32>
      %183 = vector.shape_cast %182 : vector<1x8x1xf32> to vector<8x1xf32>
      %184 = tpu.reciprocal %183 {approx = true} : vector<8x1xf32> -> vector<8x1xf32>
      %185 = vector.broadcast %184 : vector<8x1xf32> to vector<8x32xf32>
      %186 = arith.mulf %181, %185 : vector<8x32xf32>
      %c0_117 = arith.constant 0 : index
      %c96_118 = arith.constant 96 : index
      %187 = vector.load %arg12[%c0_117, %c96_118] : memref<8x128xf32, #tpu.memory_space<vmem>>, vector<8x32xf32>
      tpu.vector_store %arg12[%c0_117, %c96_118], %186 {strides = array<i32>} : memref<8x128xf32, #tpu.memory_space<vmem>>, vector<8x32xf32>,
      %c0_119 = arith.constant 0 : index
      %c0_120 = arith.constant 0 : index
      %188 = vector.load %arg12[%c0_119, %c0_120] : memref<8x128xf32, #tpu.memory_space<vmem>>, vector<8x128xf32>
      %189 = arith.truncf %188 : vector<8x128xf32> to vector<8x128xbf16>
      %c0_121 = arith.constant 0 : index
      %c0_122 = arith.constant 0 : index
      %190 = vector.load %arg6[%c0_121, %c0_122] : memref<128x128xbf16, #tpu.memory_space<vmem>>, vector<128x128xbf16>
      %cst_123 = arith.constant dense<0.000000e+00> : vector<8x128xf32>
      %191 = tpu.matmul %189, %190, %cst_123 {dimension_numbers = #tpu.dot_dimension_numbers<[1], [0], [0], [1], [0, 0, 1, 1], [], []>} : vector<8x128xbf16>, vector<128x128xbf16>, vector<8x128xf32> -> vector<8x128xf32>
      %c0_124 = arith.constant 0 : index
      %c0_125 = arith.constant 0 : index
      %192 = vector.load %arg7[%c0_124, %c0_125] : memref<1x128xf32, #tpu.memory_space<vmem>>, vector<1x128xf32>
      %193 = vector.broadcast %192 : vector<1x128xf32> to vector<8x128xf32>
      %194 = arith.addf %191, %193 : vector<8x128xf32>
      %c0_126 = arith.constant 0 : index
      %c0_127 = arith.constant 0 : index
      %c0_128 = arith.constant 0 : index
      %195 = vector.load %arg8[%c0_126, %c0_127, %c0_128] : memref<1x8x128xbf16, #tpu.memory_space<vmem>>, vector<1x8x128xbf16>
      %196 = vector.shape_cast %195 : vector<1x8x128xbf16> to vector<8x128xbf16>
      %197 = arith.extf %196 : vector<8x128xbf16> to vector<8x128xf32>
      %198 = arith.addf %197, %194 : vector<8x128xf32>
      %199 = arith.truncf %198 : vector<8x128xf32> to vector<8x128xbf16>
      %c0_129 = arith.constant 0 : index
      %c0_130 = arith.constant 0 : index
      %c0_131 = arith.constant 0 : index
      %200 = vector.load %arg9[%c0_129, %c0_130, %c0_131] : memref<1x8x128xbf16, #tpu.memory_space<vmem>>, vector<1x8x128xbf16>
      %201 = vector.shape_cast %200 : vector<1x8x128xbf16> to vector<8x128xbf16>
      %202 = vector.shape_cast %199 : vector<8x128xbf16> to vector<1x8x128xbf16>
      tpu.vector_store %arg9[%c0_129, %c0_130, %c0_131], %202 {strides = array<i32>} : memref<1x8x128xbf16, #tpu.memory_space<vmem>>, vector<1x8x128xbf16>,
    } else {
    }
    return
  }
  func.func @transform_0(%arg0: i32, %arg1: i32) -> (i32, i32, i32) {
    %c0_i32 = arith.constant 0 : i32
    %c0_i32_0 = arith.constant 0 : i32
    %c0_i32_1 = arith.constant 0 : i32
    return %arg0, %c0_i32, %c0_i32_0 : i32, i32, i32
  }
  func.func @transform_1(%arg0: i32, %arg1: i32) -> (i32, i32, i32) {
    %c1_i32 = arith.constant 1 : i32
    %c0_i32 = arith.constant 0 : i32
    return %arg0, %arg1, %c1_i32 : i32, i32, i32
  }
  func.func @transform_2(%arg0: i32, %arg1: i32) -> (i32, i32, i32) {
    %c2_i32 = arith.constant 2 : i32
    %c0_i32 = arith.constant 0 : i32
    return %arg0, %arg1, %c2_i32 : i32, i32, i32
  }
  func.func @transform_3(%arg0: i32, %arg1: i32) -> (i32, i32, i32) {
    %c0_i32 = arith.constant 0 : i32
    %c0_i32_0 = arith.constant 0 : i32
    return %arg0, %c0_i32, %arg1 : i32, i32, i32
  }
  func.func @transform_4(%arg0: i32, %arg1: i32) -> (i32, i32) {
    %c0_i32 = arith.constant 0 : i32
    %c0_i32_0 = arith.constant 0 : i32
    %c0_i32_1 = arith.constant 0 : i32
    return %c0_i32, %c0_i32_0 : i32, i32
  }
  func.func @transform_5(%arg0: i32, %arg1: i32) -> (i32, i32) {
    %c0_i32 = arith.constant 0 : i32
    %c0_i32_0 = arith.constant 0 : i32
    %c0_i32_1 = arith.constant 0 : i32
    return %c0_i32, %c0_i32_0 : i32, i32
  }
  func.func @transform_6(%arg0: i32, %arg1: i32) -> (i32, i32, i32) {
    %c0_i32 = arith.constant 0 : i32
    %c0_i32_0 = arith.constant 0 : i32
    %c0_i32_1 = arith.constant 0 : i32
    return %arg0, %c0_i32, %c0_i32_0 : i32, i32, i32
  }
  func.func @transform_7(%arg0: i32, %arg1: i32) -> (i32, i32, i32) {
    %c0_i32 = arith.constant 0 : i32
    %c0_i32_0 = arith.constant 0 : i32
    %c0_i32_1 = arith.constant 0 : i32
    return %arg0, %c0_i32, %c0_i32_0 : i32, i32, i32
  }
}

module attributes {stable_mosaic.version = 11 : i64} {
  func.func @_linear_kernel(%arg0: i32, %arg1: i32, %arg2: i32, %arg3: memref<16x128xbf16, #tpu.memory_space<vmem>>, %arg4: memref<128x256xbf16, #tpu.memory_space<vmem>>, %arg5: memref<1x256xf32, #tpu.memory_space<vmem>>, %arg6: memref<16x256xbf16, #tpu.memory_space<vmem>>, %arg7: memref<16x256xf32, #tpu.memory_space<vmem>>) attributes {dimension_semantics = [#tpu.dimension_semantics<parallel>, #tpu.dimension_semantics<parallel>, #tpu.dimension_semantics<arbitrary>], iteration_bounds = array<i64: 1, 1, 1>, scalar_prefetch = 0 : i64, scratch_operands = 1 : i64, tpu.core_type = #tpu.core_type<tc>, window_params = [{transform_indices = @transform_0, window_bounds = array<i64: 16, 128>}, {transform_indices = @transform_1, window_bounds = array<i64: 128, 256>}, {transform_indices = @transform_2, window_bounds = array<i64: 1, 256>}, {transform_indices = @transform_3, window_bounds = array<i64: 16, 256>}]} {
    %c0_i32 = arith.constant 0 : i32
    %0 = arith.cmpi eq, %arg2, %c0_i32 : i32
    %1 = arith.extui %0 : i1 to i32
    %c0_i32_0 = arith.constant 0 : i32
    %2 = arith.cmpi ne, %1, %c0_i32_0 : i32
    scf.if %2 {
      %cst_10 = arith.constant 0.000000e+00 : f32
      %12 = vector.broadcast %cst_10 : f32 to vector<16x256xf32>
      %c0_11 = arith.constant 0 : index
      %c0_12 = arith.constant 0 : index
      %13 = vector.load %arg7[%c0_11, %c0_12] : memref<16x256xf32, #tpu.memory_space<vmem>>, vector<16x256xf32>
      tpu.vector_store %arg7[%c0_11, %c0_12], %12 {strides = array<i32>} : memref<16x256xf32, #tpu.memory_space<vmem>>, vector<16x256xf32>,
    } else {
    }
    %c0 = arith.constant 0 : index
    %c0_1 = arith.constant 0 : index
    %3 = vector.load %arg7[%c0, %c0_1] : memref<16x256xf32, #tpu.memory_space<vmem>>, vector<16x256xf32>
    %c0_2 = arith.constant 0 : index
    %c0_3 = arith.constant 0 : index
    %4 = vector.load %arg3[%c0_2, %c0_3] : memref<16x128xbf16, #tpu.memory_space<vmem>>, vector<16x128xbf16>
    %c0_4 = arith.constant 0 : index
    %c0_5 = arith.constant 0 : index
    %5 = vector.load %arg4[%c0_4, %c0_5] : memref<128x256xbf16, #tpu.memory_space<vmem>>, vector<128x256xbf16>
    %cst = arith.constant dense<0.000000e+00> : vector<16x256xf32>
    %6 = tpu.matmul %4, %5, %cst {dimension_numbers = #tpu.dot_dimension_numbers<[1], [0], [0], [1], [0, 0, 1, 1], [], []>} : vector<16x128xbf16>, vector<128x256xbf16>, vector<16x256xf32> -> vector<16x256xf32>
    %7 = arith.addf %3, %6 : vector<16x256xf32>
    %c0_6 = arith.constant 0 : index
    %c0_7 = arith.constant 0 : index
    %8 = vector.load %arg7[%c0_6, %c0_7] : memref<16x256xf32, #tpu.memory_space<vmem>>, vector<16x256xf32>
    tpu.vector_store %arg7[%c0_6, %c0_7], %7 {strides = array<i32>} : memref<16x256xf32, #tpu.memory_space<vmem>>, vector<16x256xf32>,
    %c0_i32_8 = arith.constant 0 : i32
    %9 = arith.cmpi eq, %arg2, %c0_i32_8 : i32
    %10 = arith.extui %9 : i1 to i32
    %c0_i32_9 = arith.constant 0 : i32
    %11 = arith.cmpi ne, %10, %c0_i32_9 : i32
    scf.if %11 {
      %c0_10 = arith.constant 0 : index
      %c0_11 = arith.constant 0 : index
      %12 = vector.load %arg7[%c0_10, %c0_11] : memref<16x256xf32, #tpu.memory_space<vmem>>, vector<16x256xf32>
      %c0_12 = arith.constant 0 : index
      %c0_13 = arith.constant 0 : index
      %13 = vector.load %arg5[%c0_12, %c0_13] : memref<1x256xf32, #tpu.memory_space<vmem>>, vector<1x256xf32>
      %14 = vector.broadcast %13 : vector<1x256xf32> to vector<16x256xf32>
      %15 = arith.addf %12, %14 : vector<16x256xf32>
      %16 = arith.truncf %15 : vector<16x256xf32> to vector<16x256xbf16>
      %c0_14 = arith.constant 0 : index
      %c0_15 = arith.constant 0 : index
      %17 = vector.load %arg6[%c0_14, %c0_15] : memref<16x256xbf16, #tpu.memory_space<vmem>>, vector<16x256xbf16>
      tpu.vector_store %arg6[%c0_14, %c0_15], %16 {strides = array<i32>} : memref<16x256xbf16, #tpu.memory_space<vmem>>, vector<16x256xbf16>,
    } else {
    }
    return
  }
  func.func @transform_0(%arg0: i32, %arg1: i32, %arg2: i32) -> (i32, i32) {
    %c0_i32 = arith.constant 0 : i32
    return %arg1, %arg2 : i32, i32
  }
  func.func @transform_1(%arg0: i32, %arg1: i32, %arg2: i32) -> (i32, i32) {
    %c0_i32 = arith.constant 0 : i32
    return %arg2, %arg0 : i32, i32
  }
  func.func @transform_2(%arg0: i32, %arg1: i32, %arg2: i32) -> (i32, i32) {
    %c0_i32 = arith.constant 0 : i32
    %c0_i32_0 = arith.constant 0 : i32
    return %c0_i32, %arg0 : i32, i32
  }
  func.func @transform_3(%arg0: i32, %arg1: i32, %arg2: i32) -> (i32, i32) {
    %c0_i32 = arith.constant 0 : i32
    return %arg1, %arg0 : i32, i32
  }
}

module attributes {stable_mosaic.version = 11 : i64} {
  func.func @_mha_kernel(%arg0: i32, %arg1: i32, %arg2: memref<1x8x128xbf16, #tpu.memory_space<vmem>>, %arg3: memref<1x8x128xbf16, #tpu.memory_space<vmem>>, %arg4: memref<1x8x128xbf16, #tpu.memory_space<vmem>>, %arg5: memref<1x1x8xi8, #tpu.memory_space<vmem>>, %arg6: memref<128x128xbf16, #tpu.memory_space<vmem>>, %arg7: memref<1x128xf32, #tpu.memory_space<vmem>>, %arg8: memref<1x8x128xbf16, #tpu.memory_space<vmem>>, %arg9: memref<1x8x128xbf16, #tpu.memory_space<vmem>>, %arg10: memref<4x8x1xf32, #tpu.memory_space<vmem>>, %arg11: memref<4x8x1xf32, #tpu.memory_space<vmem>>, %arg12: memref<8x128xf32, #tpu.memory_space<vmem>>) attributes {dimension_semantics = [#tpu.dimension_semantics<parallel>, #tpu.dimension_semantics<arbitrary>], iteration_bounds = array<i64: 2, 1>, scalar_prefetch = 0 : i64, scratch_operands = 3 : i64, tpu.core_type = #tpu.core_type<tc>, window_params = [{transform_indices = @transform_0, window_bounds = array<i64: 1, 8, 128>}, {transform_indices = @transform_1, window_bounds = array<i64: 1, 8, 128>}, {transform_indices = @transform_2, window_bounds = array<i64: 1, 8, 128>}, {transform_indices = @transform_3, window_bounds = array<i64: 1, 1, 8>}, {pipeline_mode = #tpu.pipeline_mode<synchronous>, transform_indices = @transform_4, window_bounds = array<i64: 128, 128>}, {pipeline_mode = #tpu.pipeline_mode<synchronous>, transform_indices = @transform_5, window_bounds = array<i64: 1, 128>}, {transform_indices = @transform_6, window_bounds = array<i64: 1, 8, 128>}, {transform_indices = @transform_7, window_bounds = array<i64: 1, 8, 128>}]} {
    %c0_i32 = arith.constant 0 : i32
    %0 = arith.cmpi eq, %arg1, %c0_i32 : i32
    %1 = arith.extui %0 : i1 to i32
    %c0_i32_0 = arith.constant 0 : i32
    %2 = arith.cmpi ne, %1, %c0_i32_0 : i32
    scf.if %2 {
      %cst_91 = arith.constant 0xFF800000 : f32
      %164 = vector.broadcast %cst_91 : f32 to vector<4x8x1xf32>
      %c0_92 = arith.constant 0 : index
      %c0_93 = arith.constant 0 : index
      %c0_94 = arith.constant 0 : index
      %165 = vector.load %arg10[%c0_92, %c0_93, %c0_94] : memref<4x8x1xf32, #tpu.memory_space<vmem>>, vector<4x8x1xf32>
      tpu.vector_store %arg10[%c0_92, %c0_93, %c0_94], %164 {strides = array<i32>} : memref<4x8x1xf32, #tpu.memory_space<vmem>>, vector<4x8x1xf32>,
      %cst_95 = arith.constant 0.000000e+00 : f32
      %166 = vector.broadcast %cst_95 : f32 to vector<4x8x1xf32>
      %c0_96 = arith.constant 0 : index
      %c0_97 = arith.constant 0 : index
      %c0_98 = arith.constant 0 : index
      %167 = vector.load %arg11[%c0_96, %c0_97, %c0_98] : memref<4x8x1xf32, #tpu.memory_space<vmem>>, vector<4x8x1xf32>
      tpu.vector_store %arg11[%c0_96, %c0_97, %c0_98], %166 {strides = array<i32>} : memref<4x8x1xf32, #tpu.memory_space<vmem>>, vector<4x8x1xf32>,
      %cst_99 = arith.constant 0.000000e+00 : f32
      %168 = vector.broadcast %cst_99 : f32 to vector<8x128xf32>
      %c0_100 = arith.constant 0 : index
      %c0_101 = arith.constant 0 : index
      %169 = vector.load %arg12[%c0_100, %c0_101] : memref<8x128xf32, #tpu.memory_space<vmem>>, vector<8x128xf32>
      tpu.vector_store %arg12[%c0_100, %c0_101], %168 {strides = array<i32>} : memref<8x128xf32, #tpu.memory_space<vmem>>, vector<8x128xf32>,
    } else {
    }
    %c0 = arith.constant 0 : index
    %c0_1 = arith.constant 0 : index
    %c0_2 = arith.constant 0 : index
    %3 = vector.load %arg2[%c0, %c0_1, %c0_2] : memref<1x8x128xbf16, #tpu.memory_space<vmem>>, vector<1x8x128xbf16>
    %4 = vector.shape_cast %3 : vector<1x8x128xbf16> to vector<8x128xbf16>
    %5 = arith.extf %4 : vector<8x128xbf16> to vector<8x128xf32>
    %cst = arith.constant 0.176776692 : f32
    %6 = vector.broadcast %cst : f32 to vector<8x128xf32>
    %7 = arith.mulf %5, %6 : vector<8x128xf32>
    %8 = arith.truncf %7 : vector<8x128xf32> to vector<8x128xbf16>
    %c0_3 = arith.constant 0 : index
    %c0_4 = arith.constant 0 : index
    %c0_5 = arith.constant 0 : index
    %9 = vector.load %arg3[%c0_3, %c0_4, %c0_5] : memref<1x8x128xbf16, #tpu.memory_space<vmem>>, vector<1x8x128xbf16>
    %10 = vector.shape_cast %9 : vector<1x8x128xbf16> to vector<8x128xbf16>
    %c0_6 = arith.constant 0 : index
    %c0_7 = arith.constant 0 : index
    %c0_8 = arith.constant 0 : index
    %11 = vector.load %arg4[%c0_6, %c0_7, %c0_8] : memref<1x8x128xbf16, #tpu.memory_space<vmem>>, vector<1x8x128xbf16>
    %12 = vector.shape_cast %11 : vector<1x8x128xbf16> to vector<8x128xbf16>
    %c0_9 = arith.constant 0 : index
    %c0_10 = arith.constant 0 : index
    %c0_11 = arith.constant 0 : index
    %13 = vector.load %arg5[%c0_9, %c0_10, %c0_11] : memref<1x1x8xi8, #tpu.memory_space<vmem>>, vector<1x1x8xi8>
    %14 = vector.shape_cast %13 : vector<1x1x8xi8> to vector<1x8xi8>
    %15 = arith.sitofp %14 : vector<1x8xi8> to vector<1x8xf32>
    %cst_12 = arith.constant 5.000000e-01 : f32
    %16 = vector.broadcast %cst_12 : f32 to vector<1x8xf32>
    %17 = arith.cmpf ogt, %15, %16 : vector<1x8xf32>
    %cst_13 = arith.constant 0.000000e+00 : f32
    %cst_14 = arith.constant -1.000000e+30 : f32
    %18 = vector.broadcast %cst_13 : f32 to vector<1x8xf32>
    %19 = vector.broadcast %cst_14 : f32 to vector<1x8xf32>
    %20 = arith.select %17, %18, %19 : vector<1x8xi1>, vector<1x8xf32>
    %21 = vector.extract_strided_slice %8 {offsets = [0, 0], sizes = [8, 32], strides = [1, 1]} : vector<8x128xbf16> to vector<8x32xbf16>
    %22 = vector.extract_strided_slice %10 {offsets = [0, 0], sizes = [8, 32], strides = [1, 1]} : vector<8x128xbf16> to vector<8x32xbf16>
    %cst_15 = arith.constant dense<0.000000e+00> : vector<8x8xf32>
    %23 = tpu.matmul %21, %22, %cst_15 {dimension_numbers = #tpu.dot_dimension_numbers<[1], [1], [0], [0], [0, 0, 1, 0], [], []>} : vector<8x32xbf16>, vector<8x32xbf16>, vector<8x8xf32> -> vector<8x8xf32>
    %24 = vector.broadcast %20 : vector<1x8xf32> to vector<8x8xf32>
    %25 = arith.addf %23, %24 : vector<8x8xf32>
    %c0_16 = arith.constant 0 : index
    %c0_17 = arith.constant 0 : index
    %c0_18 = arith.constant 0 : index
    %26 = vector.load %arg10[%c0_16, %c0_17, %c0_18] : memref<4x8x1xf32, #tpu.memory_space<vmem>>, vector<1x8x1xf32>
    %27 = vector.shape_cast %26 : vector<1x8x1xf32> to vector<8x1xf32>
    %cst_19 = arith.constant dense<0xFF800000> : vector<8xf32>
    %28 = vector.multi_reduction <maximumf>, %25, %cst_19 [1] : vector<8x8xf32> to vector<8xf32>
    %29 = vector.shape_cast %28 : vector<8xf32> to vector<8x1xf32>
    %30 = arith.maximumf %27, %29 : vector<8x1xf32>
    %31 = arith.subf %27, %30 : vector<8x1xf32>
    %32 = math.exp %31 : vector<8x1xf32>
    %33 = vector.broadcast %30 : vector<8x1xf32> to vector<8x8xf32>
    %34 = arith.subf %25, %33 : vector<8x8xf32>
    %35 = math.exp %34 : vector<8x8xf32>
    %c0_20 = arith.constant 0 : index
    %c0_21 = arith.constant 0 : index
    %c0_22 = arith.constant 0 : index
    %36 = vector.load %arg11[%c0_20, %c0_21, %c0_22] : memref<4x8x1xf32, #tpu.memory_space<vmem>>, vector<1x8x1xf32>
    %37 = vector.shape_cast %36 : vector<1x8x1xf32> to vector<8x1xf32>
    %38 = arith.mulf %32, %37 : vector<8x1xf32>
    %cst_23 = arith.constant dense<0.000000e+00> : vector<8xf32>
    %39 = vector.multi_reduction <add>, %35, %cst_23 [1] : vector<8x8xf32> to vector<8xf32>
    %40 = vector.shape_cast %39 : vector<8xf32> to vector<8x1xf32>
    %41 = arith.addf %38, %40 : vector<8x1xf32>
    %c0_24 = arith.constant 0 : index
    %c0_25 = arith.constant 0 : index
    %c0_26 = arith.constant 0 : index
    %42 = vector.load %arg11[%c0_24, %c0_25, %c0_26] : memref<4x8x1xf32, #tpu.memory_space<vmem>>, vector<1x8x1xf32>
    %43 = vector.shape_cast %42 : vector<1x8x1xf32> to vector<8x1xf32>
    %44 = vector.shape_cast %41 : vector<8x1xf32> to vector<1x8x1xf32>
    tpu.vector_store %arg11[%c0_24, %c0_25, %c0_26], %44 {strides = array<i32>} : memref<4x8x1xf32, #tpu.memory_space<vmem>>, vector<1x8x1xf32>,
    %c0_27 = arith.constant 0 : index
    %c0_28 = arith.constant 0 : index
    %45 = vector.load %arg12[%c0_27, %c0_28] : memref<8x128xf32, #tpu.memory_space<vmem>>, vector<8x32xf32>
    %46 = vector.broadcast %32 : vector<8x1xf32> to vector<8x32xf32>
    %47 = arith.mulf %46, %45 : vector<8x32xf32>
    %48 = arith.truncf %35 : vector<8x8xf32> to vector<8x8xbf16>
    %49 = vector.extract_strided_slice %12 {offsets = [0, 0], sizes = [8, 32], strides = [1, 1]} : vector<8x128xbf16> to vector<8x32xbf16>
    %cst_29 = arith.constant dense<0.000000e+00> : vector<8x32xf32>
    %50 = tpu.matmul %48, %49, %cst_29 {dimension_numbers = #tpu.dot_dimension_numbers<[1], [0], [0], [1], [0, 0, 1, 1], [], []>} : vector<8x8xbf16>, vector<8x32xbf16>, vector<8x32xf32> -> vector<8x32xf32>
    %51 = arith.addf %47, %50 : vector<8x32xf32>
    %c0_30 = arith.constant 0 : index
    %c0_31 = arith.constant 0 : index
    %52 = vector.load %arg12[%c0_30, %c0_31] : memref<8x128xf32, #tpu.memory_space<vmem>>, vector<8x32xf32>
    tpu.vector_store %arg12[%c0_30, %c0_31], %51 {strides = array<i32>} : memref<8x128xf32, #tpu.memory_space<vmem>>, vector<8x32xf32>,
    %c0_32 = arith.constant 0 : index
    %c0_33 = arith.constant 0 : index
    %c0_34 = arith.constant 0 : index
    %53 = vector.load %arg10[%c0_32, %c0_33, %c0_34] : memref<4x8x1xf32, #tpu.memory_space<vmem>>, vector<1x8x1xf32>
    %54 = vector.shape_cast %53 : vector<1x8x1xf32> to vector<8x1xf32>
    %55 = vector.shape_cast %30 : vector<8x1xf32> to vector<1x8x1xf32>
    tpu.vector_store %arg10[%c0_32, %c0_33, %c0_34], %55 {strides = array<i32>} : memref<4x8x1xf32, #tpu.memory_space<vmem>>, vector<1x8x1xf32>,
    %56 = vector.extract_strided_slice %8 {offsets = [0, 32], sizes = [8, 32], strides = [1, 1]} : vector<8x128xbf16> to vector<8x32xbf16>
    %57 = vector.extract_strided_slice %10 {offsets = [0, 32], sizes = [8, 32], strides = [1, 1]} : vector<8x128xbf16> to vector<8x32xbf16>
    %cst_35 = arith.constant dense<0.000000e+00> : vector<8x8xf32>
    %58 = tpu.matmul %56, %57, %cst_35 {dimension_numbers = #tpu.dot_dimension_numbers<[1], [1], [0], [0], [0, 0, 1, 0], [], []>} : vector<8x32xbf16>, vector<8x32xbf16>, vector<8x8xf32> -> vector<8x8xf32>
    %59 = vector.broadcast %20 : vector<1x8xf32> to vector<8x8xf32>
    %60 = arith.addf %58, %59 : vector<8x8xf32>
    %c1 = arith.constant 1 : index
    %c0_36 = arith.constant 0 : index
    %c0_37 = arith.constant 0 : index
    %61 = vector.load %arg10[%c1, %c0_36, %c0_37] : memref<4x8x1xf32, #tpu.memory_space<vmem>>, vector<1x8x1xf32>
    %62 = vector.shape_cast %61 : vector<1x8x1xf32> to vector<8x1xf32>
    %cst_38 = arith.constant dense<0xFF800000> : vector<8xf32>
    %63 = vector.multi_reduction <maximumf>, %60, %cst_38 [1] : vector<8x8xf32> to vector<8xf32>
    %64 = vector.shape_cast %63 : vector<8xf32> to vector<8x1xf32>
    %65 = arith.maximumf %62, %64 : vector<8x1xf32>
    %66 = arith.subf %62, %65 : vector<8x1xf32>
    %67 = math.exp %66 : vector<8x1xf32>
    %68 = vector.broadcast %65 : vector<8x1xf32> to vector<8x8xf32>
    %69 = arith.subf %60, %68 : vector<8x8xf32>
    %70 = math.exp %69 : vector<8x8xf32>
    %c1_39 = arith.constant 1 : index
    %c0_40 = arith.constant 0 : index
    %c0_41 = arith.constant 0 : index
    %71 = vector.load %arg11[%c1_39, %c0_40, %c0_41] : memref<4x8x1xf32, #tpu.memory_space<vmem>>, vector<1x8x1xf32>
    %72 = vector.shape_cast %71 : vector<1x8x1xf32> to vector<8x1xf32>
    %73 = arith.mulf %67, %72 : vector<8x1xf32>
    %cst_42 = arith.constant dense<0.000000e+00> : vector<8xf32>
    %74 = vector.multi_reduction <add>, %70, %cst_42 [1] : vector<8x8xf32> to vector<8xf32>
    %75 = vector.shape_cast %74 : vector<8xf32> to vector<8x1xf32>
    %76 = arith.addf %73, %75 : vector<8x1xf32>
    %c1_43 = arith.constant 1 : index
    %c0_44 = arith.constant 0 : index
    %c0_45 = arith.constant 0 : index
    %77 = vector.load %arg11[%c1_43, %c0_44, %c0_45] : memref<4x8x1xf32, #tpu.memory_space<vmem>>, vector<1x8x1xf32>
    %78 = vector.shape_cast %77 : vector<1x8x1xf32> to vector<8x1xf32>
    %79 = vector.shape_cast %76 : vector<8x1xf32> to vector<1x8x1xf32>
    tpu.vector_store %arg11[%c1_43, %c0_44, %c0_45], %79 {strides = array<i32>} : memref<4x8x1xf32, #tpu.memory_space<vmem>>, vector<1x8x1xf32>,
    %c0_46 = arith.constant 0 : index
    %c32 = arith.constant 32 : index
    %80 = vector.load %arg12[%c0_46, %c32] : memref<8x128xf32, #tpu.memory_space<vmem>>, vector<8x32xf32>
    %81 = vector.broadcast %67 : vector<8x1xf32> to vector<8x32xf32>
    %82 = arith.mulf %81, %80 : vector<8x32xf32>
    %83 = arith.truncf %70 : vector<8x8xf32> to vector<8x8xbf16>
    %84 = vector.extract_strided_slice %12 {offsets = [0, 32], sizes = [8, 32], strides = [1, 1]} : vector<8x128xbf16> to vector<8x32xbf16>
    %cst_47 = arith.constant dense<0.000000e+00> : vector<8x32xf32>
    %85 = tpu.matmul %83, %84, %cst_47 {dimension_numbers = #tpu.dot_dimension_numbers<[1], [0], [0], [1], [0, 0, 1, 1], [], []>} : vector<8x8xbf16>, vector<8x32xbf16>, vector<8x32xf32> -> vector<8x32xf32>
    %86 = arith.addf %82, %85 : vector<8x32xf32>
    %c0_48 = arith.constant 0 : index
    %c32_49 = arith.constant 32 : index
    %87 = vector.load %arg12[%c0_48, %c32_49] : memref<8x128xf32, #tpu.memory_space<vmem>>, vector<8x32xf32>
    tpu.vector_store %arg12[%c0_48, %c32_49], %86 {strides = array<i32>} : memref<8x128xf32, #tpu.memory_space<vmem>>, vector<8x32xf32>,
    %c1_50 = arith.constant 1 : index
    %c0_51 = arith.constant 0 : index
    %c0_52 = arith.constant 0 : index
    %88 = vector.load %arg10[%c1_50, %c0_51, %c0_52] : memref<4x8x1xf32, #tpu.memory_space<vmem>>, vector<1x8x1xf32>
    %89 = vector.shape_cast %88 : vector<1x8x1xf32> to vector<8x1xf32>
    %90 = vector.shape_cast %65 : vector<8x1xf32> to vector<1x8x1xf32>
    tpu.vector_store %arg10[%c1_50, %c0_51, %c0_52], %90 {strides = array<i32>} : memref<4x8x1xf32, #tpu.memory_space<vmem>>, vector<1x8x1xf32>,
    %91 = vector.extract_strided_slice %8 {offsets = [0, 64], sizes = [8, 32], strides = [1, 1]} : vector<8x128xbf16> to vector<8x32xbf16>
    %92 = vector.extract_strided_slice %10 {offsets = [0, 64], sizes = [8, 32], strides = [1, 1]} : vector<8x128xbf16> to vector<8x32xbf16>
    %cst_53 = arith.constant dense<0.000000e+00> : vector<8x8xf32>
    %93 = tpu.matmul %91, %92, %cst_53 {dimension_numbers = #tpu.dot_dimension_numbers<[1], [1], [0], [0], [0, 0, 1, 0], [], []>} : vector<8x32xbf16>, vector<8x32xbf16>, vector<8x8xf32> -> vector<8x8xf32>
    %94 = vector.broadcast %20 : vector<1x8xf32> to vector<8x8xf32>
    %95 = arith.addf %93, %94 : vector<8x8xf32>
    %c2 = arith.constant 2 : index
    %c0_54 = arith.constant 0 : index
    %c0_55 = arith.constant 0 : index
    %96 = vector.load %arg10[%c2, %c0_54, %c0_55] : memref<4x8x1xf32, #tpu.memory_space<vmem>>, vector<1x8x1xf32>
    %97 = vector.shape_cast %96 : vector<1x8x1xf32> to vector<8x1xf32>
    %cst_56 = arith.constant dense<0xFF800000> : vector<8xf32>
    %98 = vector.multi_reduction <maximumf>, %95, %cst_56 [1] : vector<8x8xf32> to vector<8xf32>
    %99 = vector.shape_cast %98 : vector<8xf32> to vector<8x1xf32>
    %100 = arith.maximumf %97, %99 : vector<8x1xf32>
    %101 = arith.subf %97, %100 : vector<8x1xf32>
    %102 = math.exp %101 : vector<8x1xf32>
    %103 = vector.broadcast %100 : vector<8x1xf32> to vector<8x8xf32>
    %104 = arith.subf %95, %103 : vector<8x8xf32>
    %105 = math.exp %104 : vector<8x8xf32>
    %c2_57 = arith.constant 2 : index
    %c0_58 = arith.constant 0 : index
    %c0_59 = arith.constant 0 : index
    %106 = vector.load %arg11[%c2_57, %c0_58, %c0_59] : memref<4x8x1xf32, #tpu.memory_space<vmem>>, vector<1x8x1xf32>
    %107 = vector.shape_cast %106 : vector<1x8x1xf32> to vector<8x1xf32>
    %108 = arith.mulf %102, %107 : vector<8x1xf32>
    %cst_60 = arith.constant dense<0.000000e+00> : vector<8xf32>
    %109 = vector.multi_reduction <add>, %105, %cst_60 [1] : vector<8x8xf32> to vector<8xf32>
    %110 = vector.shape_cast %109 : vector<8xf32> to vector<8x1xf32>
    %111 = arith.addf %108, %110 : vector<8x1xf32>
    %c2_61 = arith.constant 2 : index
    %c0_62 = arith.constant 0 : index
    %c0_63 = arith.constant 0 : index
    %112 = vector.load %arg11[%c2_61, %c0_62, %c0_63] : memref<4x8x1xf32, #tpu.memory_space<vmem>>, vector<1x8x1xf32>
    %113 = vector.shape_cast %112 : vector<1x8x1xf32> to vector<8x1xf32>
    %114 = vector.shape_cast %111 : vector<8x1xf32> to vector<1x8x1xf32>
    tpu.vector_store %arg11[%c2_61, %c0_62, %c0_63], %114 {strides = array<i32>} : memref<4x8x1xf32, #tpu.memory_space<vmem>>, vector<1x8x1xf32>,
    %c0_64 = arith.constant 0 : index
    %c64 = arith.constant 64 : index
    %115 = vector.load %arg12[%c0_64, %c64] : memref<8x128xf32, #tpu.memory_space<vmem>>, vector<8x32xf32>
    %116 = vector.broadcast %102 : vector<8x1xf32> to vector<8x32xf32>
    %117 = arith.mulf %116, %115 : vector<8x32xf32>
    %118 = arith.truncf %105 : vector<8x8xf32> to vector<8x8xbf16>
    %119 = vector.extract_strided_slice %12 {offsets = [0, 64], sizes = [8, 32], strides = [1, 1]} : vector<8x128xbf16> to vector<8x32xbf16>
    %cst_65 = arith.constant dense<0.000000e+00> : vector<8x32xf32>
    %120 = tpu.matmul %118, %119, %cst_65 {dimension_numbers = #tpu.dot_dimension_numbers<[1], [0], [0], [1], [0, 0, 1, 1], [], []>} : vector<8x8xbf16>, vector<8x32xbf16>, vector<8x32xf32> -> vector<8x32xf32>
    %121 = arith.addf %117, %120 : vector<8x32xf32>
    %c0_66 = arith.constant 0 : index
    %c64_67 = arith.constant 64 : index
    %122 = vector.load %arg12[%c0_66, %c64_67] : memref<8x128xf32, #tpu.memory_space<vmem>>, vector<8x32xf32>
    tpu.vector_store %arg12[%c0_66, %c64_67], %121 {strides = array<i32>} : memref<8x128xf32, #tpu.memory_space<vmem>>, vector<8x32xf32>,
    %c2_68 = arith.constant 2 : index
    %c0_69 = arith.constant 0 : index
    %c0_70 = arith.constant 0 : index
    %123 = vector.load %arg10[%c2_68, %c0_69, %c0_70] : memref<4x8x1xf32, #tpu.memory_space<vmem>>, vector<1x8x1xf32>
    %124 = vector.shape_cast %123 : vector<1x8x1xf32> to vector<8x1xf32>
    %125 = vector.shape_cast %100 : vector<8x1xf32> to vector<1x8x1xf32>
    tpu.vector_store %arg10[%c2_68, %c0_69, %c0_70], %125 {strides = array<i32>} : memref<4x8x1xf32, #tpu.memory_space<vmem>>, vector<1x8x1xf32>,
    %126 = vector.extract_strided_slice %8 {offsets = [0, 96], sizes = [8, 32], strides = [1, 1]} : vector<8x128xbf16> to vector<8x32xbf16>
    %127 = vector.extract_strided_slice %10 {offsets = [0, 96], sizes = [8, 32], strides = [1, 1]} : vector<8x128xbf16> to vector<8x32xbf16>
    %cst_71 = arith.constant dense<0.000000e+00> : vector<8x8xf32>
    %128 = tpu.matmul %126, %127, %cst_71 {dimension_numbers = #tpu.dot_dimension_numbers<[1], [1], [0], [0], [0, 0, 1, 0], [], []>} : vector<8x32xbf16>, vector<8x32xbf16>, vector<8x8xf32> -> vector<8x8xf32>
    %129 = vector.broadcast %20 : vector<1x8xf32> to vector<8x8xf32>
    %130 = arith.addf %128, %129 : vector<8x8xf32>
    %c3 = arith.constant 3 : index
    %c0_72 = arith.constant 0 : index
    %c0_73 = arith.constant 0 : index
    %131 = vector.load %arg10[%c3, %c0_72, %c0_73] : memref<4x8x1xf32, #tpu.memory_space<vmem>>, vector<1x8x1xf32>
    %132 = vector.shape_cast %131 : vector<1x8x1xf32> to vector<8x1xf32>
    %cst_74 = arith.constant dense<0xFF800000> : vector<8xf32>
    %133 = vector.multi_reduction <maximumf>, %130, %cst_74 [1] : vector<8x8xf32> to vector<8xf32>
    %134 = vector.shape_cast %133 : vector<8xf32> to vector<8x1xf32>
    %135 = arith.maximumf %132, %134 : vector<8x1xf32>
    %136 = arith.subf %132, %135 : vector<8x1xf32>
    %137 = math.exp %136 : vector<8x1xf32>
    %138 = vector.broadcast %135 : vector<8x1xf32> to vector<8x8xf32>
    %139 = arith.subf %130, %138 : vector<8x8xf32>
    %140 = math.exp %139 : vector<8x8xf32>
    %c3_75 = arith.constant 3 : index
    %c0_76 = arith.constant 0 : index
    %c0_77 = arith.constant 0 : index
    %141 = vector.load %arg11[%c3_75, %c0_76, %c0_77] : memref<4x8x1xf32, #tpu.memory_space<vmem>>, vector<1x8x1xf32>
    %142 = vector.shape_cast %141 : vector<1x8x1xf32> to vector<8x1xf32>
    %143 = arith.mulf %137, %142 : vector<8x1xf32>
    %cst_78 = arith.constant dense<0.000000e+00> : vector<8xf32>
    %144 = vector.multi_reduction <add>, %140, %cst_78 [1] : vector<8x8xf32> to vector<8xf32>
    %145 = vector.shape_cast %144 : vector<8xf32> to vector<8x1xf32>
    %146 = arith.addf %143, %145 : vector<8x1xf32>
    %c3_79 = arith.constant 3 : index
    %c0_80 = arith.constant 0 : index
    %c0_81 = arith.constant 0 : index
    %147 = vector.load %arg11[%c3_79, %c0_80, %c0_81] : memref<4x8x1xf32, #tpu.memory_space<vmem>>, vector<1x8x1xf32>
    %148 = vector.shape_cast %147 : vector<1x8x1xf32> to vector<8x1xf32>
    %149 = vector.shape_cast %146 : vector<8x1xf32> to vector<1x8x1xf32>
    tpu.vector_store %arg11[%c3_79, %c0_80, %c0_81], %149 {strides = array<i32>} : memref<4x8x1xf32, #tpu.memory_space<vmem>>, vector<1x8x1xf32>,
    %c0_82 = arith.constant 0 : index
    %c96 = arith.constant 96 : index
    %150 = vector.load %arg12[%c0_82, %c96] : memref<8x128xf32, #tpu.memory_space<vmem>>, vector<8x32xf32>
    %151 = vector.broadcast %137 : vector<8x1xf32> to vector<8x32xf32>
    %152 = arith.mulf %151, %150 : vector<8x32xf32>
    %153 = arith.truncf %140 : vector<8x8xf32> to vector<8x8xbf16>
    %154 = vector.extract_strided_slice %12 {offsets = [0, 96], sizes = [8, 32], strides = [1, 1]} : vector<8x128xbf16> to vector<8x32xbf16>
    %cst_83 = arith.constant dense<0.000000e+00> : vector<8x32xf32>
    %155 = tpu.matmul %153, %154, %cst_83 {dimension_numbers = #tpu.dot_dimension_numbers<[1], [0], [0], [1], [0, 0, 1, 1], [], []>} : vector<8x8xbf16>, vector<8x32xbf16>, vector<8x32xf32> -> vector<8x32xf32>
    %156 = arith.addf %152, %155 : vector<8x32xf32>
    %c0_84 = arith.constant 0 : index
    %c96_85 = arith.constant 96 : index
    %157 = vector.load %arg12[%c0_84, %c96_85] : memref<8x128xf32, #tpu.memory_space<vmem>>, vector<8x32xf32>
    tpu.vector_store %arg12[%c0_84, %c96_85], %156 {strides = array<i32>} : memref<8x128xf32, #tpu.memory_space<vmem>>, vector<8x32xf32>,
    %c3_86 = arith.constant 3 : index
    %c0_87 = arith.constant 0 : index
    %c0_88 = arith.constant 0 : index
    %158 = vector.load %arg10[%c3_86, %c0_87, %c0_88] : memref<4x8x1xf32, #tpu.memory_space<vmem>>, vector<1x8x1xf32>
    %159 = vector.shape_cast %158 : vector<1x8x1xf32> to vector<8x1xf32>
    %160 = vector.shape_cast %135 : vector<8x1xf32> to vector<1x8x1xf32>
    tpu.vector_store %arg10[%c3_86, %c0_87, %c0_88], %160 {strides = array<i32>} : memref<4x8x1xf32, #tpu.memory_space<vmem>>, vector<1x8x1xf32>,
    %c0_i32_89 = arith.constant 0 : i32
    %161 = arith.cmpi eq, %arg1, %c0_i32_89 : i32
    %162 = arith.extui %161 : i1 to i32
    %c0_i32_90 = arith.constant 0 : i32
    %163 = arith.cmpi ne, %162, %c0_i32_90 : i32
    scf.if %163 {
      %c0_91 = arith.constant 0 : index
      %c0_92 = arith.constant 0 : index
      %164 = vector.load %arg12[%c0_91, %c0_92] : memref<8x128xf32, #tpu.memory_space<vmem>>, vector<8x32xf32>
      %c0_93 = arith.constant 0 : index
      %c0_94 = arith.constant 0 : index
      %c0_95 = arith.constant 0 : index
      %165 = vector.load %arg11[%c0_93, %c0_94, %c0_95] : memref<4x8x1xf32, #tpu.memory_space<vmem>>, vector<1x8x1xf32>
      %166 = vector.shape_cast %165 : vector<1x8x1xf32> to vector<8x1xf32>
      %167 = tpu.reciprocal %166 {approx = true} : vector<8x1xf32> -> vector<8x1xf32>
      %168 = vector.broadcast %167 : vector<8x1xf32> to vector<8x32xf32>
      %169 = arith.mulf %164, %168 : vector<8x32xf32>
      %c0_96 = arith.constant 0 : index
      %c0_97 = arith.constant 0 : index
      %170 = vector.load %arg12[%c0_96, %c0_97] : memref<8x128xf32, #tpu.memory_space<vmem>>, vector<8x32xf32>
      tpu.vector_store %arg12[%c0_96, %c0_97], %169 {strides = array<i32>} : memref<8x128xf32, #tpu.memory_space<vmem>>, vector<8x32xf32>,
      %c0_98 = arith.constant 0 : index
      %c32_99 = arith.constant 32 : index
      %171 = vector.load %arg12[%c0_98, %c32_99] : memref<8x128xf32, #tpu.memory_space<vmem>>, vector<8x32xf32>
      %c1_100 = arith.constant 1 : index
      %c0_101 = arith.constant 0 : index
      %c0_102 = arith.constant 0 : index
      %172 = vector.load %arg11[%c1_100, %c0_101, %c0_102] : memref<4x8x1xf32, #tpu.memory_space<vmem>>, vector<1x8x1xf32>
      %173 = vector.shape_cast %172 : vector<1x8x1xf32> to vector<8x1xf32>
      %174 = tpu.reciprocal %173 {approx = true} : vector<8x1xf32> -> vector<8x1xf32>
      %175 = vector.broadcast %174 : vector<8x1xf32> to vector<8x32xf32>
      %176 = arith.mulf %171, %175 : vector<8x32xf32>
      %c0_103 = arith.constant 0 : index
      %c32_104 = arith.constant 32 : index
      %177 = vector.load %arg12[%c0_103, %c32_104] : memref<8x128xf32, #tpu.memory_space<vmem>>, vector<8x32xf32>
      tpu.vector_store %arg12[%c0_103, %c32_104], %176 {strides = array<i32>} : memref<8x128xf32, #tpu.memory_space<vmem>>, vector<8x32xf32>,
      %c0_105 = arith.constant 0 : index
      %c64_106 = arith.constant 64 : index
      %178 = vector.load %arg12[%c0_105, %c64_106] : memref<8x128xf32, #tpu.memory_space<vmem>>, vector<8x32xf32>
      %c2_107 = arith.constant 2 : index
      %c0_108 = arith.constant 0 : index
      %c0_109 = arith.constant 0 : index
      %179 = vector.load %arg11[%c2_107, %c0_108, %c0_109] : memref<4x8x1xf32, #tpu.memory_space<vmem>>, vector<1x8x1xf32>
      %180 = vector.shape_cast %179 : vector<1x8x1xf32> to vector<8x1xf32>
      %181 = tpu.reciprocal %180 {approx = true} : vector<8x1xf32> -> vector<8x1xf32>
      %182 = vector.broadcast %181 : vector<8x1xf32> to vector<8x32xf32>
      %183 = arith.mulf %178, %182 : vector<8x32xf32>
      %c0_110 = arith.constant 0 : index
      %c64_111 = arith.constant 64 : index
      %184 = vector.load %arg12[%c0_110, %c64_111] : memref<8x128xf32, #tpu.memory_space<vmem>>, vector<8x32xf32>
      tpu.vector_store %arg12[%c0_110, %c64_111], %183 {strides = array<i32>} : memref<8x128xf32, #tpu.memory_space<vmem>>, vector<8x32xf32>,
      %c0_112 = arith.constant 0 : index
      %c96_113 = arith.constant 96 : index
      %185 = vector.load %arg12[%c0_112, %c96_113] : memref<8x128xf32, #tpu.memory_space<vmem>>, vector<8x32xf32>
      %c3_114 = arith.constant 3 : index
      %c0_115 = arith.constant 0 : index
      %c0_116 = arith.constant 0 : index
      %186 = vector.load %arg11[%c3_114, %c0_115, %c0_116] : memref<4x8x1xf32, #tpu.memory_space<vmem>>, vector<1x8x1xf32>
      %187 = vector.shape_cast %186 : vector<1x8x1xf32> to vector<8x1xf32>
      %188 = tpu.reciprocal %187 {approx = true} : vector<8x1xf32> -> vector<8x1xf32>
      %189 = vector.broadcast %188 : vector<8x1xf32> to vector<8x32xf32>
      %190 = arith.mulf %185, %189 : vector<8x32xf32>
      %c0_117 = arith.constant 0 : index
      %c96_118 = arith.constant 96 : index
      %191 = vector.load %arg12[%c0_117, %c96_118] : memref<8x128xf32, #tpu.memory_space<vmem>>, vector<8x32xf32>
      tpu.vector_store %arg12[%c0_117, %c96_118], %190 {strides = array<i32>} : memref<8x128xf32, #tpu.memory_space<vmem>>, vector<8x32xf32>,
      %c0_119 = arith.constant 0 : index
      %c0_120 = arith.constant 0 : index
      %192 = vector.load %arg12[%c0_119, %c0_120] : memref<8x128xf32, #tpu.memory_space<vmem>>, vector<8x128xf32>
      %193 = arith.truncf %192 : vector<8x128xf32> to vector<8x128xbf16>
      %c0_121 = arith.constant 0 : index
      %c0_122 = arith.constant 0 : index
      %194 = vector.load %arg6[%c0_121, %c0_122] : memref<128x128xbf16, #tpu.memory_space<vmem>>, vector<128x128xbf16>
      %cst_123 = arith.constant dense<0.000000e+00> : vector<8x128xf32>
      %195 = tpu.matmul %193, %194, %cst_123 {dimension_numbers = #tpu.dot_dimension_numbers<[1], [0], [0], [1], [0, 0, 1, 1], [], []>} : vector<8x128xbf16>, vector<128x128xbf16>, vector<8x128xf32> -> vector<8x128xf32>
      %c0_124 = arith.constant 0 : index
      %c0_125 = arith.constant 0 : index
      %196 = vector.load %arg7[%c0_124, %c0_125] : memref<1x128xf32, #tpu.memory_space<vmem>>, vector<1x128xf32>
      %197 = vector.broadcast %196 : vector<1x128xf32> to vector<8x128xf32>
      %198 = arith.addf %195, %197 : vector<8x128xf32>
      %c0_126 = arith.constant 0 : index
      %c0_127 = arith.constant 0 : index
      %c0_128 = arith.constant 0 : index
      %199 = vector.load %arg8[%c0_126, %c0_127, %c0_128] : memref<1x8x128xbf16, #tpu.memory_space<vmem>>, vector<1x8x128xbf16>
      %200 = vector.shape_cast %199 : vector<1x8x128xbf16> to vector<8x128xbf16>
      %201 = arith.extf %200 : vector<8x128xbf16> to vector<8x128xf32>
      %202 = arith.addf %201, %198 : vector<8x128xf32>
      %203 = arith.truncf %202 : vector<8x128xf32> to vector<8x128xbf16>
      %c0_129 = arith.constant 0 : index
      %c0_130 = arith.constant 0 : index
      %c0_131 = arith.constant 0 : index
      %204 = vector.load %arg9[%c0_129, %c0_130, %c0_131] : memref<1x8x128xbf16, #tpu.memory_space<vmem>>, vector<1x8x128xbf16>
      %205 = vector.shape_cast %204 : vector<1x8x128xbf16> to vector<8x128xbf16>
      %206 = vector.shape_cast %203 : vector<8x128xbf16> to vector<1x8x128xbf16>
      tpu.vector_store %arg9[%c0_129, %c0_130, %c0_131], %206 {strides = array<i32>} : memref<1x8x128xbf16, #tpu.memory_space<vmem>>, vector<1x8x128xbf16>,
    } else {
    }
    return
  }
  func.func @transform_0(%arg0: i32, %arg1: i32) -> (i32, i32, i32) {
    %c0_i32 = arith.constant 0 : i32
    %c0_i32_0 = arith.constant 0 : i32
    %c0_i32_1 = arith.constant 0 : i32
    return %arg0, %c0_i32, %c0_i32_0 : i32, i32, i32
  }
  func.func @transform_1(%arg0: i32, %arg1: i32) -> (i32, i32, i32) {
    %c0_i32 = arith.constant 0 : i32
    %c0_i32_0 = arith.constant 0 : i32
    return %arg0, %arg1, %c0_i32 : i32, i32, i32
  }
  func.func @transform_2(%arg0: i32, %arg1: i32) -> (i32, i32, i32) {
    %c1_i32 = arith.constant 1 : i32
    %c0_i32 = arith.constant 0 : i32
    return %arg0, %arg1, %c1_i32 : i32, i32, i32
  }
  func.func @transform_3(%arg0: i32, %arg1: i32) -> (i32, i32, i32) {
    %c0_i32 = arith.constant 0 : i32
    %c0_i32_0 = arith.constant 0 : i32
    return %arg0, %c0_i32, %arg1 : i32, i32, i32
  }
  func.func @transform_4(%arg0: i32, %arg1: i32) -> (i32, i32) {
    %c0_i32 = arith.constant 0 : i32
    %c0_i32_0 = arith.constant 0 : i32
    %c0_i32_1 = arith.constant 0 : i32
    return %c0_i32, %c0_i32_0 : i32, i32
  }
  func.func @transform_5(%arg0: i32, %arg1: i32) -> (i32, i32) {
    %c0_i32 = arith.constant 0 : i32
    %c0_i32_0 = arith.constant 0 : i32
    %c0_i32_1 = arith.constant 0 : i32
    return %c0_i32, %c0_i32_0 : i32, i32
  }
  func.func @transform_6(%arg0: i32, %arg1: i32) -> (i32, i32, i32) {
    %c0_i32 = arith.constant 0 : i32
    %c0_i32_0 = arith.constant 0 : i32
    %c0_i32_1 = arith.constant 0 : i32
    return %arg0, %c0_i32, %c0_i32_0 : i32, i32, i32
  }
  func.func @transform_7(%arg0: i32, %arg1: i32) -> (i32, i32, i32) {
    %c0_i32 = arith.constant 0 : i32
    %c0_i32_0 = arith.constant 0 : i32
    %c0_i32_1 = arith.constant 0 : i32
    return %arg0, %c0_i32, %c0_i32_0 : i32, i32, i32
  }
}

module attributes {stable_mosaic.version = 11 : i64} {
  func.func @_ln_linear_kernel(%arg0: i32, %arg1: i32, %arg2: memref<16x128xbf16, #tpu.memory_space<vmem>>, %arg3: memref<1x128xf32, #tpu.memory_space<vmem>>, %arg4: memref<1x128xf32, #tpu.memory_space<vmem>>, %arg5: memref<128x256xbf16, #tpu.memory_space<vmem>>, %arg6: memref<1x256xf32, #tpu.memory_space<vmem>>, %arg7: memref<16x256xbf16, #tpu.memory_space<vmem>>, %arg8: memref<16x128xbf16, #tpu.memory_space<vmem>>) attributes {dimension_semantics = [#tpu.dimension_semantics<parallel>, #tpu.dimension_semantics<arbitrary>], iteration_bounds = array<i64: 1, 1>, scalar_prefetch = 0 : i64, scratch_operands = 1 : i64, tpu.core_type = #tpu.core_type<tc>, window_params = [{transform_indices = @transform_0, window_bounds = array<i64: 16, 128>}, {pipeline_mode = #tpu.pipeline_mode<synchronous>, transform_indices = @transform_1, window_bounds = array<i64: 1, 128>}, {pipeline_mode = #tpu.pipeline_mode<synchronous>, transform_indices = @transform_2, window_bounds = array<i64: 1, 128>}, {transform_indices = @transform_3, window_bounds = array<i64: 128, 256>}, {transform_indices = @transform_4, window_bounds = array<i64: 1, 256>}, {transform_indices = @transform_5, window_bounds = array<i64: 16, 256>}]} {
    %c0_i32 = arith.constant 0 : i32
    %0 = arith.cmpi eq, %arg1, %c0_i32 : i32
    %1 = arith.extui %0 : i1 to i32
    %c0_i32_0 = arith.constant 0 : i32
    %2 = arith.cmpi ne, %1, %c0_i32_0 : i32
    scf.if %2 {
      %c0_9 = arith.constant 0 : index
      %c0_10 = arith.constant 0 : index
      %13 = vector.load %arg2[%c0_9, %c0_10] : memref<16x128xbf16, #tpu.memory_space<vmem>>, vector<16x128xbf16>
      %14 = arith.extf %13 : vector<16x128xbf16> to vector<16x128xf32>
      %cst_11 = arith.constant dense<0.000000e+00> : vector<16xf32>
      %15 = vector.multi_reduction <add>, %14, %cst_11 [1] : vector<16x128xf32> to vector<16xf32>
      %16 = vector.shape_cast %15 : vector<16xf32> to vector<16x1xf32>
      %cst_12 = arith.constant 1.280000e+02 : f32
      %17 = vector.broadcast %cst_12 : f32 to vector<16x1xf32>
      %18 = arith.divf %16, %17 : vector<16x1xf32>
      %19 = vector.broadcast %18 : vector<16x1xf32> to vector<16x128xf32>
      %20 = arith.subf %14, %19 : vector<16x128xf32>
      %21 = arith.mulf %20, %20 : vector<16x128xf32>
      %cst_13 = arith.constant dense<0.000000e+00> : vector<16xf32>
      %22 = vector.multi_reduction <add>, %21, %cst_13 [1] : vector<16x128xf32> to vector<16xf32>
      %23 = vector.shape_cast %22 : vector<16xf32> to vector<16x1xf32>
      %cst_14 = arith.constant 1.280000e+02 : f32
      %24 = vector.broadcast %cst_14 : f32 to vector<16x1xf32>
      %25 = arith.divf %23, %24 : vector<16x1xf32>
      %26 = vector.broadcast %18 : vector<16x1xf32> to vector<16x128xf32>
      %27 = arith.subf %14, %26 : vector<16x128xf32>
      %cst_15 = arith.constant 9.99999974E-6 : f32
      %28 = vector.broadcast %cst_15 : f32 to vector<16x1xf32>
      %29 = arith.addf %25, %28 : vector<16x1xf32>
      %30 = math.rsqrt %29 : vector<16x1xf32>
      %31 = vector.broadcast %30 : vector<16x1xf32> to vector<16x128xf32>
      %32 = arith.mulf %27, %31 : vector<16x128xf32>
      %c0_16 = arith.constant 0 : index
      %c0_17 = arith.constant 0 : index
      %33 = vector.load %arg3[%c0_16, %c0_17] : memref<1x128xf32, #tpu.memory_space<vmem>>, vector<1x128xf32>
      %34 = vector.broadcast %33 : vector<1x128xf32> to vector<16x128xf32>
      %35 = arith.mulf %32, %34 : vector<16x128xf32>
      %c0_18 = arith.constant 0 : index
      %c0_19 = arith.constant 0 : index
      %36 = vector.load %arg4[%c0_18, %c0_19] : memref<1x128xf32, #tpu.memory_space<vmem>>, vector<1x128xf32>
      %37 = vector.broadcast %36 : vector<1x128xf32> to vector<16x128xf32>
      %38 = arith.addf %35, %37 : vector<16x128xf32>
      %39 = arith.truncf %38 : vector<16x128xf32> to vector<16x128xbf16>
      %c0_20 = arith.constant 0 : index
      %c0_21 = arith.constant 0 : index
      %40 = vector.load %arg8[%c0_20, %c0_21] : memref<16x128xbf16, #tpu.memory_space<vmem>>, vector<16x128xbf16>
      tpu.vector_store %arg8[%c0_20, %c0_21], %39 {strides = array<i32>} : memref<16x128xbf16, #tpu.memory_space<vmem>>, vector<16x128xbf16>,
    } else {
    }
    %c0 = arith.constant 0 : index
    %c0_1 = arith.constant 0 : index
    %3 = vector.load %arg8[%c0, %c0_1] : memref<16x128xbf16, #tpu.memory_space<vmem>>, vector<16x128xbf16>
    %c0_2 = arith.constant 0 : index
    %c0_3 = arith.constant 0 : index
    %4 = vector.load %arg5[%c0_2, %c0_3] : memref<128x256xbf16, #tpu.memory_space<vmem>>, vector<128x256xbf16>
    %cst = arith.constant dense<0.000000e+00> : vector<16x256xf32>
    %5 = tpu.matmul %3, %4, %cst {dimension_numbers = #tpu.dot_dimension_numbers<[1], [0], [0], [1], [0, 0, 1, 1], [], []>} : vector<16x128xbf16>, vector<128x256xbf16>, vector<16x256xf32> -> vector<16x256xf32>
    %c0_4 = arith.constant 0 : index
    %c0_5 = arith.constant 0 : index
    %6 = vector.load %arg6[%c0_4, %c0_5] : memref<1x256xf32, #tpu.memory_space<vmem>>, vector<1x256xf32>
    %7 = vector.broadcast %6 : vector<1x256xf32> to vector<16x256xf32>
    %8 = arith.addf %5, %7 : vector<16x256xf32>
    %cst_6 = arith.constant 0.000000e+00 : f32
    %9 = vector.broadcast %cst_6 : f32 to vector<16x256xf32>
    %10 = arith.maximumf %8, %9 : vector<16x256xf32>
    %11 = arith.truncf %10 : vector<16x256xf32> to vector<16x256xbf16>
    %c0_7 = arith.constant 0 : index
    %c0_8 = arith.constant 0 : index
    %12 = vector.load %arg7[%c0_7, %c0_8] : memref<16x256xbf16, #tpu.memory_space<vmem>>, vector<16x256xbf16>
    tpu.vector_store %arg7[%c0_7, %c0_8], %11 {strides = array<i32>} : memref<16x256xbf16, #tpu.memory_space<vmem>>, vector<16x256xbf16>,
    return
  }
  func.func @transform_0(%arg0: i32, %arg1: i32) -> (i32, i32) {
    %c0_i32 = arith.constant 0 : i32
    %c0_i32_0 = arith.constant 0 : i32
    return %arg0, %c0_i32 : i32, i32
  }
  func.func @transform_1(%arg0: i32, %arg1: i32) -> (i32, i32) {
    %c0_i32 = arith.constant 0 : i32
    %c0_i32_0 = arith.constant 0 : i32
    %c0_i32_1 = arith.constant 0 : i32
    return %c0_i32, %c0_i32_0 : i32, i32
  }
  func.func @transform_2(%arg0: i32, %arg1: i32) -> (i32, i32) {
    %c0_i32 = arith.constant 0 : i32
    %c0_i32_0 = arith.constant 0 : i32
    %c0_i32_1 = arith.constant 0 : i32
    return %c0_i32, %c0_i32_0 : i32, i32
  }
  func.func @transform_3(%arg0: i32, %arg1: i32) -> (i32, i32) {
    %c0_i32 = arith.constant 0 : i32
    %c0_i32_0 = arith.constant 0 : i32
    return %c0_i32, %arg1 : i32, i32
  }
  func.func @transform_4(%arg0: i32, %arg1: i32) -> (i32, i32) {
    %c0_i32 = arith.constant 0 : i32
    %c0_i32_0 = arith.constant 0 : i32
    return %c0_i32, %arg1 : i32, i32
  }
  func.func @transform_5(%arg0: i32, %arg1: i32) -> (i32, i32) {
    %c0_i32 = arith.constant 0 : i32
    return %arg0, %arg1 : i32, i32
  }
}

module attributes {stable_mosaic.version = 11 : i64} {
  func.func @_linear_kernel(%arg0: i32, %arg1: i32, %arg2: i32, %arg3: memref<16x256xbf16, #tpu.memory_space<vmem>>, %arg4: memref<256x128xbf16, #tpu.memory_space<vmem>>, %arg5: memref<1x128xf32, #tpu.memory_space<vmem>>, %arg6: memref<16x128xbf16, #tpu.memory_space<vmem>>, %arg7: memref<16x128xbf16, #tpu.memory_space<vmem>>, %arg8: memref<16x128xf32, #tpu.memory_space<vmem>>) attributes {dimension_semantics = [#tpu.dimension_semantics<parallel>, #tpu.dimension_semantics<parallel>, #tpu.dimension_semantics<arbitrary>], iteration_bounds = array<i64: 1, 1, 1>, scalar_prefetch = 0 : i64, scratch_operands = 1 : i64, tpu.core_type = #tpu.core_type<tc>, window_params = [{transform_indices = @transform_0, window_bounds = array<i64: 16, 256>}, {transform_indices = @transform_1, window_bounds = array<i64: 256, 128>}, {transform_indices = @transform_2, window_bounds = array<i64: 1, 128>}, {transform_indices = @transform_3, window_bounds = array<i64: 16, 128>}, {transform_indices = @transform_4, window_bounds = array<i64: 16, 128>}]} {
    %c0_i32 = arith.constant 0 : i32
    %0 = arith.cmpi eq, %arg2, %c0_i32 : i32
    %1 = arith.extui %0 : i1 to i32
    %c0_i32_0 = arith.constant 0 : i32
    %2 = arith.cmpi ne, %1, %c0_i32_0 : i32
    scf.if %2 {
      %cst_10 = arith.constant 0.000000e+00 : f32
      %12 = vector.broadcast %cst_10 : f32 to vector<16x128xf32>
      %c0_11 = arith.constant 0 : index
      %c0_12 = arith.constant 0 : index
      %13 = vector.load %arg8[%c0_11, %c0_12] : memref<16x128xf32, #tpu.memory_space<vmem>>, vector<16x128xf32>
      tpu.vector_store %arg8[%c0_11, %c0_12], %12 {strides = array<i32>} : memref<16x128xf32, #tpu.memory_space<vmem>>, vector<16x128xf32>,
    } else {
    }
    %c0 = arith.constant 0 : index
    %c0_1 = arith.constant 0 : index
    %3 = vector.load %arg8[%c0, %c0_1] : memref<16x128xf32, #tpu.memory_space<vmem>>, vector<16x128xf32>
    %c0_2 = arith.constant 0 : index
    %c0_3 = arith.constant 0 : index
    %4 = vector.load %arg3[%c0_2, %c0_3] : memref<16x256xbf16, #tpu.memory_space<vmem>>, vector<16x256xbf16>
    %c0_4 = arith.constant 0 : index
    %c0_5 = arith.constant 0 : index
    %5 = vector.load %arg4[%c0_4, %c0_5] : memref<256x128xbf16, #tpu.memory_space<vmem>>, vector<256x128xbf16>
    %cst = arith.constant dense<0.000000e+00> : vector<16x128xf32>
    %6 = tpu.matmul %4, %5, %cst {dimension_numbers = #tpu.dot_dimension_numbers<[1], [0], [0], [1], [0, 0, 1, 1], [], []>} : vector<16x256xbf16>, vector<256x128xbf16>, vector<16x128xf32> -> vector<16x128xf32>
    %7 = arith.addf %3, %6 : vector<16x128xf32>
    %c0_6 = arith.constant 0 : index
    %c0_7 = arith.constant 0 : index
    %8 = vector.load %arg8[%c0_6, %c0_7] : memref<16x128xf32, #tpu.memory_space<vmem>>, vector<16x128xf32>
    tpu.vector_store %arg8[%c0_6, %c0_7], %7 {strides = array<i32>} : memref<16x128xf32, #tpu.memory_space<vmem>>, vector<16x128xf32>,
    %c0_i32_8 = arith.constant 0 : i32
    %9 = arith.cmpi eq, %arg2, %c0_i32_8 : i32
    %10 = arith.extui %9 : i1 to i32
    %c0_i32_9 = arith.constant 0 : i32
    %11 = arith.cmpi ne, %10, %c0_i32_9 : i32
    scf.if %11 {
      %c0_10 = arith.constant 0 : index
      %c0_11 = arith.constant 0 : index
      %12 = vector.load %arg8[%c0_10, %c0_11] : memref<16x128xf32, #tpu.memory_space<vmem>>, vector<16x128xf32>
      %c0_12 = arith.constant 0 : index
      %c0_13 = arith.constant 0 : index
      %13 = vector.load %arg5[%c0_12, %c0_13] : memref<1x128xf32, #tpu.memory_space<vmem>>, vector<1x128xf32>
      %14 = vector.broadcast %13 : vector<1x128xf32> to vector<16x128xf32>
      %15 = arith.addf %12, %14 : vector<16x128xf32>
      %c0_14 = arith.constant 0 : index
      %c0_15 = arith.constant 0 : index
      %16 = vector.load %arg6[%c0_14, %c0_15] : memref<16x128xbf16, #tpu.memory_space<vmem>>, vector<16x128xbf16>
      %17 = arith.extf %16 : vector<16x128xbf16> to vector<16x128xf32>
      %18 = arith.addf %15, %17 : vector<16x128xf32>
      %19 = arith.truncf %18 : vector<16x128xf32> to vector<16x128xbf16>
      %c0_16 = arith.constant 0 : index
      %c0_17 = arith.constant 0 : index
      %20 = vector.load %arg7[%c0_16, %c0_17] : memref<16x128xbf16, #tpu.memory_space<vmem>>, vector<16x128xbf16>
      tpu.vector_store %arg7[%c0_16, %c0_17], %19 {strides = array<i32>} : memref<16x128xbf16, #tpu.memory_space<vmem>>, vector<16x128xbf16>,
    } else {
    }
    return
  }
  func.func @transform_0(%arg0: i32, %arg1: i32, %arg2: i32) -> (i32, i32) {
    %c0_i32 = arith.constant 0 : i32
    return %arg1, %arg2 : i32, i32
  }
  func.func @transform_1(%arg0: i32, %arg1: i32, %arg2: i32) -> (i32, i32) {
    %c0_i32 = arith.constant 0 : i32
    return %arg2, %arg0 : i32, i32
  }
  func.func @transform_2(%arg0: i32, %arg1: i32, %arg2: i32) -> (i32, i32) {
    %c0_i32 = arith.constant 0 : i32
    %c0_i32_0 = arith.constant 0 : i32
    return %c0_i32, %arg0 : i32, i32
  }
  func.func @transform_3(%arg0: i32, %arg1: i32, %arg2: i32) -> (i32, i32) {
    %c0_i32 = arith.constant 0 : i32
    return %arg1, %arg0 : i32, i32
  }
  func.func @transform_4(%arg0: i32, %arg1: i32, %arg2: i32) -> (i32, i32) {
    %c0_i32 = arith.constant 0 : i32
    return %arg1, %arg0 : i32, i32
  }
}

module attributes {stable_mosaic.version = 11 : i64} {
  func.func @_layernorm_kernel(%arg0: i32, %arg1: memref<16x128xbf16, #tpu.memory_space<vmem>>, %arg2: memref<1x128xf32, #tpu.memory_space<vmem>>, %arg3: memref<1x128xf32, #tpu.memory_space<vmem>>, %arg4: memref<16x128xf32, #tpu.memory_space<vmem>>) attributes {dimension_semantics = [#tpu.dimension_semantics<parallel>], iteration_bounds = array<i64: 1>, scalar_prefetch = 0 : i64, scratch_operands = 0 : i64, tpu.core_type = #tpu.core_type<tc>, window_params = [{transform_indices = @transform_0, window_bounds = array<i64: 16, 128>}, {pipeline_mode = #tpu.pipeline_mode<synchronous>, transform_indices = @transform_1, window_bounds = array<i64: 1, 128>}, {pipeline_mode = #tpu.pipeline_mode<synchronous>, transform_indices = @transform_2, window_bounds = array<i64: 1, 128>}, {transform_indices = @transform_3, window_bounds = array<i64: 16, 128>}]} {
    %c0 = arith.constant 0 : index
    %c0_0 = arith.constant 0 : index
    %0 = vector.load %arg1[%c0, %c0_0] : memref<16x128xbf16, #tpu.memory_space<vmem>>, vector<16x128xbf16>
    %1 = arith.extf %0 : vector<16x128xbf16> to vector<16x128xf32>
    %cst = arith.constant dense<0.000000e+00> : vector<16xf32>
    %2 = vector.multi_reduction <add>, %1, %cst [1] : vector<16x128xf32> to vector<16xf32>
    %3 = vector.shape_cast %2 : vector<16xf32> to vector<16x1xf32>
    %cst_1 = arith.constant 1.280000e+02 : f32
    %4 = vector.broadcast %cst_1 : f32 to vector<16x1xf32>
    %5 = arith.divf %3, %4 : vector<16x1xf32>
    %6 = vector.broadcast %5 : vector<16x1xf32> to vector<16x128xf32>
    %7 = arith.subf %1, %6 : vector<16x128xf32>
    %8 = arith.mulf %7, %7 : vector<16x128xf32>
    %cst_2 = arith.constant dense<0.000000e+00> : vector<16xf32>
    %9 = vector.multi_reduction <add>, %8, %cst_2 [1] : vector<16x128xf32> to vector<16xf32>
    %10 = vector.shape_cast %9 : vector<16xf32> to vector<16x1xf32>
    %cst_3 = arith.constant 1.280000e+02 : f32
    %11 = vector.broadcast %cst_3 : f32 to vector<16x1xf32>
    %12 = arith.divf %10, %11 : vector<16x1xf32>
    %13 = vector.broadcast %5 : vector<16x1xf32> to vector<16x128xf32>
    %14 = arith.subf %1, %13 : vector<16x128xf32>
    %cst_4 = arith.constant 9.99999974E-6 : f32
    %15 = vector.broadcast %cst_4 : f32 to vector<16x1xf32>
    %16 = arith.addf %12, %15 : vector<16x1xf32>
    %17 = math.rsqrt %16 : vector<16x1xf32>
    %18 = vector.broadcast %17 : vector<16x1xf32> to vector<16x128xf32>
    %19 = arith.mulf %14, %18 : vector<16x128xf32>
    %c0_5 = arith.constant 0 : index
    %c0_6 = arith.constant 0 : index
    %20 = vector.load %arg2[%c0_5, %c0_6] : memref<1x128xf32, #tpu.memory_space<vmem>>, vector<1x128xf32>
    %21 = vector.broadcast %20 : vector<1x128xf32> to vector<16x128xf32>
    %22 = arith.mulf %19, %21 : vector<16x128xf32>
    %c0_7 = arith.constant 0 : index
    %c0_8 = arith.constant 0 : index
    %23 = vector.load %arg3[%c0_7, %c0_8] : memref<1x128xf32, #tpu.memory_space<vmem>>, vector<1x128xf32>
    %24 = vector.broadcast %23 : vector<1x128xf32> to vector<16x128xf32>
    %25 = arith.addf %22, %24 : vector<16x128xf32>
    %c0_9 = arith.constant 0 : index
    %c0_10 = arith.constant 0 : index
    %26 = vector.load %arg4[%c0_9, %c0_10] : memref<16x128xf32, #tpu.memory_space<vmem>>, vector<16x128xf32>
    tpu.vector_store %arg4[%c0_9, %c0_10], %25 {strides = array<i32>} : memref<16x128xf32, #tpu.memory_space<vmem>>, vector<16x128xf32>,
    return
  }
  func.func @transform_0(%arg0: i32) -> (i32, i32) {
    %c0_i32 = arith.constant 0 : i32
    %c0_i32_0 = arith.constant 0 : i32
    return %arg0, %c0_i32 : i32, i32
  }
  func.func @transform_1(%arg0: i32) -> (i32, i32) {
    %c0_i32 = arith.constant 0 : i32
    %c0_i32_0 = arith.constant 0 : i32
    %c0_i32_1 = arith.constant 0 : i32
    return %c0_i32, %c0_i32_0 : i32, i32
  }
  func.func @transform_2(%arg0: i32) -> (i32, i32) {
    %c0_i32 = arith.constant 0 : i32
    %c0_i32_0 = arith.constant 0 : i32
    %c0_i32_1 = arith.constant 0 : i32
    return %c0_i32, %c0_i32_0 : i32, i32
  }
  func.func @transform_3(%arg0: i32) -> (i32, i32) {
    %c0_i32 = arith.constant 0 : i32
    %c0_i32_0 = arith.constant 0 : i32
    return %arg0, %c0_i32 : i32, i32
  }
}

module attributes {stable_mosaic.version = 11 : i64} {
  func.func @_adapter_kernel(%arg0: i32, %arg1: memref<2xi32, #tpu.memory_space<smem>>, %arg2: memref<2xi32, #tpu.memory_space<smem>>, %arg3: memref<1x8x128xbf16, #tpu.memory_space<vmem>>, %arg4: memref<1x128xf32, #tpu.memory_space<vmem>>, %arg5: memref<1x128xf32, #tpu.memory_space<vmem>>, %arg6: memref<1x128x64xbf16, #tpu.memory_space<vmem>>, %arg7: memref<1x1x64xf32, #tpu.memory_space<vmem>>, %arg8: memref<1x64x128xbf16, #tpu.memory_space<vmem>>, %arg9: memref<1x1x128xf32, #tpu.memory_space<vmem>>, %arg10: memref<1x8x128xbf16, #tpu.memory_space<vmem>>) attributes {dimension_semantics = [#tpu.dimension_semantics<parallel>], iteration_bounds = array<i64: 2>, scalar_prefetch = 2 : i64, scratch_operands = 0 : i64, tpu.core_type = #tpu.core_type<tc>, window_params = [{transform_indices = @transform_0, window_bounds = array<i64: 1, 8, 128>}, {pipeline_mode = #tpu.pipeline_mode<synchronous>, transform_indices = @transform_1, window_bounds = array<i64: 1, 128>}, {pipeline_mode = #tpu.pipeline_mode<synchronous>, transform_indices = @transform_2, window_bounds = array<i64: 1, 128>}, {transform_indices = @transform_3, window_bounds = array<i64: 1, 128, 64>}, {transform_indices = @transform_4, window_bounds = array<i64: 1, 1, 64>}, {transform_indices = @transform_5, window_bounds = array<i64: 1, 64, 128>}, {transform_indices = @transform_6, window_bounds = array<i64: 1, 1, 128>}, {transform_indices = @transform_7, window_bounds = array<i64: 1, 8, 128>}]} {
    %c0 = arith.constant 0 : index
    %c0_0 = arith.constant 0 : index
    %c0_1 = arith.constant 0 : index
    %0 = vector.load %arg3[%c0, %c0_0, %c0_1] : memref<1x8x128xbf16, #tpu.memory_space<vmem>>, vector<1x8x128xbf16>
    %1 = vector.shape_cast %0 : vector<1x8x128xbf16> to vector<8x128xbf16>
    %2 = arith.extf %1 : vector<8x128xbf16> to vector<8x128xf32>
    %cst = arith.constant dense<0.000000e+00> : vector<8xf32>
    %3 = vector.multi_reduction <add>, %2, %cst [1] : vector<8x128xf32> to vector<8xf32>
    %4 = vector.shape_cast %3 : vector<8xf32> to vector<8x1xf32>
    %cst_2 = arith.constant 1.280000e+02 : f32
    %5 = vector.broadcast %cst_2 : f32 to vector<8x1xf32>
    %6 = arith.divf %4, %5 : vector<8x1xf32>
    %7 = vector.broadcast %6 : vector<8x1xf32> to vector<8x128xf32>
    %8 = arith.subf %2, %7 : vector<8x128xf32>
    %9 = arith.mulf %8, %8 : vector<8x128xf32>
    %cst_3 = arith.constant dense<0.000000e+00> : vector<8xf32>
    %10 = vector.multi_reduction <add>, %9, %cst_3 [1] : vector<8x128xf32> to vector<8xf32>
    %11 = vector.shape_cast %10 : vector<8xf32> to vector<8x1xf32>
    %cst_4 = arith.constant 1.280000e+02 : f32
    %12 = vector.broadcast %cst_4 : f32 to vector<8x1xf32>
    %13 = arith.divf %11, %12 : vector<8x1xf32>
    %14 = vector.broadcast %6 : vector<8x1xf32> to vector<8x128xf32>
    %15 = arith.subf %2, %14 : vector<8x128xf32>
    %cst_5 = arith.constant 9.99999974E-6 : f32
    %16 = vector.broadcast %cst_5 : f32 to vector<8x1xf32>
    %17 = arith.addf %13, %16 : vector<8x1xf32>
    %18 = math.rsqrt %17 : vector<8x1xf32>
    %19 = vector.broadcast %18 : vector<8x1xf32> to vector<8x128xf32>
    %20 = arith.mulf %15, %19 : vector<8x128xf32>
    %c0_6 = arith.constant 0 : index
    %c0_7 = arith.constant 0 : index
    %21 = vector.load %arg4[%c0_6, %c0_7] : memref<1x128xf32, #tpu.memory_space<vmem>>, vector<1x128xf32>
    %22 = vector.broadcast %21 : vector<1x128xf32> to vector<8x128xf32>
    %23 = arith.mulf %20, %22 : vector<8x128xf32>
    %c0_8 = arith.constant 0 : index
    %c0_9 = arith.constant 0 : index
    %24 = vector.load %arg5[%c0_8, %c0_9] : memref<1x128xf32, #tpu.memory_space<vmem>>, vector<1x128xf32>
    %25 = vector.broadcast %24 : vector<1x128xf32> to vector<8x128xf32>
    %26 = arith.addf %23, %25 : vector<8x128xf32>
    %27 = arith.truncf %26 : vector<8x128xf32> to vector<8x128xbf16>
    %c0_10 = arith.constant 0 : index
    %c0_11 = arith.constant 0 : index
    %c0_12 = arith.constant 0 : index
    %28 = vector.load %arg6[%c0_10, %c0_11, %c0_12] : memref<1x128x64xbf16, #tpu.memory_space<vmem>>, vector<1x128x64xbf16>
    %29 = vector.shape_cast %28 : vector<1x128x64xbf16> to vector<128x64xbf16>
    %cst_13 = arith.constant dense<0.000000e+00> : vector<8x64xf32>
    %30 = tpu.matmul %27, %29, %cst_13 {dimension_numbers = #tpu.dot_dimension_numbers<[1], [0], [0], [1], [0, 0, 1, 1], [], []>} : vector<8x128xbf16>, vector<128x64xbf16>, vector<8x64xf32> -> vector<8x64xf32>
    %c0_14 = arith.constant 0 : index
    %c0_15 = arith.constant 0 : index
    %c0_16 = arith.constant 0 : index
    %31 = vector.load %arg7[%c0_14, %c0_15, %c0_16] : memref<1x1x64xf32, #tpu.memory_space<vmem>>, vector<1x1x64xf32>
    %32 = vector.shape_cast %31 : vector<1x1x64xf32> to vector<1x64xf32>
    %33 = vector.broadcast %32 : vector<1x64xf32> to vector<8x64xf32>
    %34 = arith.addf %30, %33 : vector<8x64xf32>
    %cst_17 = arith.constant 0.000000e+00 : f32
    %35 = vector.broadcast %cst_17 : f32 to vector<8x64xf32>
    %36 = arith.maximumf %34, %35 : vector<8x64xf32>
    %37 = arith.truncf %36 : vector<8x64xf32> to vector<8x64xbf16>
    %c0_18 = arith.constant 0 : index
    %c0_19 = arith.constant 0 : index
    %c0_20 = arith.constant 0 : index
    %38 = vector.load %arg8[%c0_18, %c0_19, %c0_20] : memref<1x64x128xbf16, #tpu.memory_space<vmem>>, vector<1x64x128xbf16>
    %39 = vector.shape_cast %38 : vector<1x64x128xbf16> to vector<64x128xbf16>
    %cst_21 = arith.constant dense<0.000000e+00> : vector<8x128xf32>
    %40 = tpu.matmul %37, %39, %cst_21 {dimension_numbers = #tpu.dot_dimension_numbers<[1], [0], [0], [1], [0, 0, 1, 1], [], []>} : vector<8x64xbf16>, vector<64x128xbf16>, vector<8x128xf32> -> vector<8x128xf32>
    %c0_22 = arith.constant 0 : index
    %c0_23 = arith.constant 0 : index
    %c0_24 = arith.constant 0 : index
    %41 = vector.load %arg9[%c0_22, %c0_23, %c0_24] : memref<1x1x128xf32, #tpu.memory_space<vmem>>, vector<1x1x128xf32>
    %42 = vector.shape_cast %41 : vector<1x1x128xf32> to vector<1x128xf32>
    %43 = vector.broadcast %42 : vector<1x128xf32> to vector<8x128xf32>
    %44 = arith.addf %40, %43 : vector<8x128xf32>
    %45 = arith.index_cast %arg0 : i32 to index
    %46 = memref.load %arg2[%45] : memref<2xi32, #tpu.memory_space<smem>>
    %47 = arith.sitofp %46 : i32 to f32
    %48 = vector.broadcast %47 : f32 to vector<8x128xf32>
    %49 = arith.mulf %44, %48 : vector<8x128xf32>
    %50 = arith.addf %2, %49 : vector<8x128xf32>
    %51 = arith.truncf %50 : vector<8x128xf32> to vector<8x128xbf16>
    %c0_25 = arith.constant 0 : index
    %c0_26 = arith.constant 0 : index
    %c0_27 = arith.constant 0 : index
    %52 = vector.load %arg10[%c0_25, %c0_26, %c0_27] : memref<1x8x128xbf16, #tpu.memory_space<vmem>>, vector<1x8x128xbf16>
    %53 = vector.shape_cast %52 : vector<1x8x128xbf16> to vector<8x128xbf16>
    %54 = vector.shape_cast %51 : vector<8x128xbf16> to vector<1x8x128xbf16>
    tpu.vector_store %arg10[%c0_25, %c0_26, %c0_27], %54 {strides = array<i32>} : memref<1x8x128xbf16, #tpu.memory_space<vmem>>, vector<1x8x128xbf16>,
    return
  }
  func.func @transform_0(%arg0: i32, %arg1: memref<2xi32, #tpu.memory_space<smem>>, %arg2: memref<2xi32, #tpu.memory_space<smem>>) -> (i32, i32, i32) {
    %c0_i32 = arith.constant 0 : i32
    %c0_i32_0 = arith.constant 0 : i32
    %c0_i32_1 = arith.constant 0 : i32
    return %arg0, %c0_i32, %c0_i32_0 : i32, i32, i32
  }
  func.func @transform_1(%arg0: i32, %arg1: memref<2xi32, #tpu.memory_space<smem>>, %arg2: memref<2xi32, #tpu.memory_space<smem>>) -> (i32, i32) {
    %c0_i32 = arith.constant 0 : i32
    %c0_i32_0 = arith.constant 0 : i32
    %c0_i32_1 = arith.constant 0 : i32
    return %c0_i32, %c0_i32_0 : i32, i32
  }
  func.func @transform_2(%arg0: i32, %arg1: memref<2xi32, #tpu.memory_space<smem>>, %arg2: memref<2xi32, #tpu.memory_space<smem>>) -> (i32, i32) {
    %c0_i32 = arith.constant 0 : i32
    %c0_i32_0 = arith.constant 0 : i32
    %c0_i32_1 = arith.constant 0 : i32
    return %c0_i32, %c0_i32_0 : i32, i32
  }
  func.func @transform_3(%arg0: i32, %arg1: memref<2xi32, #tpu.memory_space<smem>>, %arg2: memref<2xi32, #tpu.memory_space<smem>>) -> (i32, i32, i32) {
    %0 = arith.index_cast %arg0 : i32 to index
    %1 = memref.load %arg1[%0] : memref<2xi32, #tpu.memory_space<smem>>
    %c0_i32 = arith.constant 0 : i32
    %c0_i32_0 = arith.constant 0 : i32
    %c0_i32_1 = arith.constant 0 : i32
    return %1, %c0_i32, %c0_i32_0 : i32, i32, i32
  }
  func.func @transform_4(%arg0: i32, %arg1: memref<2xi32, #tpu.memory_space<smem>>, %arg2: memref<2xi32, #tpu.memory_space<smem>>) -> (i32, i32, i32) {
    %0 = arith.index_cast %arg0 : i32 to index
    %1 = memref.load %arg1[%0] : memref<2xi32, #tpu.memory_space<smem>>
    %c0_i32 = arith.constant 0 : i32
    %c0_i32_0 = arith.constant 0 : i32
    %c0_i32_1 = arith.constant 0 : i32
    return %1, %c0_i32, %c0_i32_0 : i32, i32, i32
  }
  func.func @transform_5(%arg0: i32, %arg1: memref<2xi32, #tpu.memory_space<smem>>, %arg2: memref<2xi32, #tpu.memory_space<smem>>) -> (i32, i32, i32) {
    %0 = arith.index_cast %arg0 : i32 to index
    %1 = memref.load %arg1[%0] : memref<2xi32, #tpu.memory_space<smem>>
    %c0_i32 = arith.constant 0 : i32
    %c0_i32_0 = arith.constant 0 : i32
    %c0_i32_1 = arith.constant 0 : i32
    return %1, %c0_i32, %c0_i32_0 : i32, i32, i32
  }
  func.func @transform_6(%arg0: i32, %arg1: memref<2xi32, #tpu.memory_space<smem>>, %arg2: memref<2xi32, #tpu.memory_space<smem>>) -> (i32, i32, i32) {
    %0 = arith.index_cast %arg0 : i32 to index
    %1 = memref.load %arg1[%0] : memref<2xi32, #tpu.memory_space<smem>>
    %c0_i32 = arith.constant 0 : i32
    %c0_i32_0 = arith.constant 0 : i32
    %c0_i32_1 = arith.constant 0 : i32
    return %1, %c0_i32, %c0_i32_0 : i32, i32, i32
  }
  func.func @transform_7(%arg0: i32, %arg1: memref<2xi32, #tpu.memory_space<smem>>, %arg2: memref<2xi32, #tpu.memory_space<smem>>) -> (i32, i32, i32) {
    %c0_i32 = arith.constant 0 : i32
    %c0_i32_0 = arith.constant 0 : i32
    %c0_i32_1 = arith.constant 0 : i32
    return %arg0, %c0_i32, %c0_i32_0 : i32, i32, i32
  }
}

module attributes {stable_mosaic.version = 11 : i64} {
  func.func @_ln_linear_kernel(%arg0: i32, %arg1: i32, %arg2: memref<16x128xbf16, #tpu.memory_space<vmem>>, %arg3: memref<1x128xf32, #tpu.memory_space<vmem>>, %arg4: memref<1x128xf32, #tpu.memory_space<vmem>>, %arg5: memref<128x384xbf16, #tpu.memory_space<vmem>>, %arg6: memref<1x384xf32, #tpu.memory_space<vmem>>, %arg7: memref<16x384xbf16, #tpu.memory_space<vmem>>, %arg8: memref<16x128xbf16, #tpu.memory_space<vmem>>) attributes {dimension_semantics = [#tpu.dimension_semantics<parallel>, #tpu.dimension_semantics<arbitrary>], iteration_bounds = array<i64: 1, 1>, scalar_prefetch = 0 : i64, scratch_operands = 1 : i64, tpu.core_type = #tpu.core_type<tc>, window_params = [{transform_indices = @transform_0, window_bounds = array<i64: 16, 128>}, {pipeline_mode = #tpu.pipeline_mode<synchronous>, transform_indices = @transform_1, window_bounds = array<i64: 1, 128>}, {pipeline_mode = #tpu.pipeline_mode<synchronous>, transform_indices = @transform_2, window_bounds = array<i64: 1, 128>}, {transform_indices = @transform_3, window_bounds = array<i64: 128, 384>}, {transform_indices = @transform_4, window_bounds = array<i64: 1, 384>}, {transform_indices = @transform_5, window_bounds = array<i64: 16, 384>}]} {
    %c0_i32 = arith.constant 0 : i32
    %0 = arith.cmpi eq, %arg1, %c0_i32 : i32
    %1 = arith.extui %0 : i1 to i32
    %c0_i32_0 = arith.constant 0 : i32
    %2 = arith.cmpi ne, %1, %c0_i32_0 : i32
    scf.if %2 {
      %c0_8 = arith.constant 0 : index
      %c0_9 = arith.constant 0 : index
      %11 = vector.load %arg2[%c0_8, %c0_9] : memref<16x128xbf16, #tpu.memory_space<vmem>>, vector<16x128xbf16>
      %12 = arith.extf %11 : vector<16x128xbf16> to vector<16x128xf32>
      %cst_10 = arith.constant dense<0.000000e+00> : vector<16xf32>
      %13 = vector.multi_reduction <add>, %12, %cst_10 [1] : vector<16x128xf32> to vector<16xf32>
      %14 = vector.shape_cast %13 : vector<16xf32> to vector<16x1xf32>
      %cst_11 = arith.constant 1.280000e+02 : f32
      %15 = vector.broadcast %cst_11 : f32 to vector<16x1xf32>
      %16 = arith.divf %14, %15 : vector<16x1xf32>
      %17 = vector.broadcast %16 : vector<16x1xf32> to vector<16x128xf32>
      %18 = arith.subf %12, %17 : vector<16x128xf32>
      %19 = arith.mulf %18, %18 : vector<16x128xf32>
      %cst_12 = arith.constant dense<0.000000e+00> : vector<16xf32>
      %20 = vector.multi_reduction <add>, %19, %cst_12 [1] : vector<16x128xf32> to vector<16xf32>
      %21 = vector.shape_cast %20 : vector<16xf32> to vector<16x1xf32>
      %cst_13 = arith.constant 1.280000e+02 : f32
      %22 = vector.broadcast %cst_13 : f32 to vector<16x1xf32>
      %23 = arith.divf %21, %22 : vector<16x1xf32>
      %24 = vector.broadcast %16 : vector<16x1xf32> to vector<16x128xf32>
      %25 = arith.subf %12, %24 : vector<16x128xf32>
      %cst_14 = arith.constant 9.99999974E-6 : f32
      %26 = vector.broadcast %cst_14 : f32 to vector<16x1xf32>
      %27 = arith.addf %23, %26 : vector<16x1xf32>
      %28 = math.rsqrt %27 : vector<16x1xf32>
      %29 = vector.broadcast %28 : vector<16x1xf32> to vector<16x128xf32>
      %30 = arith.mulf %25, %29 : vector<16x128xf32>
      %c0_15 = arith.constant 0 : index
      %c0_16 = arith.constant 0 : index
      %31 = vector.load %arg3[%c0_15, %c0_16] : memref<1x128xf32, #tpu.memory_space<vmem>>, vector<1x128xf32>
      %32 = vector.broadcast %31 : vector<1x128xf32> to vector<16x128xf32>
      %33 = arith.mulf %30, %32 : vector<16x128xf32>
      %c0_17 = arith.constant 0 : index
      %c0_18 = arith.constant 0 : index
      %34 = vector.load %arg4[%c0_17, %c0_18] : memref<1x128xf32, #tpu.memory_space<vmem>>, vector<1x128xf32>
      %35 = vector.broadcast %34 : vector<1x128xf32> to vector<16x128xf32>
      %36 = arith.addf %33, %35 : vector<16x128xf32>
      %37 = arith.truncf %36 : vector<16x128xf32> to vector<16x128xbf16>
      %c0_19 = arith.constant 0 : index
      %c0_20 = arith.constant 0 : index
      %38 = vector.load %arg8[%c0_19, %c0_20] : memref<16x128xbf16, #tpu.memory_space<vmem>>, vector<16x128xbf16>
      tpu.vector_store %arg8[%c0_19, %c0_20], %37 {strides = array<i32>} : memref<16x128xbf16, #tpu.memory_space<vmem>>, vector<16x128xbf16>,
    } else {
    }
    %c0 = arith.constant 0 : index
    %c0_1 = arith.constant 0 : index
    %3 = vector.load %arg8[%c0, %c0_1] : memref<16x128xbf16, #tpu.memory_space<vmem>>, vector<16x128xbf16>
    %c0_2 = arith.constant 0 : index
    %c0_3 = arith.constant 0 : index
    %4 = vector.load %arg5[%c0_2, %c0_3] : memref<128x384xbf16, #tpu.memory_space<vmem>>, vector<128x384xbf16>
    %cst = arith.constant dense<0.000000e+00> : vector<16x384xf32>
    %5 = tpu.matmul %3, %4, %cst {dimension_numbers = #tpu.dot_dimension_numbers<[1], [0], [0], [1], [0, 0, 1, 1], [], []>} : vector<16x128xbf16>, vector<128x384xbf16>, vector<16x384xf32> -> vector<16x384xf32>
    %c0_4 = arith.constant 0 : index
    %c0_5 = arith.constant 0 : index
    %6 = vector.load %arg6[%c0_4, %c0_5] : memref<1x384xf32, #tpu.memory_space<vmem>>, vector<1x384xf32>
    %7 = vector.broadcast %6 : vector<1x384xf32> to vector<16x384xf32>
    %8 = arith.addf %5, %7 : vector<16x384xf32>
    %9 = arith.truncf %8 : vector<16x384xf32> to vector<16x384xbf16>
    %c0_6 = arith.constant 0 : index
    %c0_7 = arith.constant 0 : index
    %10 = vector.load %arg7[%c0_6, %c0_7] : memref<16x384xbf16, #tpu.memory_space<vmem>>, vector<16x384xbf16>
    tpu.vector_store %arg7[%c0_6, %c0_7], %9 {strides = array<i32>} : memref<16x384xbf16, #tpu.memory_space<vmem>>, vector<16x384xbf16>,
    return
  }
  func.func @transform_0(%arg0: i32, %arg1: i32) -> (i32, i32) {
    %c0_i32 = arith.constant 0 : i32
    %c0_i32_0 = arith.constant 0 : i32
    return %arg0, %c0_i32 : i32, i32
  }
  func.func @transform_1(%arg0: i32, %arg1: i32) -> (i32, i32) {
    %c0_i32 = arith.constant 0 : i32
    %c0_i32_0 = arith.constant 0 : i32
    %c0_i32_1 = arith.constant 0 : i32
    return %c0_i32, %c0_i32_0 : i32, i32
  }
  func.func @transform_2(%arg0: i32, %arg1: i32) -> (i32, i32) {
    %c0_i32 = arith.constant 0 : i32
    %c0_i32_0 = arith.constant 0 : i32
    %c0_i32_1 = arith.constant 0 : i32
    return %c0_i32, %c0_i32_0 : i32, i32
  }
  func.func @transform_3(%arg0: i32, %arg1: i32) -> (i32, i32) {
    %c0_i32 = arith.constant 0 : i32
    %c0_i32_0 = arith.constant 0 : i32
    return %c0_i32, %arg1 : i32, i32
  }
  func.func @transform_4(%arg0: i32, %arg1: i32) -> (i32, i32) {
    %c0_i32 = arith.constant 0 : i32
    %c0_i32_0 = arith.constant 0 : i32
    return %c0_i32, %arg1 : i32, i32
  }
  func.func @transform_5(%arg0: i32, %arg1: i32) -> (i32, i32) {
    %c0_i32 = arith.constant 0 : i32
    return %arg0, %arg1 : i32, i32
  }
}

</mosaic_0001>

<bundles_post_ra>
// kernel: transformer_decoder_forward.19
= control target key start
LH: loop header
LB: loop body
LE: loop exit
PB: predicated region body
PF: predicated region fallthrough
CT: control target
= control target key end

     0   :  { %v292_v12 = vmov 0.0   ;;  %vm293_vm0 = vmmov 0   ;;  %s363_s0 = inlined_call_operand.vmem [shape: bf16[16,128], index: 0, kind: input, shape index: {}]   ;;  %s364_s3 = inlined_call_operand.vmem [shape: bf16[128,128], index: 3, kind: input, shape index: {}]   ;;  %s365_s1 = inlined_call_operand.vmem [shape: f32[1,128], index: 1, kind: input, shape index: {}]   ;;  %s366_s2 = inlined_call_operand.vmem [shape: f32[1,128], index: 2, kind: input, shape index: {}, may-alias: {2,4}]   ;;  %s367_s4 = inlined_call_operand.vmem [shape: f32[1,128], index: 4, kind: input, shape index: {}, may-alias: {2,4}]   ;;  %s368_s5 = inlined_call_operand.vmem [shape: bf16[16,128], index: 5, kind: output, shape index: {}]  }
   0x1   :  { %v235_v0 = vld [vmem:[%s363_s0] sm:$0xff]   ;;  %v279_v11 = vld [vmem:[%s364_s3 + $0x38] sm:$0xff]   ;;  %257 = vmatprep.subr.bf16.mxu0 %v292_v12  ;;  %v280_v13 = vld [vmem:[%s364_s3 + $0x30] sm:$0xff]   ;;  %273 = vmatprep.mubr.msk.bf16.mxu0 %vm293_vm0, %v292_v12 }
   0x2   :  { %v236_v1 = vunpack.c.l.bf16 %v235_v0  ;;  %v237_v2 = vunpack.c.h.bf16 %v235_v0  ;;  %258 = vmatpush3.bf16.msra.mxu0 %v279_v11  ;;  %v281_v14 = vld [vmem:[%s364_s3 + $0x28] sm:$0xff]   ;;  %v282_v15 = vld [vmem:[%s364_s3 + $0x20] sm:$0xff]   ;;  %v283_v16 = vld [vmem:[%s364_s3 + $0x18] sm:$0xff]  }
   0x3   :  { %259 = vmatprep.subr.bf16.mxu0 %v292_v12  ;;  %v284_v17 = vld [vmem:[%s364_s3 + $0x10] sm:$0xff]   ;;  %v285_v18 = vld [vmem:[%s364_s3 + $0x8] sm:$0xff]   ;;  %v286_v19 = vld [vmem:[%s364_s3] sm:$0xff]  }
   0x4   :  { %29 = vadd.xlane.f32.xlu0 %v236_v1  ;;  %v214_v28 = vld [vmem:[%s365_s1] ss:$0 sm:$0xff] }
   0x5   :  { %v215_v32 = vld [vmem:[%s366_s2] ss:$0 sm:$0xff] }
   0x6   :  { %260 = vmatpush3.bf16.msra.mxu0 %v280_v13  ;;  %v218_v39 = vld [vmem:[%s367_s4] ss:$0 sm:$0xff] }
   0x7   :  { %261 = vmatprep.subr.bf16.mxu0 %v292_v12 }
   0x8   :  { %31 = vadd.xlane.f32.xlu0 %v237_v2 }
   0xa   :  { %262 = vmatpush3.bf16.msra.mxu0 %v281_v14 }
   0xb   :  { %263 = vmatprep.subr.bf16.mxu0 %v292_v12 }
   0xe   :  { %264 = vmatpush3.bf16.msra.mxu0 %v282_v15 }
   0xf   :  { %265 = vmatprep.subr.bf16.mxu0 %v292_v12 }
  0x12   :  { %266 = vmatpush3.bf16.msra.mxu0 %v283_v16 }
  0x13   :  { %267 = vmatprep.subr.bf16.mxu0 %v292_v12 }
  0x16   :  { %268 = vmatpush3.bf16.msra.mxu0 %v284_v17 }
  0x17   :  { %269 = vmatprep.subr.bf16.mxu0 %v292_v12 }
  0x1a   :  { %270 = vmatpush3.bf16.msra.mxu0 %v285_v18 }
  0x1b   :  { %271 = vmatprep.subr.bf16.mxu0 %v292_v12 }
  0x1e   :  { %272 = vmatpush3.bf16.msra.mxu0 %v286_v19 }
  0x8d   :  { %v30_v3 = vpop.xlane.xlu0 %29 }
  0x8e   :  { %v34_v4 = vmul.f32 0.0078125, %v30_v3 }
  0x90   :  { %v36_v5 = vsub.f32 %v236_v1, %v34_v4 }
  0x91   :  { %v32_v6 = vpop.xlane.xlu0 %31 }
  0x92   :  { %v35_v7 = vmul.f32 0.0078125, %v32_v6  ;;  %v38_v8 = vmul.f32 %v36_v5, %v36_v5 }
  0x94   :  { %v37_v9 = vsub.f32 %v237_v2, %v35_v7  ;;  %40 = vadd.xlane.f32.xlu1 %v38_v8 }
  0x96   :  { %v39_v10 = vmul.f32 %v37_v9, %v37_v9 }
  0x98   :  { %42 = vadd.xlane.f32.xlu1 %v39_v10 }
 0x11d   :  { %v41_v20 = vpop.xlane.xlu1 %40 }
 0x11e   :  { %v44_v21 = vmul.f32 0.0078125, %v41_v20 }
 0x120   :  { %v46_v22 = vadd.f32 1e-05, %v44_v21 }
 0x121   :  { %v43_v23 = vpop.xlane.xlu1 %42 }
 0x122   :  { %288 = vrsqrt.f32 %v46_v22  ;;  %v45_v24 = vmul.f32 0.0078125, %v43_v23 }
 0x124   :  { %v47_v25 = vadd.f32 1e-05, %v45_v24 }
 0x126   :  { %290 = vrsqrt.f32 %v47_v25 }
 0x12f   :  { %v289_v26 = vpop.eup %288 }
 0x130   :  { %v50_v27 = vmul.f32 %v289_v26, %v36_v5 }
 0x132   :  { %v59_v30 = vmul.f32 %v214_v28, %v50_v27 }
 0x133   :  { %v291_v29 = vpop.eup %290 }
 0x134   :  { %v51_v31 = vmul.f32 %v291_v29, %v37_v9  ;;  %v68_v34 = vadd.f32 %v215_v32, %v59_v30 }
 0x136   :  { %v60_v33 = vmul.f32 %v214_v28, %v51_v31 }
 0x138   :  { %v69_v35 = vadd.f32 %v215_v32, %v60_v33 }
 0x13a   :  { %v241_v36 = vpack.c.bf16 %v69_v35, %v68_v34 }
 0x13c   :  { %242 = vst [vmem:[#allocation2] sm:$0xff] %v241_v36  }
 0x143   :  { %v287_v37 = vld [vmem:[#allocation2] sm:$0xff]  }
 0x144   :  { %274 = vmatmul.mubr.bf16.vlgmr.msra.gmra.mxu0 %v287_v37 }
 0x204   :  { %v193_v38 = vpop.f32.mrf.mxu0 }
 0x205   :  { %v194_v42 = vadd.f32 %v218_v39, %v193_v38 }
 0x206   :  { %v275_v40 = vpop.f32.mrf.mxu0 }
 0x208   :  { %v196_v41 = vpop.f32.mrf.mxu0 }
 0x209   :  { %v197_v43 = vadd.f32 %v218_v39, %v196_v41 }
 0x20a   :  { %v276_v44 = vpop.f32.mrf.mxu0 }
 0x20b   :  { %v246_v45 = vpack.c.bf16 %v197_v43, %v194_v42 }
 0x20d   :  { %247 = vst [vmem:[%s368_s5] sm:$0xff] %v246_v45  }

// kernel: transformer_decoder_forward.20
= control target key start
LH: loop header
LB: loop body
LE: loop exit
PB: predicated region body
PF: predicated region fallthrough
CT: control target
= control target key end

     0   :  { %v270_v1 = vmov 0   ;;  %v191_v18 = vlaneseq  ;;  %s351_s1 = inlined_call_operand.vmem [shape: bf16[128,256], index: 1, kind: input, shape index: {}]   ;;  %s352_s0 = inlined_call_operand.vmem [shape: bf16[16,128], index: 0, kind: input, shape index: {}]   ;;  %s353_s2 = inlined_call_operand.vmem [shape: f32[1,256], index: 2, kind: input, shape index: {}]   ;;  %s354_s3 = inlined_call_operand.vmem [shape: bf16[16,256], index: 3, kind: output, shape index: {}]  }
   0x1   :  { %v245_v0 = vld [vmem:[%s351_s1 + $0x74] ss:$8 sps:$4 sm:$0xff]   ;;  %163 = vmatprep.mubr.bf16.mxu0 %v270_v1  ;;  %v247_v2 = vld [vmem:[%s351_s1 + $0x70] ss:$8 sps:$4 sm:$0xff]   ;;  %v248_v3 = vld [vmem:[%s351_s1 + $0x64] ss:$8 sps:$4 sm:$0xff]  }
   0x2   :  { %131 = vmatprep.subr.bf16.mxu0 %v245_v0  ;;  %v250_v4 = vld [vmem:[%s351_s1 + $0x60] ss:$8 sps:$4 sm:$0xff]   ;;  %v251_v5 = vld [vmem:[%s351_s1 + $0x54] ss:$8 sps:$4 sm:$0xff]   ;;  %v253_v6 = vld [vmem:[%s351_s1 + $0x50] ss:$8 sps:$4 sm:$0xff]  }
   0x3   :  { %132 = vmatpush1.bf16.msra.mxu0 %v247_v2  ;;  %v254_v7 = vld [vmem:[%s351_s1 + $0x44] ss:$8 sps:$4 sm:$0xff]   ;;  %v256_v8 = vld [vmem:[%s351_s1 + $0x40] ss:$8 sps:$4 sm:$0xff]   ;;  %v257_v9 = vld [vmem:[%s351_s1 + $0x34] ss:$8 sps:$4 sm:$0xff]  }
   0x4   :  { %133 = vmatprep.subr.bf16.mxu0 %v248_v3  ;;  %v259_v10 = vld [vmem:[%s351_s1 + $0x30] ss:$8 sps:$4 sm:$0xff]   ;;  %v260_v11 = vld [vmem:[%s351_s1 + $0x24] ss:$8 sps:$4 sm:$0xff]   ;;  %v262_v12 = vld [vmem:[%s351_s1 + $0x20] ss:$8 sps:$4 sm:$0xff]  }
   0x5   :  { %v263_v13 = vld [vmem:[%s351_s1 + $0x14] ss:$8 sps:$4 sm:$0xff]   ;;  %v265_v14 = vld [vmem:[%s351_s1 + $0x10] ss:$8 sps:$4 sm:$0xff]   ;;  %v266_v15 = vld [vmem:[%s351_s1 + $0x4] ss:$8 sps:$4 sm:$0xff]  }
   0x6   :  { %v268_v16 = vld [vmem:[%s351_s1] ss:$8 sps:$4 sm:$0xff]   ;;  %v192_v19 = vshrl.u32 %v191_v18, 7 }
   0x7   :  { %134 = vmatpush1.bf16.msra.mxu0 %v250_v4  ;;  %v269_v17 = vld [vmem:[%s352_s0] sm:$0xff]  }
   0x8   :  { %135 = vmatprep.subr.bf16.mxu0 %v251_v5  ;;  %v193_v20 = vsub.s32 0, %v192_v19  ;;  %v197_v21 = vsub.s32 1, %v192_v19  ;;  %v189_v22 = vld [vmem:[%s353_s2] sm:$0x3] }
   0xa   :  { %v194_v23 = vrot.slane %v189_v22, %v193_v20  ;;  %v198_v24 = vrot.slane %v189_v22, %v197_v21 }
   0xb   :  { %136 = vmatpush1.bf16.msra.mxu0 %v253_v6 }
   0xc   :  { %137 = vmatprep.subr.bf16.mxu0 %v254_v7 }
   0xf   :  { %138 = vmatpush1.bf16.msra.mxu0 %v256_v8 }
  0x10   :  { %139 = vmatprep.subr.bf16.mxu0 %v257_v9 }
  0x13   :  { %140 = vmatpush1.bf16.msra.mxu0 %v259_v10 }
  0x14   :  { %141 = vmatprep.subr.bf16.mxu0 %v260_v11 }
  0x17   :  { %142 = vmatpush1.bf16.msra.mxu0 %v262_v12 }
  0x18   :  { %143 = vmatprep.subr.bf16.mxu0 %v263_v13 }
  0x1b   :  { %144 = vmatpush1.bf16.msra.mxu0 %v265_v14 }
  0x1c   :  { %145 = vmatprep.subr.bf16.mxu0 %v266_v15 }
  0x1f   :  { %146 = vmatpush1.bf16.msra.mxu0 %v268_v16 }
  0x22   :  { %164 = vmatmul.mubr.bf16.vlgmr.msra.gmra.mxu0 %v269_v17 }
  0xe2   :  { %v165_v25 = vpop.f32.mrf.mxu0 }
  0xe3   :  { %v201_v27 = vadd.f32 %v194_v23, %v165_v25 }
  0xe4   :  { %v167_v26 = vpop.f32.mrf.mxu0 }
  0xe5   :  { %v202_v28 = vadd.f32 %v198_v24, %v167_v26 }
  0xe6   :  { %v169_v29 = vpop.f32.mrf.mxu0 }
  0xe7   :  { %v242_v30 = vpack.c.bf16 %v202_v28, %v201_v27  ;;  %v203_v32 = vadd.f32 %v194_v23, %v169_v29 }
  0xe8   :  { %v171_v31 = vpop.f32.mrf.mxu0 }
  0xe9   :  { %217 = vst [vmem:[%s354_s3] sm:$0xff] %v242_v30  ;;  %v204_v33 = vadd.f32 %v198_v24, %v171_v31 }
  0xeb   :  { %v243_v34 = vpack.c.bf16 %v204_v33, %v203_v32 }
  0xed   :  { %218 = vst [vmem:[%s354_s3 + $0x8] sm:$0xff] %v243_v34 }

// kernel: transformer_decoder_forward.17
= control target key start
LH: loop header
LB: loop body
LE: loop exit
PB: predicated region body
PF: predicated region fallthrough
CT: control target
= control target key end

     0   :  { %10 = vsyncpa [#allocation4], 0  ;;  %s534_s18 = smov [#allocation3]   ;;  %s607_s0 = inlined_call_operand.vmem [shape: bf16[16,128], index: 0, kind: input, shape index: {}]   ;;  %s608_s1 = inlined_call_operand.vmem [shape: f32[1,128], index: 1, kind: input, shape index: {}]   ;;  %s609_s2 = inlined_call_operand.vmem [shape: f32[1,128], index: 2, kind: input, shape index: {}]   ;;  %s610_s3 = inlined_call_operand.hbm [shape: bf16[128,384], index: 3, kind: input, shape index: {}]   ;;  %s611_s4 = inlined_call_operand.vmem [shape: f32[1,384], index: 4, kind: input, shape index: {}]   ;;  %s612_s5 = inlined_call_operand.vmem [shape: bf16[16,384], index: 5, kind: output, shape index: {}]  }
   0x1   :  { %s22_s19 = sshll.u32 %s534_s18, 4  ;;  %s23_s19 = int_to_ptr.vmem [resolvable:$true] %s22_s19 }
   0x2   :  { %s520_s20 = scalar_lea.vmem %s23_s19, 3072  ;;  %p525_p1 = scmp.lt.s32.totalorder %s23_s19, %s23_s19 }
   0x3   :  { %p521_p0 = scmp.ne.s32.totalorder %s23_s19, %s520_s20  ;;  %p526_p2 = scmp.lt.s32.totalorder %s520_s20, %s520_s20 }
   0x5   :  { %p527_p3 = por %p526_p2, %p525_p1 }
   0x7   :  { %p528_p4 = pnand %p527_p3, %p521_p0 }
   0x9   :  { %531 = shalt.err (!%p528_p4)
}
   0xa   :  { %s535_s21 = smov 192   ;;  %s536_s22 = smov 12  }
   0xb   :  { %28 = dma.hbm_to_vmem [thread:$0]  %s610_s3, 3072, %s23_s19, [#allocation4], %s535_s21, %s535_s21, %s536_s22  }
   0xc   :  { %532 = dma.done.wait [#allocation4], 3072  }
   0xd   :  { %533 = vsyncadd [#allocation4], 4294964224  ;;  %v432_v0 = vld [vmem:[%s607_s0] sm:$0xff]   ;;  %v477_v12 = vld [vmem:[#allocation3 + $0xa8] ss:$12 sps:$4 sm:$0xff]   ;;  %v537_v14 = vmov 0.0   ;;  %v130_v55 = vlaneseq }
   0xe   :  { %v433_v1 = vunpack.c.l.bf16 %v432_v0  ;;  %v434_v2 = vunpack.c.h.bf16 %v432_v0  ;;  %v475_v11 = vld [vmem:[#allocation3 + $0xac] ss:$12 sps:$4 sm:$0xff]   ;;  %v478_v13 = vld [vmem:[#allocation3 + $0xb0] ss:$12 sps:$4 sm:$0xff]   ;;  %449 = vmatprep.subr.bf16.mxu1 %v537_v14  ;;  %v479_v15 = vld [vmem:[#allocation3 + $0x94] ss:$12 sps:$4 sm:$0xff]  }
   0xf   :  { %279 = vmatprep.subr.bf16.mxu0 %v475_v11  ;;  %450 = vmatpush3.bf16.msra.mxu1 %v478_v13  ;;  %v481_v16 = vld [vmem:[#allocation3 + $0x90] ss:$12 sps:$4 sm:$0xff]   ;;  %v482_v17 = vld [vmem:[#allocation3 + $0x98] ss:$12 sps:$4 sm:$0xff]   ;;  %v486_v20 = vld [vmem:[#allocation3 + $0x80] ss:$12 sps:$4 sm:$0xff]  }
  0x10   :  { %43 = vadd.xlane.f32.xlu0 %v433_v1  ;;  %280 = vmatpush1.bf16.msra.mxu0 %v477_v12  ;;  %v483_v18 = vld [vmem:[#allocation3 + $0x7c] ss:$12 sps:$4 sm:$0xff]   ;;  %v485_v19 = vld [vmem:[#allocation3 + $0x78] ss:$12 sps:$4 sm:$0xff]   ;;  %v489_v22 = vld [vmem:[#allocation3 + $0x60] ss:$12 sps:$4 sm:$0xff]  }
  0x11   :  { %451 = vmatprep.subr.bf16.mxu1 %v537_v14  ;;  %281 = vmatprep.subr.bf16.mxu0 %v479_v15  ;;  %v487_v21 = vld [vmem:[#allocation3 + $0x64] ss:$12 sps:$4 sm:$0xff]   ;;  %v490_v23 = vld [vmem:[#allocation3 + $0x68] ss:$12 sps:$4 sm:$0xff]   ;;  %v491_v24 = vld [vmem:[#allocation3 + $0x4c] ss:$12 sps:$4 sm:$0xff]  }
  0x12   :  { %v493_v25 = vld [vmem:[#allocation3 + $0x48] ss:$12 sps:$4 sm:$0xff]   ;;  %v494_v26 = vld [vmem:[#allocation3 + $0x50] ss:$12 sps:$4 sm:$0xff]   ;;  %v498_v29 = vld [vmem:[#allocation3 + $0x38] ss:$12 sps:$4 sm:$0xff]  }
  0x13   :  { %452 = vmatpush3.bf16.msra.mxu1 %v482_v17  ;;  %v495_v27 = vld [vmem:[#allocation3 + $0x34] ss:$12 sps:$4 sm:$0xff]   ;;  %v497_v28 = vld [vmem:[#allocation3 + $0x30] ss:$12 sps:$4 sm:$0xff]   ;;  %v501_v31 = vld [vmem:[#allocation3 + $0x18] ss:$12 sps:$4 sm:$0xff]  }
  0x14   :  { %45 = vadd.xlane.f32.xlu0 %v434_v2  ;;  %282 = vmatpush1.bf16.msra.mxu0 %v481_v16  ;;  %v499_v30 = vld [vmem:[#allocation3 + $0x1c] ss:$12 sps:$4 sm:$0xff]   ;;  %v502_v32 = vld [vmem:[#allocation3 + $0x20] ss:$12 sps:$4 sm:$0xff]   ;;  %v503_v33 = vld [vmem:[#allocation3 + $0x4] ss:$12 sps:$4 sm:$0xff]  }
  0x15   :  { %453 = vmatprep.subr.bf16.mxu1 %v537_v14  ;;  %283 = vmatprep.subr.bf16.mxu0 %v483_v18  ;;  %v505_v34 = vld [vmem:[#allocation3] ss:$12 sps:$4 sm:$0xff]   ;;  %v506_v35 = vld [vmem:[#allocation3 + $0x8] ss:$12 sps:$4 sm:$0xff]   ;;  %v538_v36 = vmov 0   ;;  %vm539_vm0 = vmmov 0  }
  0x16   :  { %311 = vmatprep.mubr.bf16.mxu0 %v538_v36  ;;  %465 = vmatprep.mubr.msk.bf16.mxu1 %vm539_vm0, %v537_v14  ;;  %v392_v45 = vld [vmem:[%s608_s1] ss:$0 sm:$0xff]  ;;  %v131_v56 = vshrl.u32 %v130_v55, 7 }
  0x17   :  { %454 = vmatpush3.bf16.msra.mxu1 %v486_v20  ;;  %v393_v49 = vld [vmem:[%s609_s2] ss:$0 sm:$0xff] }
  0x18   :  { %284 = vmatpush1.bf16.msra.mxu0 %v485_v19  ;;  %455 = vmatprep.subr.bf16.mxu1 %v537_v14  ;;  %v140_v57 = vsub.s32 2, %v131_v56  ;;  %v128_v58 = vld [vmem:[%s611_s4] sm:$0x7]  ;;  %v132_v59 = vsub.s32 0, %v131_v56  ;;  %v136_v60 = vsub.s32 1, %v131_v56 }
  0x19   :  { %285 = vmatprep.subr.bf16.mxu0 %v487_v21 }
  0x1a   :  { %v141_v61 = vrot.slane %v128_v58, %v140_v57  ;;  %v133_v62 = vrot.slane %v128_v58, %v132_v59  ;;  %v137_v63 = vrot.slane %v128_v58, %v136_v60 }
  0x1b   :  { %456 = vmatpush3.bf16.msra.mxu1 %v490_v23 }
  0x1c   :  { %286 = vmatpush1.bf16.msra.mxu0 %v489_v22  ;;  %457 = vmatprep.subr.bf16.mxu1 %v537_v14 }
  0x1d   :  { %287 = vmatprep.subr.bf16.mxu0 %v491_v24 }
  0x1f   :  { %458 = vmatpush3.bf16.msra.mxu1 %v494_v26 }
  0x20   :  { %288 = vmatpush1.bf16.msra.mxu0 %v493_v25  ;;  %459 = vmatprep.subr.bf16.mxu1 %v537_v14 }
  0x21   :  { %289 = vmatprep.subr.bf16.mxu0 %v495_v27 }
  0x23   :  { %460 = vmatpush3.bf16.msra.mxu1 %v498_v29 }
  0x24   :  { %290 = vmatpush1.bf16.msra.mxu0 %v497_v28  ;;  %461 = vmatprep.subr.bf16.mxu1 %v537_v14 }
  0x25   :  { %291 = vmatprep.subr.bf16.mxu0 %v499_v30 }
  0x27   :  { %462 = vmatpush3.bf16.msra.mxu1 %v502_v32 }
  0x28   :  { %292 = vmatpush1.bf16.msra.mxu0 %v501_v31  ;;  %463 = vmatprep.subr.bf16.mxu1 %v537_v14 }
  0x29   :  { %293 = vmatprep.subr.bf16.mxu0 %v503_v33 }
  0x2b   :  { %464 = vmatpush3.bf16.msra.mxu1 %v506_v35 }
  0x2c   :  { %294 = vmatpush1.bf16.msra.mxu0 %v505_v34 }
  0x99   :  { %v44_v3 = vpop.xlane.xlu0 %43 }
  0x9a   :  { %v48_v4 = vmul.f32 0.0078125, %v44_v3 }
  0x9c   :  { %v576_v5 = vsub.f32 %v433_v1, %v48_v4 }
  0x9d   :  { %v46_v6 = vpop.xlane.xlu0 %45 }
  0x9e   :  { %v49_v7 = vmul.f32 0.0078125, %v46_v6  ;;  %v52_v8 = vmul.f32 %v576_v5, %v576_v5 }
  0xa0   :  { %v580_v9 = vsub.f32 %v434_v2, %v49_v7  ;;  %54 = vadd.xlane.f32.xlu1 %v52_v8 }
  0xa2   :  { %v53_v10 = vmul.f32 %v580_v9, %v580_v9 }
  0xa4   :  { %56 = vadd.xlane.f32.xlu1 %v53_v10 }
 0x129   :  { %v55_v37 = vpop.xlane.xlu1 %54 }
 0x12a   :  { %v58_v38 = vmul.f32 0.0078125, %v55_v37 }
 0x12c   :  { %v60_v39 = vadd.f32 1e-05, %v58_v38 }
 0x12d   :  { %v57_v40 = vpop.xlane.xlu1 %56 }
 0x12e   :  { %508 = vrsqrt.f32 %v60_v39  ;;  %v59_v41 = vmul.f32 0.0078125, %v57_v40 }
 0x130   :  { %v61_v42 = vadd.f32 1e-05, %v59_v41 }
 0x132   :  { %510 = vrsqrt.f32 %v61_v42 }
 0x13b   :  { %v509_v43 = vpop.eup %508 }
 0x13c   :  { %v64_v44 = vmul.f32 %v509_v43, %v576_v5 }
 0x13e   :  { %v73_v47 = vmul.f32 %v392_v45, %v64_v44 }
 0x13f   :  { %v511_v46 = vpop.eup %510 }
 0x140   :  { %v65_v48 = vmul.f32 %v511_v46, %v580_v9  ;;  %v82_v51 = vadd.f32 %v393_v49, %v73_v47 }
 0x142   :  { %v74_v50 = vmul.f32 %v392_v45, %v65_v48 }
 0x144   :  { %v83_v52 = vadd.f32 %v393_v49, %v74_v50 }
 0x146   :  { %v438_v53 = vpack.c.bf16 %v83_v52, %v82_v51 }
 0x148   :  { %439 = vst [vmem:[#allocation2] sm:$0xff] %v438_v53  }
 0x14f   :  { %v507_v54 = vld [vmem:[#allocation2] sm:$0xff]  }
 0x150   :  { %312 = vmatmul.mubr.bf16.vlgmr.msra.gmra.mxu0 %v507_v54  ;;  %466 = vmatmul.mubr.bf16.vlgmr.msra.gmra.mxu1 %v507_v54 }
 0x210   :  { %v313_v0 = vpop.f32.mrf.mxu0  ;;  %v356_v1 = vpop.f32.mrf.mxu1 }
 0x211   :  { %v357_v2 = vadd.f32 %v356_v1, %v141_v61  ;;  %v314_v5 = vadd.f32 %v313_v0, %v133_v62 }
 0x212   :  { %v315_v3 = vpop.f32.mrf.mxu0  ;;  %v467_v4 = vpop.f32.mrf.mxu1 }
 0x213   :  { %v428_v6 = vpack.c.bf16 %v357_v2, %v357_v2  ;;  %v316_v7 = vadd.f32 %v315_v3, %v137_v63 }
 0x214   :  { %v317_v8 = vpop.f32.mrf.mxu0  ;;  %v359_v9 = vpop.f32.mrf.mxu1 }
 0x215   :  { %384 = vst [vmem:[%s612_s5 + $0x8] sm:$0xf] %v428_v6  ;;  %v427_v10 = vpack.c.bf16 %v316_v7, %v314_v5  ;;  %v360_v11 = vadd.f32 %v359_v9, %v141_v61  ;;  %v318_v14 = vadd.f32 %v317_v8, %v133_v62 }
 0x216   :  { %v319_v12 = vpop.f32.mrf.mxu0  ;;  %v468_v13 = vpop.f32.mrf.mxu1 }
 0x217   :  { %383 = vst [vmem:[%s612_s5] sm:$0xff] %v427_v10  ;;  %v430_v15 = vpack.c.bf16 %v360_v11, %v360_v11  ;;  %v320_v16 = vadd.f32 %v319_v12, %v137_v63 }
 0x219   :  { %386 = vst [vmem:[%s612_s5 + $0x14] sm:$0xf] %v430_v15  ;;  %v429_v17 = vpack.c.bf16 %v320_v16, %v318_v14 }
 0x21b   :  { %385 = vst [vmem:[%s612_s5 + $0xc] sm:$0xff] %v429_v17 }
 0x21c   :  { %391 = vsyncpa [#allocation4], 1 }

// kernel: transformer_decoder_forward.18
= control target key start
LH: loop header
LB: loop body
LE: loop exit
PB: predicated region body
PF: predicated region fallthrough
CT: control target
= control target key end

     0   :  { %s1552_s24 = smov 0   ;;  %s1554_s25 = smov 0   ;;  %s1773_s0 = inlined_call_operand.vmem [shape: bf16[2,8,384], index: 0, kind: input, shape index: {}, may-alias: {0,1,2}]   ;;  %s1774_s1 = inlined_call_operand.vmem [shape: bf16[2,8,384], index: 1, kind: input, shape index: {}, may-alias: {0,1,2}]   ;;  %s1775_s2 = inlined_call_operand.vmem [shape: bf16[2,8,384], index: 2, kind: input, shape index: {}, may-alias: {0,1,2}]   ;;  %s1776_s3 = inlined_call_operand.vmem [shape: s8[2,8,8], index: 3, kind: input, shape index: {}]   ;;  %s1777_s4 = inlined_call_operand.vmem [shape: bf16[128,128], index: 4, kind: input, shape index: {}]   ;;  %s1778_s5 = inlined_call_operand.vmem [shape: f32[1,128], index: 5, kind: input, shape index: {}]   ;;  %s1779_s6 = inlined_call_operand.vmem [shape: bf16[2,8,128], index: 6, kind: input, shape index: {}]   ;;  %s1780_s7 = inlined_call_operand.vmem [shape: bf16[2,8,128], index: 7, kind: output, shape index: {}]  }
   0x1   :  { %s1556_s26 = smov 0  }
   0x2 LB: > { %s29_s27 = sadd.s32 1, %s1498_s25  ;;  %p1289_p0 = scmp.ge.s32.totalorder %s1502_s26, 1  ;;  %s1502_s26 = sphi %s1556_s26, %s17_s26   ;;  %s1498_s25 = sphi %s1554_s25, %s1782_s25   ;;  %s1494_s24 = sphi %s1552_s24, %s1781_s24  }
   0x3   : > { %p31_p1 = scmp.ge.s32.totalorder %s29_s27, 2  ;;  %p306_p2 = scmp.lt.s32.totalorder %s1502_s26, 3 }
   0x5   : > { %s1784_s27 = smov (%p31_p1, %s29_s27), 0  ;;  %p307_p3 = pnand %p1289_p0, %p306_p2 }
   0x6   : > { %p368_p4 = scmp.lt.s32.totalorder (!%p307_p3), %s1494_s24, 1  ;;  %s1506_s12 = smov (!%p307_p3), 96  }
   0x7   : > { %310 = sbr.rel (%p307_p3) target bundleno = 1577 (0x629), region = 48  ;;  %s1507_s13 = smov (!%p307_p3), 64  }
   0x8   : > { %s1511_s18 = smov (!%p307_p3), 32  }
   0xc   : > { %v1504_v0 = vmov 0.0   ;;  %vm1505_vm0 = vmmov 0   ;;  %s1786_s24 = smov (!%p368_p4, %s1494_s24), 1  ;;  %vm434_vm1 = vcmask 261120   ;;  %vm413_vm2 = vcmask 7168  }
   0xd   : > { %1344 = vmatprep.subr.bf16.mxu0 %v1504_v0  ;;  %422 = vst [vmem:[#allocation4] sm:$0xff] %v1504_v0  ;;  %1346 = vmatprep.mubr.msk.bf16.mxu0 %vm1505_vm0, %v1504_v0  ;;  %s1580_s28 = smul.u32 12, %s1786_s24  ;;  %v1508_v8 = vmov -inf   ;;  %418 = vst.msk [vmem:[#allocation3] sm:$0xff] %vm413_vm2, %v1504_v0  ;;  %s1293_s14 = sshll.u32 %s1786_s24, 1  ;;  %vm482_vm4 = vcmask 64512  }
   0xe   : > { %1368 = vmatprep.subr.bf16.mxu1 %v1504_v0  ;;  %1370 = vmatprep.mubr.msk.bf16.mxu1 %vm1505_vm0, %v1504_v0  ;;  %414 = vst.msk [vmem:[#allocation2] sm:$0xff] %vm413_vm2, %v1508_v8  ;;  %415 = vst.msk [vmem:[#allocation2 + $0x8] sm:$0xff] %vm413_vm2, %v1508_v8  ;;  %s399_s17 = scalar_lea.vmem %s1776_s3, %s1293_s14  ;;  %v1509_v17 = vmov -1e+30   ;;  %v1510_v25 = vmov 0   ;;  %vm517_vm5 = vcmask 1043456  }
   0xf   : > { %s1214_s8 = scalar_lea.vmem %s1774_s1, %s1580_s28  ;;  %s372_s11 = scalar_lea.vmem %s1773_s0, %s1580_s28  ;;  %416 = vst.msk [vmem:[#allocation2 + $0x10] sm:$0xff] %vm413_vm2, %v1508_v8  ;;  %417 = vst.msk [vmem:[#allocation2 + $0x18] sm:$0xff] %vm413_vm2, %v1508_v8  ;;  %v429_v14 = vld [vmem:[%s399_s17] sm:$0x3]  ;;  %1445 = vset.pattern.permute.xlu0 %v1510_v25  ;;  %1446 = vset.pattern.permute.xlu1 %v1510_v25  ;;  %vm707_vm6 = vcmask 523520   ;;  %vm846_vm7 = vcmask 785920  }
  0x10   : > { %v1296_v1 = vld [vmem:[%s1214_s8 + $0x4] sm:$0xf]  ;;  %v423_v2 = vld [vmem:[%s372_s11] sm:$0xf]  ;;  %419 = vst.msk [vmem:[#allocation3 + $0x8] sm:$0xff] %vm413_vm2, %v1504_v0  ;;  %420 = vst.msk [vmem:[#allocation3 + $0x10] sm:$0xff] %vm413_vm2, %v1504_v0  ;;  %v430_v15 = vunpack.c.0.s8 %v429_v14  ;;  %s1220_s21 = scalar_lea.vmem %s1775_s2, %s1580_s28 }
  0x11   : > { %v439_v3 = vsel %vm434_vm1, %v1296_v1, 0  ;;  %v1300_v4 = vcombine.low %v1296_v1, %v1296_v1  ;;  %v424_v5 = vunpack.c.l.bf16 %v423_v2  ;;  %421 = vst.msk [vmem:[#allocation3 + $0x18] sm:$0xff] %vm413_vm2, %v1504_v0  ;;  %v1297_v34 = vld [vmem:[%s1220_s21 + $0x8] sm:$0xf]  ;;  %vm985_vm8 = vcmask 1048320   ;;  %s1294_s19 = sshll.u32 %s1786_s24, 2 }
  0x12   : > { %1345 = vmatpush3.bf16.xpose.msra.mxu0 %v439_v3  ;;  %v431_v16 = vcvt.s32.f32 %v430_v15  ;;  %v519_v35 = vsel %vm517_vm5, %v1297_v34, 0  ;;  %s403_s22 = scalar_lea.vmem %s1779_s6, %s1294_s19  ;;  %s407_s8 = scalar_lea.vmem %s1780_s7, %s1294_s19 }
  0x13   : > { %v425_v6 = vmul.f32 0.17677669, %v424_v5  ;;  %570 = vrot.lane.b32.xlu1 %v1300_v4, %s1506_s12  ;;  %1350 = vmatprep.subr.bf16.mxu0 %v1504_v0 }
  0x14   : > { %vm432_vm3 = vcmp.gt.f32.partialorder %v431_v16, 0.5 }
  0x15   : > { %v426_v7 = vpack.c.bf16 %v425_v6, %v425_v6  ;;  %v1622_v18 = vsel %vm432_vm3, 0.0, %v1509_v17  ;;  %v1628_v30 = vld [vmem:[#allocation2] sm:$0xff] }
  0x16   : > { %v1663_v47 = vld [vmem:[#allocation2 + $0x10] sm:$0xff] }
  0x17   : > { %565 = vrot.lane.b32.xlu1 %v426_v7, %s1506_s12 }
  0x19   : > { %1347 = vmatmul.mubr.msk.bf16.vlgmr.msra.gmra.mxu0 %vm434_vm1, %v426_v7 }
  0x1a   : > { %1352 = vmatprep.mubr.msk.bf16.mxu0 %vm1505_vm0, %v1504_v0  ;;  %1351 = vmatpush3.bf16.msra.mxu0 %v519_v35 }
  0x1b   : > { %712 = vrot.lane.b32.xlu1 %v1300_v4, %s1507_s13  ;;  %1356 = vmatprep.subr.bf16.mxu0 %v1504_v0 }
  0x1f   : > { %710 = vrot.lane.b32.xlu1 %v426_v7, %s1507_s13 }
  0x23   : > { %851 = vrot.lane.b32.xlu1 %v1300_v4, %s1511_s18  ;;  %v619_v4 = vld [vmem:[#allocation2 + $0x8] sm:$0xff] }
  0x27   : > { %849 = vrot.lane.b32.xlu1 %v426_v7, %s1511_s18  ;;  %v900_v7 = vld [vmem:[#allocation2 + $0x18] sm:$0xff] }
  0x85   : > { %v571_v9 = vpop.permute.xlu1 %570 }
  0x86   : > { %v576_v45 = vsel %vm434_vm1, %v571_v9, 0  ;;  %v1302_v9 = vcombine.low %v1297_v34, %v1297_v34 }
  0x89   : > { %v1611_v10 = vpop.permute.xlu1 %565 }
  0x8d   : > { %v713_v11 = vpop.permute.xlu1 %712 }
  0x8e   : > { %v718_v12 = vsel %vm434_vm1, %v713_v11, 0 }
  0x8f   : > { %1369 = vmatpush3.bf16.xpose.msra.mxu1 %v718_v12 }
  0x90   : > { %1380 = vmatprep.subr.bf16.mxu1 %v1504_v0 }
  0x91   : > { %v711_v13 = vpop.permute.xlu1 %710 }
  0x95   : > { %v852_v36 = vpop.permute.xlu1 %851 }
  0x96   : > { %1371 = vmatmul.mubr.msk.bf16.vlgmr.msra.gmra.mxu1 %vm434_vm1, %v711_v13  ;;  %v857_v37 = vsel %vm434_vm1, %v852_v36, 0 }
  0x97   : > { %1382 = vmatprep.mubr.msk.bf16.mxu1 %vm1505_vm0, %v1504_v0  ;;  %1381 = vmatpush3.bf16.xpose.msra.mxu1 %v857_v37 }
  0x98   : > { %1392 = vmatprep.subr.bf16.mxu1 %v1504_v0 }
  0x99   : > { %v850_v39 = vpop.permute.xlu1 %849 }
  0x9e   : > { %1383 = vmatmul.mubr.msk.bf16.vlgmr.msra.gmra.mxu1 %vm434_vm1, %v850_v39 }
  0x9f   : > { %1408 = vmatprep.mubr.msk.bf16.mxu1 %vm1505_vm0, %v1504_v0 }
  0xd9   : > { %v475_v19 = vpop.f32.mrf.mxu0 }
  0xda   : > { %v476_v20 = vadd.f32 %v475_v19, %v1622_v18 }
  0xdb   : > { %v1348_v21 = vpop.f32.mrf.mxu0 }
  0xdc   : > { %v483_v22 = vsel %vm482_vm4, %v476_v20, -inf }
  0xdd   : > { %484 = vmax.xlane.f32.xlu0 %v483_v22  ;;  %v478_v23 = vpop.f32.mrf.mxu0 }
  0xdf   : > { %v1349_v24 = vpop.f32.mrf.mxu0 }
 0x156   : > { %v754_v26 = vpop.f32.mrf.mxu1 }
 0x157   : > { %v1647_v38 = vadd.f32 %v754_v26, %v1622_v18 }
 0x158   : > { %v1372_v27 = vpop.f32.mrf.mxu1 }
 0x159   : > { %v762_v40 = vsel %vm482_vm4, %v1647_v38, -inf }
 0x15a   : > { %v757_v28 = vpop.f32.mrf.mxu1 }
 0x15c   : > { %v1373_v29 = vpop.f32.mrf.mxu1 }
 0x15e   : > { %v893_v51 = vpop.f32.mrf.mxu1 }
 0x15f   : > { %v894_v61 = vadd.f32 %v893_v51, %v1622_v18 }
 0x160   : > { %v1384_v52 = vpop.f32.mrf.mxu1 }
 0x161   : > { %v901_v2 = vsel %vm482_vm4, %v894_v61, -inf }
 0x162   : > { %v896_v53 = vpop.f32.mrf.mxu1 }
 0x164   : > { %v1385_v54 = vpop.f32.mrf.mxu1 }
 0x166   : > { %v485_v31 = vpop.xlane.xlu0 %484 }
 0x167   : > { %v1631_v32 = vmax.f32 %v1628_v30, %v485_v31 }
 0x169   : > { %v487_v33 = vsub.f32 %v1628_v30, %v1631_v32  ;;  %563 = vst.msk [vmem:[#allocation2] sm:$0xff] %vm413_vm2, %v1631_v32  ;;  %492 = vperm.xlu0 %1445, %v1631_v32  }
 0x188   : > { %763 = vmax.xlane.f32.xlu0 %v762_v40 }
 0x1e4   : > { %v493_v41 = vpop.permute.xlu0 %492 }
 0x1e5   : > { %v495_v42 = vsub.f32 %v476_v20, %v493_v41  ;;  %v488_v41 = vmul.f32 1.442695, %v487_v33 }
 0x1e7   : > { %v496_v43 = vmul.f32 1.442695, %v495_v42 }
 0x1e9   : > { %1456 = vpow2.f32 %v496_v43 }
 0x1f6   : > { %v1457_v44 = vpop.eup %1456 }
 0x1f7   : > { %v513_v46 = vpack.c.bf16 %v1457_v44, %v1457_v44  ;;  %v500_v13 = vsel %vm482_vm4, %v1457_v44, 0.0 }
 0x1f9   : > { %1353 = vmatmul.mubr.msk.bf16.vlgmr.msra.gmra.mxu0 %vm482_vm4, %v513_v46  ;;  %v498_v46 = vld [vmem:[#allocation3] sm:$0xff] }
 0x1fa   : > { %1357 = vmatpush3.bf16.xpose.msra.mxu0 %v576_v45  ;;  %1358 = vmatprep.mubr.msk.bf16.mxu0 %vm1505_vm0, %v1504_v0 }
 0x1fb   : > { %1362 = vmatprep.subr.bf16.mxu0 %v1504_v0 }
 0x201   : > { %1359 = vmatmul.mubr.msk.bf16.vlgmr.msra.gmra.mxu0 %vm434_vm1, %v1611_v10 }
 0x202   : > { %1364 = vmatprep.mubr.msk.bf16.mxu0 %vm1505_vm0, %v1504_v0 }
 0x211   : > { %v764_v48 = vpop.xlane.xlu0 %763 }
 0x212   : > { %v1666_v49 = vmax.f32 %v1663_v47, %v764_v48 }
 0x214   : > { %v766_v50 = vsub.f32 %v1663_v47, %v1666_v49  ;;  %848 = vst.msk [vmem:[#allocation2 + $0x10] sm:$0xff] %vm413_vm2, %v1666_v49  ;;  %771 = vperm.xlu0 %1445, %v1666_v49  }
 0x216   : > { %v767_v42 = vmul.f32 1.442695, %v766_v50  ;;  %v636_v50 = vld [vmem:[#allocation3 + $0x8] sm:$0xff] }
 0x28f   : > { %v772_v14 = vpop.permute.xlu0 %771 }
 0x290   : > { %v774_v15 = vsub.f32 %v1647_v38, %v772_v14 }
 0x2b9   : > { %v1673_v55 = vpop.f32.mrf.mxu0 }
 0x2bb   : > { %v1354_v56 = vpop.f32.mrf.mxu0 }
 0x2bc   : > { %v778_v56 = vld [vmem:[#allocation3 + $0x10] sm:$0xff] }
 0x2bd   : > { %v558_v57 = vpop.f32.mrf.mxu0 }
 0x2bf   : > { %v1355_v58 = vpop.f32.mrf.mxu0 }
 0x2c1   : > { %v612_v59 = vpop.f32.mrf.mxu0 }
 0x2c2   : > { %v613_v60 = vadd.f32 %v612_v59, %v1622_v18  ;;  %v775_v18 = vmul.f32 1.442695, %v774_v15 }
 0x2c3   : > { %v1360_v62 = vpop.f32.mrf.mxu0 }
 0x2c4   : > { %v620_v63 = vsel %vm482_vm4, %v613_v60, -inf }
 0x2c5   : > { %621 = vmax.xlane.f32.xlu1 %v620_v63  ;;  %v615_v1 = vpop.f32.mrf.mxu0 }
 0x2c7   : > { %v1361_v3 = vpop.f32.mrf.mxu0 }
 0x2c9   : > { %902 = vmax.xlane.f32.xlu1 %v901_v2 }
 0x34e   : > { %v622_v5 = vpop.xlane.xlu1 %621 }
 0x34f   : > { %v623_v6 = vmax.f32 %v619_v4, %v622_v5 }
 0x351   : > { %v624_v8 = vsub.f32 %v619_v4, %v623_v6  ;;  %709 = vst.msk [vmem:[#allocation2 + $0x8] sm:$0xff] %vm413_vm2, %v623_v6  ;;  %629 = vperm.xlu1 %1446, %v623_v6  }
 0x352   : > { %v903_v10 = vpop.xlane.xlu1 %902 }
 0x353   : > { %v904_v11 = vmax.f32 %v900_v7, %v903_v10  ;;  %v625_v37 = vmul.f32 1.442695, %v624_v8 }
 0x355   : > { %654 = vrot.lane.b32.xlu1 %v1302_v9, %s1506_s12  ;;  %v905_v12 = vsub.f32 %v900_v7, %v904_v11  ;;  %987 = vst.msk [vmem:[#allocation2 + $0x18] sm:$0xff] %vm413_vm2, %v904_v11 }
 0x357   : > { %v906_v44 = vmul.f32 1.442695, %v905_v12 }
 0x359   : > { %910 = vperm.xlu1 %1446, %v904_v11  }
 0x35d   : > { %793 = vrot.lane.b32.xlu1 %v1302_v9, %s1507_s13 }
 0x361   : > { %932 = vrot.lane.b32.xlu1 %v1302_v9, %s1511_s18 }
 0x385   : > { %501 = vadd.xlane.f32.xlu1 %v500_v13 }
 0x3cc   : > { %v630_v16 = vpop.permute.xlu1 %629 }
 0x3cd   : > { %v632_v17 = vsub.f32 %v613_v60, %v630_v16  ;;  %v917_v60 = vld [vmem:[#allocation3 + $0x18] sm:$0xff] }
 0x3cf   : > { %v633_v19 = vmul.f32 1.442695, %v632_v17 }
 0x3d0   : > { %v655_v20 = vpop.permute.xlu1 %654 }
 0x3d1   : > { %1458 = vpow2.f32 %v633_v19  ;;  %v660_v21 = vsel %vm517_vm5, %v655_v20, 0 }
 0x3d2   : > { %1363 = vmatpush3.bf16.msra.mxu0 %v660_v21  ;;  %1460 = vpow2.f32 %v775_v18 }
 0x3d3   : > { %1374 = vmatprep.subr.bf16.mxu0 %v1504_v0 }
 0x3d4   : > { %v911_v22 = vpop.permute.xlu1 %910 }
 0x3d5   : > { %v913_v23 = vsub.f32 %v894_v61, %v911_v22  ;;  %v1448_v22 = vld [vmem:[%s1777_s4 + $0x38] sm:$0xff]  }
 0x3d6   : > { %1393 = vmatpush3.bf16.msra.mxu1 %v1448_v22 }
 0x3d7   : > { %v914_v24 = vmul.f32 1.442695, %v913_v23  ;;  %1394 = vmatprep.subr.bf16.mxu1 %v1504_v0  ;;  %v1449_v23 = vld [vmem:[%s1777_s4 + $0x30] sm:$0xff]  }
 0x3d8   : > { %v794_v25 = vpop.permute.xlu1 %793 }
 0x3d9   : > { %1462 = vpow2.f32 %v914_v24  ;;  %v799_v29 = vsel %vm517_vm5, %v794_v25, 0  ;;  %v1450_v24 = vld [vmem:[%s1777_s4 + $0x28] sm:$0xff]   ;;  %v1451_v25 = vld [vmem:[%s1777_s4 + $0x20] sm:$0xff]  }
 0x3da   : > { %1464 = vpow2.f32 %v625_v37  ;;  %1395 = vmatpush3.bf16.msra.mxu1 %v1449_v23 }
 0x3db   : > { %1466 = vpow2.f32 %v488_v41  ;;  %1396 = vmatprep.subr.bf16.mxu1 %v1504_v0 }
 0x3dc   : > { %v933_v35 = vpop.permute.xlu1 %932  ;;  %1468 = vpow2.f32 %v767_v42 }
 0x3dd   : > { %v938_v40 = vsel %vm517_vm5, %v933_v35, 0  ;;  %1470 = vpow2.f32 %v906_v44 }
 0x3de   : > { %v1459_v26 = vpop.eup %1458  ;;  %1397 = vmatpush3.bf16.msra.mxu1 %v1450_v24 }
 0x3df   : > { %v638_v27 = vsel %vm482_vm4, %v1459_v26, 0.0  ;;  %v650_v28 = vpack.c.bf16 %v1459_v26, %v1459_v26  ;;  %v1461_v31 = vpop.eup %1460  ;;  %1398 = vmatprep.subr.bf16.mxu1 %v1504_v0  ;;  %v1452_v26 = vld [vmem:[%s1777_s4 + $0x18] sm:$0xff]  }
 0x3e0   : > { %639 = vadd.xlane.f32.xlu0 %v638_v27  ;;  %v780_v34 = vsel %vm482_vm4, %v1461_v31, 0.0  ;;  %v792_v39 = vpack.c.bf16 %v1461_v31, %v1461_v31  ;;  %v1453_v27 = vld [vmem:[%s1777_s4 + $0x10] sm:$0xff]  }
 0x3e1   : > { %1365 = vmatmul.mubr.msk.bf16.vlgmr.msra.gmra.mxu0 %vm482_vm4, %v650_v28  ;;  %v1454_v28 = vld [vmem:[%s1777_s4 + $0x8] sm:$0xff]  }
 0x3e2   : > { %1375 = vmatpush3.bf16.msra.mxu0 %v799_v29  ;;  %1376 = vmatprep.mubr.msk.bf16.mxu0 %vm1505_vm0, %v1504_v0  ;;  %v1455_v29 = vld [vmem:[%s1777_s4] sm:$0xff]  }
 0x3e3   : > { %1386 = vmatprep.subr.bf16.mxu0 %v1504_v0  ;;  %1399 = vmatpush3.bf16.msra.mxu1 %v1451_v25 }
 0x3e4   : > { %781 = vadd.xlane.f32.xlu0 %v780_v34  ;;  %1400 = vmatprep.subr.bf16.mxu1 %v1504_v0 }
 0x3e6   : > { %v1463_v36 = vpop.eup %1462 }
 0x3e7   : > { %v919_v38 = vsel %vm482_vm4, %v1463_v36, 0.0  ;;  %v931_v43 = vpack.c.bf16 %v1463_v36, %v1463_v36  ;;  %v1465_v30 = vpop.eup %1464  ;;  %1401 = vmatpush3.bf16.msra.mxu1 %v1452_v26 }
 0x3e8   : > { %920 = vadd.xlane.f32.xlu1 %v919_v38  ;;  %v1467_v32 = vpop.eup %1466  ;;  %v637_v53 = vmul.f32 %v1465_v30, %v636_v50  ;;  %1402 = vmatprep.subr.bf16.mxu1 %v1504_v0 }
 0x3e9   : > { %1377 = vmatmul.mubr.msk.bf16.vlgmr.msra.gmra.mxu0 %vm482_vm4, %v792_v39  ;;  %v1469_v33 = vpop.eup %1468  ;;  %v499_v48 = vmul.f32 %v1467_v32, %v498_v46 }
 0x3ea   : > { %1387 = vmatpush3.bf16.msra.mxu0 %v938_v40  ;;  %1388 = vmatprep.mubr.msk.bf16.mxu0 %vm1505_vm0, %v1504_v0  ;;  %v1471_v45 = vpop.eup %1470  ;;  %v779_v58 = vmul.f32 %v1469_v33, %v778_v56 }
 0x3eb   : > { %v918_v62 = vmul.f32 %v1471_v45, %v917_v60  ;;  %1403 = vmatpush3.bf16.msra.mxu1 %v1453_v27  ;;  %v1308_v60 = vld [vmem:[%s1778_s5] ss:$0 sm:$0xff] }
 0x3ec   : > { %1404 = vmatprep.subr.bf16.mxu1 %v1504_v0 }
 0x3ef   : > { %1405 = vmatpush3.bf16.msra.mxu1 %v1454_v28 }
 0x3f0   : > { %1406 = vmatprep.subr.bf16.mxu1 %v1504_v0 }
 0x3f1   : > { %1389 = vmatmul.mubr.msk.bf16.vlgmr.msra.gmra.mxu0 %vm482_vm4, %v931_v43 }
 0x3f3   : > { %1407 = vmatpush3.bf16.msra.mxu1 %v1455_v29 }
 0x3f9   : > { %646 = vperm.xlu1 %1446, %v1465_v30  }
 0x3fa   : > { %509 = vperm.xlu0 %1445, %v1467_v32  }
 0x3fe   : > { %788 = vperm.xlu0 %1445, %v1469_v33  }
 0x402   : > { %927 = vperm.xlu0 %1445, %v1471_v45  }
 0x40e   : > { %v502_v51 = vpop.xlane.xlu1 %501 }
 0x40f   : > { %v503_v52 = vadd.f32 %v502_v51, %v499_v48 }
 0x411   : > { %505 = vst.msk [vmem:[#allocation3] sm:$0xff] %vm413_vm2, %v503_v52 }
 0x418   : > { %v992_v47 = vld [vmem:[#allocation3] sm:$0xff] }
 0x419   : > { %1472 = vrcp.f32 %v992_v47 }
 0x426   : > { %v1473_v49 = vpop.eup %1472 }
 0x427   : > { %996 = vperm.xlu0 %1445, %v1473_v49  }
 0x469   : > { %v640_v54 = vpop.xlane.xlu0 %639 }
 0x46a   : > { %v641_v57 = vadd.f32 %v640_v54, %v637_v53 }
 0x46c   : > { %642 = vst.msk [vmem:[#allocation3 + $0x8] sm:$0xff] %vm413_vm2, %v641_v57 }
 0x46d   : > { %v782_v59 = vpop.xlane.xlu0 %781 }
 0x46e   : > { %v783_v61 = vadd.f32 %v782_v59, %v779_v58  ;;  %v1144_v59 = vld [vmem:[%s403_s22] sm:$0xf] }
 0x470   : > { %784 = vst.msk [vmem:[#allocation3 + $0x10] sm:$0xff] %vm413_vm2, %v783_v61  ;;  %v1145_v61 = vunpack.c.l.bf16 %v1144_v59 }
 0x471   : > { %v921_v63 = vpop.xlane.xlu1 %920 }
 0x472   : > { %v922_v1 = vadd.f32 %v921_v63, %v918_v62 }
 0x473   : > { %v1002_v10 = vld [vmem:[#allocation3 + $0x8] sm:$0xff] }
 0x474   : > { %923 = vst.msk [vmem:[#allocation3 + $0x18] sm:$0xff] %vm413_vm2, %v922_v1 }
 0x475   : > { %v510_v2 = vpop.permute.xlu0 %509  ;;  %v647_v34 = vpop.permute.xlu1 %646 }
 0x476   : > { %v512_v3 = vmul.f32 0.0, %v510_v2 }
 0x477   : > { %v1012_v4 = vld [vmem:[#allocation3 + $0x10] sm:$0xff] }
 0x478   : > { %v561_v5 = vadd.f32 %v1673_v55, %v512_v3  ;;  %1474 = vrcp.f32 %v1012_v4 }
 0x479   : > { %1476 = vrcp.f32 %v1002_v10  ;;  %v789_v38 = vpop.permute.xlu0 %788 }
 0x47a   : > { %562 = vst.msk [vmem:[#allocation4] sm:$0xff] %vm434_vm1, %v561_v5 }
 0x47b   : > { %v1022_v13 = vld [vmem:[#allocation3 + $0x18] sm:$0xff] }
 0x47c   : > { %1478 = vrcp.f32 %v1022_v13 }
 0x47d   : > { %v928_v43 = vpop.permute.xlu0 %927 }
 0x481   : > { %v643_v31 = vld [vmem:[#allocation4] sm:$0xff] }
 0x482   : > { %v649_v35 = vmul.f32 %v647_v34, %v643_v31 }
 0x485   : > { %v1475_v6 = vpop.eup %1474 }
 0x486   : > { %1016 = vperm.xlu0 %1445, %v1475_v6   ;;  %v1477_v18 = vpop.eup %1476 }
 0x489   : > { %v1479_v21 = vpop.eup %1478 }
 0x4a1   : > { %v696_v7 = vpop.f32.mrf.mxu0 }
 0x4a2   : > { %703 = vrot.lane.b32.xlu1 %v696_v7, %s1511_s18  ;;  %v997_v33 = vpop.permute.xlu0 %996 }
 0x4a3   : > { %v1366_v8 = vpop.f32.mrf.mxu0 }
 0x4a5   : > { %v699_v9 = vpop.f32.mrf.mxu0 }
 0x4a7   : > { %v1367_v11 = vpop.f32.mrf.mxu0 }
 0x4a9   : > { %v835_v12 = vpop.f32.mrf.mxu0 }
 0x4aa   : > { %842 = vrot.lane.b32.xlu1 %v835_v12, %s1507_s13 }
 0x4ab   : > { %v1378_v14 = vpop.f32.mrf.mxu0 }
 0x4ad   : > { %v838_v55 = vpop.f32.mrf.mxu0 }
 0x4af   : > { %v1379_v15 = vpop.f32.mrf.mxu0 }
 0x4b1   : > { %v974_v16 = vpop.f32.mrf.mxu0 }
 0x4b2   : > { %981 = vrot.lane.b32.xlu1 %v974_v16, %s1506_s12 }
 0x4b3   : > { %v1390_v17 = vpop.f32.mrf.mxu0 }
 0x4b5   : > { %v977_v19 = vpop.f32.mrf.mxu0 }
 0x4b6   : > { %1006 = vperm.xlu1 %1446, %v1477_v18  }
 0x4b7   : > { %v1391_v20 = vpop.f32.mrf.mxu0 }
 0x4ba   : > { %1026 = vperm.xlu1 %1446, %v1479_v21  }
 0x501   : > { %v1017_v47 = vpop.permute.xlu0 %1016 }
 0x514   : > { %v704_v36 = vpop.permute.xlu1 %703 }
 0x515   : > { %v706_v37 = vadd.f32 %v704_v36, %v649_v35 }
 0x517   : > { %708 = vst.msk [vmem:[#allocation4] sm:$0xff] %vm707_vm6, %v706_v37 }
 0x51c   : > { %v843_v41 = vpop.permute.xlu1 %842 }
 0x51e   : > { %v785_v39 = vld [vmem:[#allocation4] sm:$0xff] }
 0x51f   : > { %v791_v40 = vmul.f32 %v789_v38, %v785_v39 }
 0x521   : > { %v845_v42 = vadd.f32 %v843_v41, %v791_v40 }
 0x523   : > { %847 = vst.msk [vmem:[#allocation4] sm:$0xff] %vm846_vm7, %v845_v42 }
 0x524   : > { %v982_v30 = vpop.permute.xlu1 %981 }
 0x52a   : > { %v924_v44 = vld [vmem:[#allocation4] sm:$0xff] }
 0x52b   : > { %v930_v0 = vmul.f32 %v928_v43, %v924_v44 }
 0x52d   : > { %v984_v32 = vadd.f32 %v982_v30, %v930_v0 }
 0x52f   : > { %986 = vst.msk [vmem:[#allocation4] sm:$0xff] %vm985_vm8, %v984_v32 }
 0x531   : > { %v1007_v51 = vpop.permute.xlu1 %1006 }
 0x535   : > { %v1027_v54 = vpop.permute.xlu1 %1026 }
 0x536   : > { %v991_v45 = vld [vmem:[#allocation4] sm:$0xff] }
 0x537   : > { %v999_v46 = vmul.f32 %v997_v33, %v991_v45 }
 0x539   : > { %1000 = vst.msk [vmem:[#allocation4] sm:$0xff] %vm434_vm1, %v999_v46 }
 0x540   : > { %v1001_v48 = vld [vmem:[#allocation4] sm:$0xff] }
 0x541   : > { %v1009_v52 = vmul.f32 %v1007_v51, %v1001_v48 }
 0x543   : > { %1010 = vst.msk [vmem:[#allocation4] sm:$0xff] %vm707_vm6, %v1009_v52 }
 0x54a   : > { %v1011_v49 = vld [vmem:[#allocation4] sm:$0xff] }
 0x54b   : > { %v1019_v50 = vmul.f32 %v1017_v47, %v1011_v49 }
 0x54d   : > { %1020 = vst.msk [vmem:[#allocation4] sm:$0xff] %vm846_vm7, %v1019_v50 }
 0x554   : > { %v1021_v53 = vld [vmem:[#allocation4] sm:$0xff] }
 0x555   : > { %v1029_v56 = vmul.f32 %v1027_v54, %v1021_v53 }
 0x557   : > { %1030 = vst.msk [vmem:[#allocation4] sm:$0xff] %vm985_vm8, %v1029_v56 }
 0x55e   : > { %v1031_v57 = vld [vmem:[#allocation4] sm:$0xff] }
 0x55f   : > { %v1032_v58 = vpack.c.bf16 %v1031_v57, %v1031_v57 }
 0x561   : > { %1409 = vmatmul.mubr.bf16.vlgmr.msra.gmra.mxu1 %v1032_v58 }
 0x621   : > { %v1138_v62 = vpop.f32.mrf.mxu1 }
 0x622   : > { %v1139_v63 = vadd.f32 %v1308_v60, %v1138_v62 }
 0x623   : > { %v1410_v1 = vpop.f32.mrf.mxu1 }
 0x624   : > { %v1146_v2 = vadd.f32 %v1145_v61, %v1139_v63 }
 0x625   : > { %v1141_v3 = vpop.f32.mrf.mxu1 }
 0x626   : > { %v1147_v4 = vpack.c.bf16 %v1146_v2, %v1146_v2 }
 0x627   : > { %v1411_v5 = vpop.f32.mrf.mxu1 }
 0x628   : > { %1148 = vst [vmem:[%s407_s8] sm:$0xf] %v1147_v4 }
 0x629 PF: > { %s17_s26 = sadd.s32 1, %s1502_s26   ;;  %s1781_s24 = smov %s1498_s25 }
 0x62a   : > { %p14_p5 = scmp.ge.s32.totalorder %s17_s26, 4   ;;  %s1782_s25 = smov %s1784_s27 }
 0x62c   :  { %16 = sbr.rel (!%p14_p5) target bundleno = 2 (0x2), region = 104 }

// kernel: transformer_decoder_forward.22
= control target key start
LH: loop header
LB: loop body
LE: loop exit
PB: predicated region body
PF: predicated region fallthrough
CT: control target
= control target key end

     0   :  { %v327_v27 = vmov 0   ;;  %v100_v46 = vlaneseq  ;;  %s424_s0 = inlined_call_operand.vmem [shape: bf16[16,128], index: 0, kind: input, shape index: {}]   ;;  %s425_s3 = inlined_call_operand.vmem [shape: bf16[128,256], index: 3, kind: input, shape index: {}]   ;;  %s426_s1 = inlined_call_operand.vmem [shape: f32[1,128], index: 1, kind: input, shape index: {}]   ;;  %s427_s2 = inlined_call_operand.vmem [shape: f32[1,128], index: 2, kind: input, shape index: {}]   ;;  %s428_s4 = inlined_call_operand.vmem [shape: f32[1,256], index: 4, kind: input, shape index: {}]   ;;  %s429_s5 = inlined_call_operand.vmem [shape: bf16[16,256], index: 5, kind: output, shape index: {}]  }
   0x1   :  { %v289_v0 = vld [vmem:[%s424_s0] sm:$0xff]   ;;  %v298_v11 = vld [vmem:[%s425_s3 + $0x74] ss:$8 sps:$4 sm:$0xff]   ;;  %v300_v12 = vld [vmem:[%s425_s3 + $0x70] ss:$8 sps:$4 sm:$0xff]   ;;  %228 = vmatprep.mubr.bf16.mxu0 %v327_v27 }
   0x2   :  { %v290_v1 = vunpack.c.l.bf16 %v289_v0  ;;  %v291_v2 = vunpack.c.h.bf16 %v289_v0  ;;  %196 = vmatprep.subr.bf16.mxu0 %v298_v11  ;;  %v301_v13 = vld [vmem:[%s425_s3 + $0x64] ss:$8 sps:$4 sm:$0xff]   ;;  %v303_v14 = vld [vmem:[%s425_s3 + $0x60] ss:$8 sps:$4 sm:$0xff]   ;;  %v304_v15 = vld [vmem:[%s425_s3 + $0x54] ss:$8 sps:$4 sm:$0xff]  }
   0x3   :  { %197 = vmatpush1.bf16.msra.mxu0 %v300_v12  ;;  %v306_v16 = vld [vmem:[%s425_s3 + $0x50] ss:$8 sps:$4 sm:$0xff]   ;;  %v307_v17 = vld [vmem:[%s425_s3 + $0x44] ss:$8 sps:$4 sm:$0xff]   ;;  %v309_v18 = vld [vmem:[%s425_s3 + $0x40] ss:$8 sps:$4 sm:$0xff]  }
   0x4   :  { %29 = vadd.xlane.f32.xlu0 %v290_v1  ;;  %198 = vmatprep.subr.bf16.mxu0 %v301_v13  ;;  %v310_v19 = vld [vmem:[%s425_s3 + $0x34] ss:$8 sps:$4 sm:$0xff]   ;;  %v312_v20 = vld [vmem:[%s425_s3 + $0x30] ss:$8 sps:$4 sm:$0xff]   ;;  %v313_v21 = vld [vmem:[%s425_s3 + $0x24] ss:$8 sps:$4 sm:$0xff]  }
   0x5   :  { %v315_v22 = vld [vmem:[%s425_s3 + $0x20] ss:$8 sps:$4 sm:$0xff]   ;;  %v316_v23 = vld [vmem:[%s425_s3 + $0x14] ss:$8 sps:$4 sm:$0xff]   ;;  %v318_v24 = vld [vmem:[%s425_s3 + $0x10] ss:$8 sps:$4 sm:$0xff]  }
   0x6   :  { %v319_v25 = vld [vmem:[%s425_s3 + $0x4] ss:$8 sps:$4 sm:$0xff]   ;;  %v321_v26 = vld [vmem:[%s425_s3] ss:$8 sps:$4 sm:$0xff]   ;;  %v101_v47 = vshrl.u32 %v100_v46, 7 }
   0x7   :  { %199 = vmatpush1.bf16.msra.mxu0 %v303_v14  ;;  %v261_v36 = vld [vmem:[%s426_s1] ss:$0 sm:$0xff] }
   0x8   :  { %31 = vadd.xlane.f32.xlu0 %v291_v2  ;;  %200 = vmatprep.subr.bf16.mxu0 %v304_v15  ;;  %v262_v40 = vld [vmem:[%s427_s2] ss:$0 sm:$0xff]  ;;  %v102_v48 = vsub.s32 0, %v101_v47  ;;  %v106_v50 = vsub.s32 1, %v101_v47 }
   0x9   :  { %v98_v49 = vld [vmem:[%s428_s4] sm:$0x3] }
   0xa   :  { %v103_v51 = vrot.slane %v98_v49, %v102_v48  ;;  %v107_v52 = vrot.slane %v98_v49, %v106_v50 }
   0xb   :  { %201 = vmatpush1.bf16.msra.mxu0 %v306_v16 }
   0xc   :  { %202 = vmatprep.subr.bf16.mxu0 %v307_v17 }
   0xf   :  { %203 = vmatpush1.bf16.msra.mxu0 %v309_v18 }
  0x10   :  { %204 = vmatprep.subr.bf16.mxu0 %v310_v19 }
  0x13   :  { %205 = vmatpush1.bf16.msra.mxu0 %v312_v20 }
  0x14   :  { %206 = vmatprep.subr.bf16.mxu0 %v313_v21 }
  0x17   :  { %207 = vmatpush1.bf16.msra.mxu0 %v315_v22 }
  0x18   :  { %208 = vmatprep.subr.bf16.mxu0 %v316_v23 }
  0x1b   :  { %209 = vmatpush1.bf16.msra.mxu0 %v318_v24 }
  0x1c   :  { %210 = vmatprep.subr.bf16.mxu0 %v319_v25 }
  0x1f   :  { %211 = vmatpush1.bf16.msra.mxu0 %v321_v26 }
  0x8d   :  { %v30_v3 = vpop.xlane.xlu0 %29 }
  0x8e   :  { %v34_v4 = vmul.f32 0.0078125, %v30_v3 }
  0x90   :  { %v36_v5 = vsub.f32 %v290_v1, %v34_v4 }
  0x91   :  { %v32_v6 = vpop.xlane.xlu0 %31 }
  0x92   :  { %v35_v7 = vmul.f32 0.0078125, %v32_v6  ;;  %v38_v8 = vmul.f32 %v36_v5, %v36_v5 }
  0x94   :  { %v37_v9 = vsub.f32 %v291_v2, %v35_v7  ;;  %40 = vadd.xlane.f32.xlu1 %v38_v8 }
  0x96   :  { %v39_v10 = vmul.f32 %v37_v9, %v37_v9 }
  0x98   :  { %42 = vadd.xlane.f32.xlu1 %v39_v10 }
 0x11d   :  { %v41_v28 = vpop.xlane.xlu1 %40 }
 0x11e   :  { %v44_v29 = vmul.f32 0.0078125, %v41_v28 }
 0x120   :  { %v46_v30 = vadd.f32 1e-05, %v44_v29 }
 0x121   :  { %v43_v31 = vpop.xlane.xlu1 %42 }
 0x122   :  { %323 = vrsqrt.f32 %v46_v30  ;;  %v45_v32 = vmul.f32 0.0078125, %v43_v31 }
 0x124   :  { %v47_v33 = vadd.f32 1e-05, %v45_v32 }
 0x126   :  { %325 = vrsqrt.f32 %v47_v33 }
 0x12f   :  { %v324_v34 = vpop.eup %323 }
 0x130   :  { %v50_v35 = vmul.f32 %v324_v34, %v36_v5 }
 0x132   :  { %v59_v38 = vmul.f32 %v261_v36, %v50_v35 }
 0x133   :  { %v326_v37 = vpop.eup %325 }
 0x134   :  { %v51_v39 = vmul.f32 %v326_v37, %v37_v9  ;;  %v68_v42 = vadd.f32 %v262_v40, %v59_v38 }
 0x136   :  { %v60_v41 = vmul.f32 %v261_v36, %v51_v39 }
 0x138   :  { %v69_v43 = vadd.f32 %v262_v40, %v60_v41 }
 0x13a   :  { %v295_v44 = vpack.c.bf16 %v69_v43, %v68_v42 }
 0x13c   :  { %296 = vst [vmem:[#allocation2] sm:$0xff] %v295_v44  }
 0x143   :  { %v322_v45 = vld [vmem:[#allocation2] sm:$0xff]  }
 0x144   :  { %229 = vmatmul.mubr.bf16.vlgmr.msra.gmra.mxu0 %v322_v45 }
 0x204   :  { %v230_v53 = vpop.f32.mrf.mxu0 }
 0x205   :  { %v231_v54 = vadd.f32 %v230_v53, %v103_v51 }
 0x206   :  { %v232_v55 = vpop.f32.mrf.mxu0 }
 0x207   :  { %v233_v56 = vadd.f32 %v232_v55, %v107_v52  ;;  %v239_v58 = vmax.f32 %v231_v54, 0.0 }
 0x208   :  { %v234_v57 = vpop.f32.mrf.mxu0 }
 0x209   :  { %v240_v59 = vmax.f32 %v233_v56, 0.0  ;;  %v235_v60 = vadd.f32 %v234_v57, %v103_v51 }
 0x20a   :  { %v236_v61 = vpop.f32.mrf.mxu0 }
 0x20b   :  { %v286_v62 = vpack.c.bf16 %v240_v59, %v239_v58  ;;  %v237_v63 = vadd.f32 %v236_v61, %v107_v52  ;;  %v241_v0 = vmax.f32 %v235_v60, 0.0 }
 0x20d   :  { %255 = vst [vmem:[%s429_s5] sm:$0xff] %v286_v62  ;;  %v242_v1 = vmax.f32 %v237_v63, 0.0 }
 0x20f   :  { %v287_v2 = vpack.c.bf16 %v242_v1, %v241_v0 }
 0x211   :  { %256 = vst [vmem:[%s429_s5 + $0x8] sm:$0xff] %v287_v2 }

// kernel: transformer_decoder_forward.23
= control target key start
LH: loop header
LB: loop body
LE: loop exit
PB: predicated region body
PF: predicated region fallthrough
CT: control target
= control target key end

     0   :  { %s406_s1 = inlined_call_operand.vmem [shape: bf16[256,128], index: 1, kind: input, shape index: {}]   ;;  %s407_s0 = inlined_call_operand.vmem [shape: bf16[16,256], index: 0, kind: input, shape index: {}]   ;;  %s408_s2 = inlined_call_operand.vmem [shape: f32[1,128], index: 2, kind: input, shape index: {}]   ;;  %s409_s3 = inlined_call_operand.vmem [shape: bf16[16,128], index: 3, kind: input, shape index: {}]   ;;  %s410_s4 = inlined_call_operand.vmem [shape: bf16[16,128], index: 4, kind: output, shape index: {}]  }
   0x1   :  { %v299_v0 = vld [vmem:[%s406_s1 + $0x78] sm:$0xff]   ;;  %v301_v2 = vld [vmem:[%s406_s1 + $0x70] sm:$0xff]   ;;  %v303_v4 = vld [vmem:[%s406_s1 + $0x68] sm:$0xff]  }
   0x2   :  { %v300_v1 = vld [vmem:[%s406_s1 + $0x38] sm:$0xff]   ;;  %277 = vmatprep.subr.bf16.mxu0 %v299_v0  ;;  %v302_v3 = vld [vmem:[%s406_s1 + $0x30] sm:$0xff]   ;;  %v304_v5 = vld [vmem:[%s406_s1 + $0x28] sm:$0xff]  }
   0x3   :  { %278 = vmatpush3.bf16.msra.mxu0 %v300_v1  ;;  %v305_v6 = vld [vmem:[%s406_s1 + $0x60] sm:$0xff]   ;;  %v307_v8 = vld [vmem:[%s406_s1 + $0x58] sm:$0xff]   ;;  %v309_v10 = vld [vmem:[%s406_s1 + $0x50] sm:$0xff]  }
   0x4   :  { %279 = vmatprep.subr.bf16.mxu0 %v301_v2  ;;  %v306_v7 = vld [vmem:[%s406_s1 + $0x20] sm:$0xff]   ;;  %v308_v9 = vld [vmem:[%s406_s1 + $0x18] sm:$0xff]   ;;  %v310_v12 = vld [vmem:[%s406_s1 + $0x10] sm:$0xff]  }
   0x5   :  { %v317_v11 = vld [vmem:[%s407_s0 + $0x4] ss:$8 sps:$4 sm:$0xff]   ;;  %v315_v17 = vld [vmem:[%s407_s0] ss:$8 sps:$4 sm:$0xff]  }
   0x6   :  { %198 = vmatprep.mubr.bf16.mxu0 %v317_v11  ;;  %v311_v13 = vld [vmem:[%s406_s1 + $0x48] sm:$0xff]   ;;  %v313_v15 = vld [vmem:[%s406_s1 + $0x40] sm:$0xff]  }
   0x7   :  { %280 = vmatpush3.bf16.msra.mxu0 %v302_v3  ;;  %v312_v14 = vld [vmem:[%s406_s1 + $0x8] sm:$0xff]   ;;  %v314_v16 = vld [vmem:[%s406_s1] sm:$0xff]  }
   0x8   :  { %281 = vmatprep.subr.bf16.mxu0 %v303_v4  ;;  %v263_v21 = vld [vmem:[%s408_s2] ss:$0 sm:$0xff] }
   0x9   :  { %v269_v22 = vld [vmem:[%s409_s3] sm:$0xff]  }
   0xa   :  { %v270_v26 = vunpack.c.l.bf16 %v269_v22  ;;  %v271_v28 = vunpack.c.h.bf16 %v269_v22 }
   0xb   :  { %282 = vmatpush3.bf16.msra.mxu0 %v304_v5 }
   0xc   :  { %283 = vmatprep.subr.bf16.mxu0 %v305_v6 }
   0xf   :  { %284 = vmatpush3.bf16.msra.mxu0 %v306_v7 }
  0x10   :  { %285 = vmatprep.subr.bf16.mxu0 %v307_v8 }
  0x13   :  { %286 = vmatpush3.bf16.msra.mxu0 %v308_v9 }
  0x14   :  { %287 = vmatprep.subr.bf16.mxu0 %v309_v10 }
  0x17   :  { %288 = vmatpush3.bf16.msra.mxu0 %v310_v12 }
  0x18   :  { %289 = vmatprep.subr.bf16.mxu0 %v311_v13 }
  0x1b   :  { %290 = vmatpush3.bf16.msra.mxu0 %v312_v14 }
  0x1c   :  { %291 = vmatprep.subr.bf16.mxu0 %v313_v15 }
  0x1f   :  { %292 = vmatpush3.bf16.msra.mxu0 %v314_v16 }
  0x22   :  { %199 = vmatmul.mubr.bf16.vlgmr.msra.gmra.mxu0 %v315_v17 }
  0xe2   :  { %v293_v18 = vpop.f32.mrf.mxu0 }
  0xe4   :  { %v294_v19 = vpop.f32.mrf.mxu0 }
  0xe5   :  { %v295_v20 = vadd.f32 %v294_v19, %v293_v18 }
  0xe6   :  { %v296_v23 = vpop.f32.mrf.mxu0 }
  0xe7   :  { %v223_v25 = vadd.f32 %v295_v20, %v263_v21 }
  0xe8   :  { %v297_v24 = vpop.f32.mrf.mxu0 }
  0xe9   :  { %v298_v27 = vadd.f32 %v297_v24, %v296_v23  ;;  %v229_v30 = vadd.f32 %v270_v26, %v223_v25 }
  0xeb   :  { %v224_v29 = vadd.f32 %v298_v27, %v263_v21 }
  0xed   :  { %v230_v31 = vadd.f32 %v271_v28, %v224_v29 }
  0xef   :  { %v275_v32 = vpack.c.bf16 %v230_v31, %v229_v30 }
  0xf1   :  { %276 = vst [vmem:[%s410_s4] sm:$0xff] %v275_v32  }

// kernel: transformer_decoder_forward.21
= control target key start
LH: loop header
LB: loop body
LE: loop exit
PB: predicated region body
PF: predicated region fallthrough
CT: control target
= control target key end

     0   :  { %s1542_s24 = smov 0   ;;  %s1544_s25 = smov 0   ;;  %s1770_s0 = inlined_call_operand.vmem [shape: bf16[2,8,128], index: 0, kind: input, shape index: {}]   ;;  %s1771_s1 = inlined_call_operand.vmem [shape: bf16[2,8,256], index: 1, kind: input, shape index: {}, may-alias: {1,2}]   ;;  %s1772_s2 = inlined_call_operand.vmem [shape: bf16[2,8,256], index: 2, kind: input, shape index: {}, may-alias: {1,2}]   ;;  %s1773_s3 = inlined_call_operand.vmem [shape: s8[2,1,8], index: 3, kind: input, shape index: {}]   ;;  %s1774_s4 = inlined_call_operand.vmem [shape: bf16[128,128], index: 4, kind: input, shape index: {}]   ;;  %s1775_s5 = inlined_call_operand.vmem [shape: f32[1,128], index: 5, kind: input, shape index: {}]   ;;  %s1776_s6 = inlined_call_operand.vmem [shape: bf16[2,8,128], index: 6, kind: input, shape index: {}]   ;;  %s1777_s7 = inlined_call_operand.vmem [shape: bf16[2,8,128], index: 7, kind: output, shape index: {}]  }
   0x1   :  { %s1546_s26 = smov 0  }
   0x2 LB: > { %s29_s27 = sadd.s32 1, %s1488_s25  ;;  %p1278_p0 = scmp.ge.s32.totalorder %s1492_s26, 1  ;;  %s1492_s26 = sphi %s1546_s26, %s17_s26   ;;  %s1488_s25 = sphi %s1544_s25, %s1779_s25   ;;  %s1484_s24 = sphi %s1542_s24, %s1778_s24  }
   0x3   : > { %p31_p1 = scmp.ge.s32.totalorder %s29_s27, 2  ;;  %p303_p2 = scmp.lt.s32.totalorder %s1492_s26, 3 }
   0x5   : > { %s1781_s27 = smov (%p31_p1, %s29_s27), 0  ;;  %p304_p3 = pnand %p1278_p0, %p303_p2 }
   0x6   : > { %p362_p4 = scmp.lt.s32.totalorder (!%p304_p3), %s1484_s24, 1  ;;  %s1496_s13 = smov (!%p304_p3), 96  }
   0x7   : > { %307 = sbr.rel (%p304_p3) target bundleno = 1576 (0x628), region = 48  ;;  %s1497_s14 = smov (!%p304_p3), 64  }
   0x8   : > { %s1501_s18 = smov (!%p304_p3), 32  }
   0xc   : > { %v1494_v0 = vmov 0.0   ;;  %vm1495_vm0 = vmmov 0   ;;  %s1783_s24 = smov (!%p362_p4, %s1484_s24), 1  ;;  %vm429_vm1 = vcmask 261120   ;;  %vm404_vm2 = vcmask 7168  }
   0xd   : > { %1335 = vmatprep.subr.bf16.mxu0 %v1494_v0  ;;  %413 = vst [vmem:[#allocation4] sm:$0xff] %v1494_v0  ;;  %1337 = vmatprep.mubr.msk.bf16.mxu0 %vm1495_vm0, %v1494_v0  ;;  %s1308_s28 = sshll.u32 %s1783_s24, 3  ;;  %s1576_s9 = sshll.u32 %s1783_s24, 2  ;;  %v1498_v8 = vmov -inf   ;;  %409 = vst.msk [vmem:[#allocation3] sm:$0xff] %vm404_vm2, %v1494_v0  ;;  %v425_v16 = vlaneseq  ;;  %vm477_vm4 = vcmask 64512  }
   0xe   : > { %1359 = vmatprep.subr.bf16.mxu1 %v1494_v0  ;;  %1361 = vmatprep.mubr.msk.bf16.mxu1 %vm1495_vm0, %v1494_v0  ;;  %s374_s8 = scalar_lea.vmem %s1771_s1, %s1308_s28  ;;  %s365_s12 = scalar_lea.vmem %s1770_s0, %s1576_s9  ;;  %405 = vst.msk [vmem:[#allocation2] sm:$0xff] %vm404_vm2, %v1498_v8  ;;  %406 = vst.msk [vmem:[#allocation2 + $0x8] sm:$0xff] %vm404_vm2, %v1498_v8  ;;  %v1499_v20 = vmov -1e+30   ;;  %v1500_v29 = vmov 0   ;;  %vm512_vm5 = vcmask 1043456  }
   0xf   : > { %v418_v1 = vld [vmem:[%s374_s8] sm:$0xf]  ;;  %407 = vst.msk [vmem:[#allocation2 + $0x10] sm:$0xff] %vm404_vm2, %v1498_v8  ;;  %408 = vst.msk [vmem:[#allocation2 + $0x18] sm:$0xff] %vm404_vm2, %v1498_v8  ;;  %s390_s17 = scalar_lea.vmem %s1773_s3, %s1783_s24  ;;  %v426_v18 = vshrl.u32 %v425_v16, 7  ;;  %1435 = vset.pattern.permute.xlu0 %v1500_v29  ;;  %1436 = vset.pattern.permute.xlu1 %v1500_v29  ;;  %s1210_s21 = scalar_lea.vmem %s1772_s2, %s1308_s28  ;;  %vm702_vm6 = vcmask 523520  }
  0x10   : > { %v434_v2 = vsel %vm429_vm1, %v418_v1, 0  ;;  %v1289_v3 = vcombine.low %v418_v1, %v418_v1  ;;  %v414_v4 = vld [vmem:[%s365_s12] sm:$0xf]  ;;  %410 = vst.msk [vmem:[#allocation3 + $0x8] sm:$0xff] %vm404_vm2, %v1494_v0  ;;  %411 = vst.msk [vmem:[#allocation3 + $0x10] sm:$0xff] %vm404_vm2, %v1494_v0  ;;  %vm841_vm7 = vcmask 785920   ;;  %s398_s29 = scalar_lea.vmem %s1777_s7, %s1576_s9 }
  0x11   : > { %1336 = vmatpush3.bf16.xpose.msra.mxu0 %v434_v2  ;;  %v415_v5 = vunpack.c.l.bf16 %v414_v4  ;;  %412 = vst.msk [vmem:[#allocation3 + $0x18] sm:$0xff] %vm404_vm2, %v1494_v0  ;;  %v420_v14 = vld [vmem:[%s390_s17] sm:$0x1]  ;;  %v427_v19 = vsub.s32 0, %v426_v18  ;;  %v1286_v36 = vld [vmem:[%s1210_s21 + $0x4] sm:$0xf]  ;;  %s394_s21 = scalar_lea.vmem %s1776_s6, %s1576_s9 }
  0x12   : > { %565 = vrot.lane.b32.xlu1 %v1289_v3, %s1496_s13  ;;  %1341 = vmatprep.subr.bf16.mxu0 %v1494_v0  ;;  %v421_v15 = vunpack.c.0.s8 %v420_v14  ;;  %v514_v39 = vsel %vm512_vm5, %v1286_v36, 0  ;;  %vm980_vm8 = vcmask 1048320  }
  0x13   : > { %v416_v6 = vmul.f32 0.17677669, %v415_v5 }
  0x14   : > { %v422_v17 = vcvt.s32.f32 %v421_v15 }
  0x15   : > { %v417_v7 = vpack.c.bf16 %v416_v6, %v416_v6  ;;  %v1627_v34 = vld [vmem:[#allocation2] sm:$0xff]  ;;  %v614_v8 = vld [vmem:[#allocation2 + $0x8] sm:$0xff] }
  0x16   : > { %vm423_vm3 = vcmp.gt.f32.partialorder %v422_v17, 0.5  ;;  %v1659_v51 = vld [vmem:[#allocation2 + $0x10] sm:$0xff] }
  0x17   : > { %560 = vrot.lane.b32.xlu1 %v417_v7, %s1496_s13  ;;  %v424_v21 = vsel %vm423_vm3, 0.0, %v1499_v20 }
  0x18   : > { %1338 = vmatmul.mubr.msk.bf16.vlgmr.msra.gmra.mxu0 %vm429_vm1, %v417_v7  ;;  %v1616_v22 = vrot.slane %v424_v21, %v427_v19 }
  0x19   : > { %1343 = vmatprep.mubr.msk.bf16.mxu0 %vm1495_vm0, %v1494_v0  ;;  %1342 = vmatpush3.bf16.msra.mxu0 %v514_v39 }
  0x1a   : > { %1347 = vmatprep.subr.bf16.mxu0 %v1494_v0 }
  0x1b   : > { %707 = vrot.lane.b32.xlu1 %v1289_v3, %s1497_s14 }
  0x1f   : > { %705 = vrot.lane.b32.xlu1 %v417_v7, %s1497_s14 }
  0x23   : > { %846 = vrot.lane.b32.xlu1 %v1289_v3, %s1501_s18 }
  0x27   : > { %844 = vrot.lane.b32.xlu1 %v417_v7, %s1501_s18 }
  0x84   : > { %v1603_v9 = vpop.permute.xlu1 %565 }
  0x85   : > { %v571_v49 = vsel %vm429_vm1, %v1603_v9, 0 }
  0x89   : > { %v1605_v10 = vpop.permute.xlu1 %560 }
  0x8d   : > { %v708_v11 = vpop.permute.xlu1 %707 }
  0x8e   : > { %v713_v12 = vsel %vm429_vm1, %v708_v11, 0  ;;  %v895_v11 = vld [vmem:[#allocation2 + $0x18] sm:$0xff] }
  0x8f   : > { %1360 = vmatpush3.bf16.xpose.msra.mxu1 %v713_v12 }
  0x90   : > { %1371 = vmatprep.subr.bf16.mxu1 %v1494_v0 }
  0x91   : > { %v706_v13 = vpop.permute.xlu1 %705 }
  0x95   : > { %v847_v40 = vpop.permute.xlu1 %846 }
  0x96   : > { %1362 = vmatmul.mubr.msk.bf16.vlgmr.msra.gmra.mxu1 %vm429_vm1, %v706_v13  ;;  %v852_v41 = vsel %vm429_vm1, %v847_v40, 0  ;;  %v1291_v13 = vcombine.low %v1286_v36, %v1286_v36 }
  0x97   : > { %1373 = vmatprep.mubr.msk.bf16.mxu1 %vm1495_vm0, %v1494_v0  ;;  %1372 = vmatpush3.bf16.xpose.msra.mxu1 %v852_v41 }
  0x98   : > { %1383 = vmatprep.subr.bf16.mxu1 %v1494_v0 }
  0x99   : > { %v845_v43 = vpop.permute.xlu1 %844 }
  0x9e   : > { %1374 = vmatmul.mubr.msk.bf16.vlgmr.msra.gmra.mxu1 %vm429_vm1, %v845_v43 }
  0x9f   : > { %1399 = vmatprep.mubr.msk.bf16.mxu1 %vm1495_vm0, %v1494_v0 }
  0xd8   : > { %v470_v23 = vpop.f32.mrf.mxu0 }
  0xd9   : > { %v471_v24 = vadd.f32 %v470_v23, %v1616_v22 }
  0xda   : > { %v1339_v25 = vpop.f32.mrf.mxu0 }
  0xdb   : > { %v478_v26 = vsel %vm477_vm4, %v471_v24, -inf }
  0xdc   : > { %479 = vmax.xlane.f32.xlu0 %v478_v26  ;;  %v473_v27 = vpop.f32.mrf.mxu0 }
  0xde   : > { %v1340_v28 = vpop.f32.mrf.mxu0 }
 0x156   : > { %v749_v30 = vpop.f32.mrf.mxu1 }
 0x157   : > { %v1642_v42 = vadd.f32 %v749_v30, %v1616_v22 }
 0x158   : > { %v1363_v31 = vpop.f32.mrf.mxu1 }
 0x159   : > { %v757_v44 = vsel %vm477_vm4, %v1642_v42, -inf }
 0x15a   : > { %v752_v32 = vpop.f32.mrf.mxu1 }
 0x15c   : > { %v1364_v33 = vpop.f32.mrf.mxu1 }
 0x15e   : > { %v888_v55 = vpop.f32.mrf.mxu1 }
 0x15f   : > { %v889_v2 = vadd.f32 %v888_v55, %v1616_v22 }
 0x160   : > { %v1375_v56 = vpop.f32.mrf.mxu1 }
 0x161   : > { %v896_v6 = vsel %vm477_vm4, %v889_v2, -inf }
 0x162   : > { %v891_v57 = vpop.f32.mrf.mxu1 }
 0x164   : > { %v1376_v58 = vpop.f32.mrf.mxu1 }
 0x165   : > { %v480_v35 = vpop.xlane.xlu0 %479 }
 0x166   : > { %v1630_v37 = vmax.f32 %v1627_v34, %v480_v35 }
 0x168   : > { %v482_v38 = vsub.f32 %v1627_v34, %v1630_v37  ;;  %558 = vst.msk [vmem:[#allocation2] sm:$0xff] %vm404_vm2, %v1630_v37  ;;  %487 = vperm.xlu0 %1435, %v1630_v37  }
 0x187   : > { %758 = vmax.xlane.f32.xlu0 %v757_v44 }
 0x1e3   : > { %v488_v45 = vpop.permute.xlu0 %487 }
 0x1e4   : > { %v490_v46 = vsub.f32 %v471_v24, %v488_v45  ;;  %v483_v45 = vmul.f32 1.442695, %v482_v38 }
 0x1e6   : > { %v491_v47 = vmul.f32 1.442695, %v490_v46 }
 0x1e8   : > { %1446 = vpow2.f32 %v491_v47 }
 0x1f5   : > { %v1447_v48 = vpop.eup %1446 }
 0x1f6   : > { %v508_v50 = vpack.c.bf16 %v1447_v48, %v1447_v48  ;;  %v495_v17 = vsel %vm477_vm4, %v1447_v48, 0.0 }
 0x1f8   : > { %1344 = vmatmul.mubr.msk.bf16.vlgmr.msra.gmra.mxu0 %vm477_vm4, %v508_v50  ;;  %v493_v50 = vld [vmem:[#allocation3] sm:$0xff] }
 0x1f9   : > { %1348 = vmatpush3.bf16.xpose.msra.mxu0 %v571_v49  ;;  %1349 = vmatprep.mubr.msk.bf16.mxu0 %vm1495_vm0, %v1494_v0 }
 0x1fa   : > { %1353 = vmatprep.subr.bf16.mxu0 %v1494_v0 }
 0x200   : > { %1350 = vmatmul.mubr.msk.bf16.vlgmr.msra.gmra.mxu0 %vm429_vm1, %v1605_v10 }
 0x201   : > { %1355 = vmatprep.mubr.msk.bf16.mxu0 %vm1495_vm0, %v1494_v0 }
 0x210   : > { %v759_v52 = vpop.xlane.xlu0 %758 }
 0x211   : > { %v1662_v53 = vmax.f32 %v1659_v51, %v759_v52 }
 0x213   : > { %v761_v54 = vsub.f32 %v1659_v51, %v1662_v53  ;;  %843 = vst.msk [vmem:[#allocation2 + $0x10] sm:$0xff] %vm404_vm2, %v1662_v53  ;;  %766 = vperm.xlu0 %1435, %v1662_v53  }
 0x215   : > { %v762_v46 = vmul.f32 1.442695, %v761_v54  ;;  %v631_v54 = vld [vmem:[#allocation3 + $0x8] sm:$0xff] }
 0x28e   : > { %v767_v18 = vpop.permute.xlu0 %766 }
 0x28f   : > { %v769_v19 = vsub.f32 %v1642_v42, %v767_v18 }
 0x2b8   : > { %v1669_v59 = vpop.f32.mrf.mxu0 }
 0x2ba   : > { %v1345_v60 = vpop.f32.mrf.mxu0 }
 0x2bb   : > { %v773_v60 = vld [vmem:[#allocation3 + $0x10] sm:$0xff] }
 0x2bc   : > { %v553_v61 = vpop.f32.mrf.mxu0 }
 0x2be   : > { %v1346_v62 = vpop.f32.mrf.mxu0 }
 0x2c0   : > { %v607_v63 = vpop.f32.mrf.mxu0 }
 0x2c1   : > { %v608_v1 = vadd.f32 %v607_v63, %v1616_v22  ;;  %v770_v22 = vmul.f32 1.442695, %v769_v19 }
 0x2c2   : > { %v1351_v3 = vpop.f32.mrf.mxu0 }
 0x2c3   : > { %v615_v4 = vsel %vm477_vm4, %v608_v1, -inf }
 0x2c4   : > { %616 = vmax.xlane.f32.xlu1 %v615_v4  ;;  %v610_v5 = vpop.f32.mrf.mxu0 }
 0x2c6   : > { %v1352_v7 = vpop.f32.mrf.mxu0 }
 0x2c8   : > { %897 = vmax.xlane.f32.xlu1 %v896_v6 }
 0x34d   : > { %v617_v9 = vpop.xlane.xlu1 %616 }
 0x34e   : > { %v618_v10 = vmax.f32 %v614_v8, %v617_v9 }
 0x350   : > { %v619_v12 = vsub.f32 %v614_v8, %v618_v10  ;;  %704 = vst.msk [vmem:[#allocation2 + $0x8] sm:$0xff] %vm404_vm2, %v618_v10  ;;  %624 = vperm.xlu1 %1436, %v618_v10  }
 0x351   : > { %v898_v14 = vpop.xlane.xlu1 %897 }
 0x352   : > { %v899_v15 = vmax.f32 %v895_v11, %v898_v14  ;;  %v620_v41 = vmul.f32 1.442695, %v619_v12 }
 0x354   : > { %649 = vrot.lane.b32.xlu1 %v1291_v13, %s1496_s13  ;;  %v900_v16 = vsub.f32 %v895_v11, %v899_v15  ;;  %982 = vst.msk [vmem:[#allocation2 + $0x18] sm:$0xff] %vm404_vm2, %v899_v15 }
 0x356   : > { %v901_v48 = vmul.f32 1.442695, %v900_v16 }
 0x358   : > { %905 = vperm.xlu1 %1436, %v899_v15  }
 0x35c   : > { %788 = vrot.lane.b32.xlu1 %v1291_v13, %s1497_s14 }
 0x360   : > { %927 = vrot.lane.b32.xlu1 %v1291_v13, %s1501_s18 }
 0x384   : > { %496 = vadd.xlane.f32.xlu1 %v495_v17 }
 0x3cb   : > { %v625_v20 = vpop.permute.xlu1 %624 }
 0x3cc   : > { %v627_v21 = vsub.f32 %v608_v1, %v625_v20  ;;  %v912_v1 = vld [vmem:[#allocation3 + $0x18] sm:$0xff] }
 0x3ce   : > { %v628_v23 = vmul.f32 1.442695, %v627_v21 }
 0x3cf   : > { %v650_v24 = vpop.permute.xlu1 %649 }
 0x3d0   : > { %1448 = vpow2.f32 %v628_v23  ;;  %v655_v25 = vsel %vm512_vm5, %v650_v24, 0 }
 0x3d1   : > { %1354 = vmatpush3.bf16.msra.mxu0 %v655_v25  ;;  %1450 = vpow2.f32 %v770_v22 }
 0x3d2   : > { %1365 = vmatprep.subr.bf16.mxu0 %v1494_v0 }
 0x3d3   : > { %v906_v26 = vpop.permute.xlu1 %905 }
 0x3d4   : > { %v908_v27 = vsub.f32 %v889_v2, %v906_v26  ;;  %v1438_v26 = vld [vmem:[%s1774_s4 + $0x38] sm:$0xff]  }
 0x3d5   : > { %1384 = vmatpush3.bf16.msra.mxu1 %v1438_v26 }
 0x3d6   : > { %v909_v28 = vmul.f32 1.442695, %v908_v27  ;;  %1385 = vmatprep.subr.bf16.mxu1 %v1494_v0  ;;  %v1439_v27 = vld [vmem:[%s1774_s4 + $0x30] sm:$0xff]  }
 0x3d7   : > { %v789_v29 = vpop.permute.xlu1 %788 }
 0x3d8   : > { %1452 = vpow2.f32 %v909_v28  ;;  %v794_v33 = vsel %vm512_vm5, %v789_v29, 0  ;;  %v1440_v28 = vld [vmem:[%s1774_s4 + $0x28] sm:$0xff]   ;;  %v1441_v29 = vld [vmem:[%s1774_s4 + $0x20] sm:$0xff]  }
 0x3d9   : > { %1454 = vpow2.f32 %v620_v41  ;;  %1386 = vmatpush3.bf16.msra.mxu1 %v1439_v27 }
 0x3da   : > { %1456 = vpow2.f32 %v483_v45  ;;  %1387 = vmatprep.subr.bf16.mxu1 %v1494_v0 }
 0x3db   : > { %v928_v39 = vpop.permute.xlu1 %927  ;;  %1458 = vpow2.f32 %v762_v46 }
 0x3dc   : > { %v933_v44 = vsel %vm512_vm5, %v928_v39, 0  ;;  %1460 = vpow2.f32 %v901_v48 }
 0x3dd   : > { %v1449_v30 = vpop.eup %1448  ;;  %1388 = vmatpush3.bf16.msra.mxu1 %v1440_v28 }
 0x3de   : > { %v633_v31 = vsel %vm477_vm4, %v1449_v30, 0.0  ;;  %v645_v32 = vpack.c.bf16 %v1449_v30, %v1449_v30  ;;  %v1451_v35 = vpop.eup %1450  ;;  %1389 = vmatprep.subr.bf16.mxu1 %v1494_v0  ;;  %v1442_v30 = vld [vmem:[%s1774_s4 + $0x18] sm:$0xff]  }
 0x3df   : > { %634 = vadd.xlane.f32.xlu0 %v633_v31  ;;  %v775_v36 = vsel %vm477_vm4, %v1451_v35, 0.0  ;;  %v787_v43 = vpack.c.bf16 %v1451_v35, %v1451_v35  ;;  %v1443_v31 = vld [vmem:[%s1774_s4 + $0x10] sm:$0xff]  }
 0x3e0   : > { %1356 = vmatmul.mubr.msk.bf16.vlgmr.msra.gmra.mxu0 %vm477_vm4, %v645_v32  ;;  %v1444_v32 = vld [vmem:[%s1774_s4 + $0x8] sm:$0xff]  }
 0x3e1   : > { %1366 = vmatpush3.bf16.msra.mxu0 %v794_v33  ;;  %1367 = vmatprep.mubr.msk.bf16.mxu0 %vm1495_vm0, %v1494_v0  ;;  %v1445_v33 = vld [vmem:[%s1774_s4] sm:$0xff]  }
 0x3e2   : > { %1377 = vmatprep.subr.bf16.mxu0 %v1494_v0  ;;  %1390 = vmatpush3.bf16.msra.mxu1 %v1441_v29 }
 0x3e3   : > { %776 = vadd.xlane.f32.xlu0 %v775_v36  ;;  %1391 = vmatprep.subr.bf16.mxu1 %v1494_v0 }
 0x3e5   : > { %v1453_v40 = vpop.eup %1452 }
 0x3e6   : > { %v914_v42 = vsel %vm477_vm4, %v1453_v40, 0.0  ;;  %v926_v47 = vpack.c.bf16 %v1453_v40, %v1453_v40  ;;  %v1455_v34 = vpop.eup %1454  ;;  %1392 = vmatpush3.bf16.msra.mxu1 %v1442_v30 }
 0x3e7   : > { %915 = vadd.xlane.f32.xlu1 %v914_v42  ;;  %v1457_v37 = vpop.eup %1456  ;;  %v632_v57 = vmul.f32 %v1455_v34, %v631_v54  ;;  %1393 = vmatprep.subr.bf16.mxu1 %v1494_v0 }
 0x3e8   : > { %1368 = vmatmul.mubr.msk.bf16.vlgmr.msra.gmra.mxu0 %vm477_vm4, %v787_v43  ;;  %v1459_v38 = vpop.eup %1458  ;;  %v494_v52 = vmul.f32 %v1457_v37, %v493_v50 }
 0x3e9   : > { %1378 = vmatpush3.bf16.msra.mxu0 %v933_v44  ;;  %1379 = vmatprep.mubr.msk.bf16.mxu0 %vm1495_vm0, %v1494_v0  ;;  %v1461_v49 = vpop.eup %1460  ;;  %v774_v62 = vmul.f32 %v1459_v38, %v773_v60 }
 0x3ea   : > { %v913_v3 = vmul.f32 %v1461_v49, %v912_v1  ;;  %1394 = vmatpush3.bf16.msra.mxu1 %v1443_v31  ;;  %v1297_v1 = vld [vmem:[%s1775_s5] ss:$0 sm:$0xff] }
 0x3eb   : > { %1395 = vmatprep.subr.bf16.mxu1 %v1494_v0 }
 0x3ee   : > { %1396 = vmatpush3.bf16.msra.mxu1 %v1444_v32 }
 0x3ef   : > { %1397 = vmatprep.subr.bf16.mxu1 %v1494_v0 }
 0x3f0   : > { %1380 = vmatmul.mubr.msk.bf16.vlgmr.msra.gmra.mxu0 %vm477_vm4, %v926_v47 }
 0x3f2   : > { %1398 = vmatpush3.bf16.msra.mxu1 %v1445_v33 }
 0x3f8   : > { %641 = vperm.xlu1 %1436, %v1455_v34  }
 0x3f9   : > { %504 = vperm.xlu0 %1435, %v1457_v37  }
 0x3fd   : > { %783 = vperm.xlu0 %1435, %v1459_v38  }
 0x401   : > { %922 = vperm.xlu0 %1435, %v1461_v49  }
 0x40d   : > { %v497_v55 = vpop.xlane.xlu1 %496 }
 0x40e   : > { %v498_v56 = vadd.f32 %v497_v55, %v494_v52 }
 0x410   : > { %500 = vst.msk [vmem:[#allocation3] sm:$0xff] %vm404_vm2, %v498_v56 }
 0x417   : > { %v987_v51 = vld [vmem:[#allocation3] sm:$0xff] }
 0x418   : > { %1462 = vrcp.f32 %v987_v51 }
 0x425   : > { %v1463_v53 = vpop.eup %1462 }
 0x426   : > { %991 = vperm.xlu0 %1435, %v1463_v53  }
 0x468   : > { %v635_v58 = vpop.xlane.xlu0 %634 }
 0x469   : > { %v636_v61 = vadd.f32 %v635_v58, %v632_v57 }
 0x46b   : > { %637 = vst.msk [vmem:[#allocation3 + $0x8] sm:$0xff] %vm404_vm2, %v636_v61 }
 0x46c   : > { %v777_v63 = vpop.xlane.xlu0 %776 }
 0x46d   : > { %v778_v2 = vadd.f32 %v777_v63, %v774_v62  ;;  %v1139_v63 = vld [vmem:[%s394_s21] sm:$0xf] }
 0x46f   : > { %779 = vst.msk [vmem:[#allocation3 + $0x10] sm:$0xff] %vm404_vm2, %v778_v2  ;;  %v1140_v2 = vunpack.c.l.bf16 %v1139_v63 }
 0x470   : > { %v916_v4 = vpop.xlane.xlu1 %915 }
 0x471   : > { %v917_v5 = vadd.f32 %v916_v4, %v913_v3 }
 0x472   : > { %v997_v14 = vld [vmem:[#allocation3 + $0x8] sm:$0xff] }
 0x473   : > { %918 = vst.msk [vmem:[#allocation3 + $0x18] sm:$0xff] %vm404_vm2, %v917_v5 }
 0x474   : > { %v505_v6 = vpop.permute.xlu0 %504  ;;  %v642_v36 = vpop.permute.xlu1 %641 }
 0x475   : > { %v507_v7 = vmul.f32 0.0, %v505_v6 }
 0x476   : > { %v1007_v8 = vld [vmem:[#allocation3 + $0x10] sm:$0xff] }
 0x477   : > { %v556_v9 = vadd.f32 %v1669_v59, %v507_v7  ;;  %1464 = vrcp.f32 %v1007_v8 }
 0x478   : > { %1466 = vrcp.f32 %v997_v14  ;;  %v784_v42 = vpop.permute.xlu0 %783 }
 0x479   : > { %557 = vst.msk [vmem:[#allocation4] sm:$0xff] %vm429_vm1, %v556_v9 }
 0x47a   : > { %v1017_v17 = vld [vmem:[#allocation3 + $0x18] sm:$0xff] }
 0x47b   : > { %1468 = vrcp.f32 %v1017_v17 }
 0x47c   : > { %v923_v47 = vpop.permute.xlu0 %922 }
 0x480   : > { %v638_v35 = vld [vmem:[#allocation4] sm:$0xff] }
 0x481   : > { %v644_v39 = vmul.f32 %v642_v36, %v638_v35 }
 0x484   : > { %v1465_v10 = vpop.eup %1464 }
 0x485   : > { %1011 = vperm.xlu0 %1435, %v1465_v10   ;;  %v1467_v22 = vpop.eup %1466 }
 0x488   : > { %v1469_v25 = vpop.eup %1468 }
 0x4a0   : > { %v691_v11 = vpop.f32.mrf.mxu0 }
 0x4a1   : > { %698 = vrot.lane.b32.xlu1 %v691_v11, %s1501_s18  ;;  %v992_v38 = vpop.permute.xlu0 %991 }
 0x4a2   : > { %v1357_v12 = vpop.f32.mrf.mxu0 }
 0x4a4   : > { %v694_v13 = vpop.f32.mrf.mxu0 }
 0x4a6   : > { %v1358_v15 = vpop.f32.mrf.mxu0 }
 0x4a8   : > { %v830_v16 = vpop.f32.mrf.mxu0 }
 0x4a9   : > { %837 = vrot.lane.b32.xlu1 %v830_v16, %s1497_s14 }
 0x4aa   : > { %v1369_v18 = vpop.f32.mrf.mxu0 }
 0x4ac   : > { %v833_v59 = vpop.f32.mrf.mxu0 }
 0x4ae   : > { %v1370_v19 = vpop.f32.mrf.mxu0 }
 0x4b0   : > { %v969_v20 = vpop.f32.mrf.mxu0 }
 0x4b1   : > { %976 = vrot.lane.b32.xlu1 %v969_v20, %s1496_s13 }
 0x4b2   : > { %v1381_v21 = vpop.f32.mrf.mxu0 }
 0x4b4   : > { %v972_v23 = vpop.f32.mrf.mxu0 }
 0x4b5   : > { %1001 = vperm.xlu1 %1436, %v1467_v22  }
 0x4b6   : > { %v1382_v24 = vpop.f32.mrf.mxu0 }
 0x4b9   : > { %1021 = vperm.xlu1 %1436, %v1469_v25  }
 0x500   : > { %v1012_v51 = vpop.permute.xlu0 %1011 }
 0x513   : > { %v699_v40 = vpop.permute.xlu1 %698 }
 0x514   : > { %v701_v41 = vadd.f32 %v699_v40, %v644_v39 }
 0x516   : > { %703 = vst.msk [vmem:[#allocation4] sm:$0xff] %vm702_vm6, %v701_v41 }
 0x51b   : > { %v838_v45 = vpop.permute.xlu1 %837 }
 0x51d   : > { %v780_v43 = vld [vmem:[#allocation4] sm:$0xff] }
 0x51e   : > { %v786_v44 = vmul.f32 %v784_v42, %v780_v43 }
 0x520   : > { %v840_v46 = vadd.f32 %v838_v45, %v786_v44 }
 0x522   : > { %842 = vst.msk [vmem:[#allocation4] sm:$0xff] %vm841_vm7, %v840_v46 }
 0x523   : > { %v977_v34 = vpop.permute.xlu1 %976 }
 0x529   : > { %v919_v48 = vld [vmem:[#allocation4] sm:$0xff] }
 0x52a   : > { %v925_v0 = vmul.f32 %v923_v47, %v919_v48 }
 0x52c   : > { %v979_v37 = vadd.f32 %v977_v34, %v925_v0 }
 0x52e   : > { %981 = vst.msk [vmem:[#allocation4] sm:$0xff] %vm980_vm8, %v979_v37 }
 0x530   : > { %v1002_v55 = vpop.permute.xlu1 %1001 }
 0x534   : > { %v1022_v58 = vpop.permute.xlu1 %1021 }
 0x535   : > { %v986_v49 = vld [vmem:[#allocation4] sm:$0xff] }
 0x536   : > { %v994_v50 = vmul.f32 %v992_v38, %v986_v49 }
 0x538   : > { %995 = vst.msk [vmem:[#allocation4] sm:$0xff] %vm429_vm1, %v994_v50 }
 0x53f   : > { %v996_v52 = vld [vmem:[#allocation4] sm:$0xff] }
 0x540   : > { %v1004_v56 = vmul.f32 %v1002_v55, %v996_v52 }
 0x542   : > { %1005 = vst.msk [vmem:[#allocation4] sm:$0xff] %vm702_vm6, %v1004_v56 }
 0x549   : > { %v1006_v53 = vld [vmem:[#allocation4] sm:$0xff] }
 0x54a   : > { %v1014_v54 = vmul.f32 %v1012_v51, %v1006_v53 }
 0x54c   : > { %1015 = vst.msk [vmem:[#allocation4] sm:$0xff] %vm841_vm7, %v1014_v54 }
 0x553   : > { %v1016_v57 = vld [vmem:[#allocation4] sm:$0xff] }
 0x554   : > { %v1024_v60 = vmul.f32 %v1022_v58, %v1016_v57 }
 0x556   : > { %1025 = vst.msk [vmem:[#allocation4] sm:$0xff] %vm980_vm8, %v1024_v60 }
 0x55d   : > { %v1026_v61 = vld [vmem:[#allocation4] sm:$0xff] }
 0x55e   : > { %v1027_v62 = vpack.c.bf16 %v1026_v61, %v1026_v61 }
 0x560   : > { %1400 = vmatmul.mubr.bf16.vlgmr.msra.gmra.mxu1 %v1027_v62 }
 0x620   : > { %v1133_v3 = vpop.f32.mrf.mxu1 }
 0x621   : > { %v1134_v4 = vadd.f32 %v1297_v1, %v1133_v3 }
 0x622   : > { %v1401_v5 = vpop.f32.mrf.mxu1 }
 0x623   : > { %v1141_v6 = vadd.f32 %v1140_v2, %v1134_v4 }
 0x624   : > { %v1136_v7 = vpop.f32.mrf.mxu1 }
 0x625   : > { %v1142_v8 = vpack.c.bf16 %v1141_v6, %v1141_v6 }
 0x626   : > { %v1402_v9 = vpop.f32.mrf.mxu1 }
 0x627   : > { %1143 = vst [vmem:[%s398_s29] sm:$0xf] %v1142_v8 }
 0x628 PF: > { %s17_s26 = sadd.s32 1, %s1492_s26   ;;  %s1778_s24 = smov %s1488_s25 }
 0x629   : > { %p14_p5 = scmp.ge.s32.totalorder %s17_s26, 4   ;;  %s1779_s25 = smov %s1781_s27 }
 0x62b   :  { %16 = sbr.rel (!%p14_p5) target bundleno = 2 (0x2), region = 104 }

// kernel: transformer_decoder_forward.32
= control target key start
LH: loop header
LB: loop body
LE: loop exit
PB: predicated region body
PF: predicated region fallthrough
CT: control target
= control target key end

     0   :  { %s148_s0 = inlined_call_operand.vmem [shape: bf16[16,128], index: 0, kind: input, shape index: {}]   ;;  %s149_s1 = inlined_call_operand.vmem [shape: f32[1,128], index: 1, kind: input, shape index: {}]   ;;  %s150_s2 = inlined_call_operand.vmem [shape: f32[1,128], index: 2, kind: input, shape index: {}]   ;;  %s151_s3 = inlined_call_operand.hbm [shape: f32[16,128], index: 3, kind: output, shape index: {}]  }
   0x1   :  { %v81_v0 = vld [vmem:[%s148_s0] sm:$0xff]  }
   0x2   :  { %8 = vsyncpa [#allocation3], 0  ;;  %v82_v1 = vunpack.c.l.bf16 %v81_v0  ;;  %v83_v2 = vunpack.c.h.bf16 %v81_v0  ;;  %v78_v18 = vld [vmem:[%s149_s1] ss:$0 sm:$0xff]  ;;  %s113_s17 = smov [#allocation2]  }
   0x3   :  { %v79_v20 = vld [vmem:[%s150_s2] ss:$0 sm:$0xff]  ;;  %s67_s18 = sshll.u32 %s113_s17, 4  ;;  %s68_s18 = int_to_ptr.vmem [resolvable:$true] %s67_s18 }
   0x4   :  { %19 = vadd.xlane.f32.xlu0 %v82_v1  ;;  %s91_s19 = scalar_lea.vmem %s68_s18, 256  ;;  %p96_p1 = scmp.lt.s32.totalorder %s68_s18, %s68_s18 }
   0x5   :  { %p92_p0 = scmp.ne.s32.totalorder %s68_s18, %s91_s19  ;;  %p97_p2 = scmp.lt.s32.totalorder %s91_s19, %s91_s19 }
   0x7   :  { %p98_p3 = por %p97_p2, %p96_p1 }
   0x8   :  { %21 = vadd.xlane.f32.xlu0 %v83_v2 }
   0x9   :  { %p99_p4 = pnand %p98_p3, %p92_p0 }
  0x8d   :  { %v20_v3 = vpop.xlane.xlu0 %19 }
  0x8e   :  { %v24_v4 = vmul.f32 0.0078125, %v20_v3 }
  0x90   :  { %v26_v5 = vsub.f32 %v82_v1, %v24_v4 }
  0x91   :  { %v22_v6 = vpop.xlane.xlu0 %21 }
  0x92   :  { %v25_v7 = vmul.f32 0.0078125, %v22_v6  ;;  %v28_v8 = vmul.f32 %v26_v5, %v26_v5 }
  0x94   :  { %v27_v9 = vsub.f32 %v83_v2, %v25_v7  ;;  %30 = vadd.xlane.f32.xlu1 %v28_v8 }
  0x96   :  { %v29_v10 = vmul.f32 %v27_v9, %v27_v9 }
  0x98   :  { %32 = vadd.xlane.f32.xlu1 %v29_v10 }
 0x11d   :  { %v31_v11 = vpop.xlane.xlu1 %30 }
 0x11e   :  { %v34_v12 = vmul.f32 0.0078125, %v31_v11 }
 0x120   :  { %v36_v13 = vadd.f32 1e-05, %v34_v12 }
 0x121   :  { %v33_v14 = vpop.xlane.xlu1 %32 }
 0x122   :  { %87 = vrsqrt.f32 %v36_v13  ;;  %v35_v15 = vmul.f32 0.0078125, %v33_v14 }
 0x124   :  { %v37_v16 = vadd.f32 1e-05, %v35_v15 }
 0x126   :  { %89 = vrsqrt.f32 %v37_v16 }
 0x12f   :  { %v88_v17 = vpop.eup %87 }
 0x130   :  { %v40_v19 = vmul.f32 %v88_v17, %v26_v5 }
 0x132   :  { %v49_v21 = vmul.f32 %v78_v18, %v40_v19 }
 0x133   :  { %v90_v22 = vpop.eup %89 }
 0x134   :  { %v41_v23 = vmul.f32 %v90_v22, %v27_v9  ;;  %v58_v24 = vadd.f32 %v79_v20, %v49_v21 }
 0x136   :  { %v50_v25 = vmul.f32 %v78_v18, %v41_v23  ;;  %60 = vst [vmem:[#allocation2] sm:$0xff] %v58_v24 }
 0x138   :  { %v59_v26 = vadd.f32 %v79_v20, %v50_v25 }
 0x13a   :  { %61 = vst [vmem:[#allocation2 + $0x8] sm:$0xff] %v59_v26 }
 0x13b   :  { %102 = shalt.err (!%p99_p4)
}
 0x13c   :  { %s114_s1 = smov 128   ;;  %s115_s2 = smov 8  }
 0x13d   :  { %73 = dma.vmem_to_hbm [thread:$0]  %s68_s18, 256, %s151_s3, [#allocation3], %s114_s1, %s114_s1, %s115_s2  }
 0x13e   :  { %111 = dma.done.wait [#allocation3], 256  }
 0x13f   :  { %112 = vsyncadd [#allocation3], 4294967040 }
 0x140   :  { %77 = vsyncpa [#allocation3], 1 }

// kernel: transformer_decoder_forward.24
= control target key start
LH: loop header
LB: loop body
LE: loop exit
PB: predicated region body
PF: predicated region fallthrough
CT: control target
= control target key end

     0   :  { %s966_s0 = inlined_call_operand.vmem [shape: s32[2], index: 0, kind: input, shape index: {}]   ;;  %s967_s2 = inlined_call_operand.vmem [shape: bf16[2,8,128], index: 2, kind: input, shape index: {}]   ;;  %s968_s3 = inlined_call_operand.vmem [shape: f32[1,128], index: 3, kind: input, shape index: {}]   ;;  %s969_s4 = inlined_call_operand.vmem [shape: f32[1,128], index: 4, kind: input, shape index: {}]   ;;  %s970_s5 = inlined_call_operand.vmem [shape: bf16[2,128,64], index: 5, kind: input, shape index: {}]   ;;  %s971_s6 = inlined_call_operand.vmem [shape: f32[2,1,64], index: 6, kind: input, shape index: {}]   ;;  %s972_s7 = inlined_call_operand.vmem [shape: bf16[2,64,128], index: 7, kind: input, shape index: {}]   ;;  %s973_s8 = inlined_call_operand.vmem [shape: f32[2,1,128], index: 8, kind: input, shape index: {}]   ;;  %s974_s9 = inlined_call_operand.vmem [shape: bf16[2,8,128], index: 9, kind: output, shape index: {}]   ;;  %s975_s1 = inlined_call_operand.vmem [shape: s32[2], index: 1, kind: input, shape index: {}]  }
   0x1   :  { %s14_s11 = sshll.u32 %s966_s0, 4  ;;  %s18_s14 = sshll.u32 %s975_s1, 4  ;;  %s15_s11 = int_to_ptr.vmem [resolvable:$true] %s14_s11  ;;  %s19_s14 = int_to_ptr.vmem [resolvable:$true] %s18_s14 }
   0x2   :  { %s816_s15 = scalar_lea.vmem %s15_s11, 16  ;;  %p821_p1 = scmp.lt.s32.totalorder %s15_s11, %s15_s11 }
   0x3   :  { %p817_p0 = scmp.ne.s32.totalorder %s15_s11, %s816_s15  ;;  %p822_p2 = scmp.lt.s32.totalorder %s816_s15, %s816_s15 }
   0x5   :  { %p823_p3 = por %p822_p2, %p821_p1 }
   0x7   :  { %p824_p4 = pnand %p823_p3, %p817_p0 }
   0x9   :  { %827 = shalt.err (!%p824_p4)  }
   0xa   :  { %s850_s16 = smov [#allocation3]   ;;  %s828_s17 = scalar_lea.vmem %s19_s14, 16 }
   0xb   :  { %17 = dma.vmem_to_smem %s15_s11, 16, %s850_s16, [#allocation2] }
   0xc   :  { %p829_p5 = scmp.ne.s32.totalorder %s19_s14, %s828_s17  ;;  %p833_p6 = scmp.lt.s32.totalorder %s19_s14, %s19_s14 }
   0xd   :  { %p834_p7 = scmp.lt.s32.totalorder %s828_s17, %s828_s17 }
   0xf   :  { %p835_p8 = por %p834_p7, %p833_p6 }
  0x11   :  { %p836_p9 = pnand %p835_p8, %p829_p5 }
  0x13   :  { %839 = shalt.err (!%p836_p9)  }
  0x14   :  { %s851_s0 = smov [#allocation4]  }
  0x15   :  { %21 = dma.vmem_to_smem %s19_s14, 16, %s851_s0, [#allocation2] }
  0x16   :  { %844 = dma.done.wait [#allocation2], 32 }
  0x17   :  { %845 = vsyncadd [#allocation2], 4294967264 }
  0x18   :  { %23 = sfence }
  0x19   :  { %s910_s1 = smov 0  }
  0x1a LB: > { %s916_s18 = sadd.s32 4294967295, %s848_s1   ;;  %p716_p10 = scmp.ge.s32.totalorder %s848_s1, 1  ;;  %s848_s1 = sphi %s910_s1, %s29_s1  }
  0x1b   : > { %p300_p11 = scmp.lt.s32.totalorder %s848_s1, 3 }
  0x1d   : > { %p301_p12 = pnand %p716_p10, %p300_p11 }
  0x1e   : > { %p350_p13 = scmp.lt.s32.totalorder (!%p301_p12), %s916_s18, 1  ;;  %s354_s24 = sld [smem:[#allocation3 + %s916_s18]] (!%p301_p12) }
  0x1f   : > { %304 = sbr.rel (%p301_p12) target bundleno = 752 (0x2f0), region = 48  ;;  %s366_s29 = sld [smem:[#allocation3 + %s916_s18]] (!%p301_p12) }
  0x20   : > { %s361_s17 = sld [smem:[#allocation3 + %s916_s18]] (!%p301_p12) }
  0x24   : > { %s922_s19 = scalar_select %p350_p13, %s916_s18, 1  ;;  %v852_v2 = vmov 0.0   ;;  %vm853_vm0 = vmmov 0   ;;  %v723_v21 = vld [vmem:[%s968_s3] ss:$0 sm:$0xff]  ;;  %vm566_vm1 = vcmask 523264  }
  0x25   : > { %758 = vmatprep.subr.bf16.mxu0 %v852_v2  ;;  %778 = vmatprep.subr.bf16.mxu1 %v852_v2  ;;  %p355_p0 = scmp.lt.s32.totalorder %s354_s24, 1  ;;  %p367_p1 = scmp.lt.s32.totalorder %s366_s29, 1  ;;  %v724_v23 = vld [vmem:[%s969_s4] ss:$0 sm:$0xff] }
  0x26   : > { %s717_s20 = sshll.u32 %s922_s19, 2  ;;  %774 = vmatprep.mubr.msk.bf16.mxu0 %vm853_vm0, %v852_v2  ;;  %786 = vmatprep.mubr.msk.bf16.mxu1 %vm853_vm0, %v852_v2  ;;  %p362_p2 = scmp.lt.s32.totalorder %s361_s17, 1 }
  0x27   : > { %s353_s23 = scalar_lea.vmem %s967_s2, %s717_s20  ;;  %s977_s24 = smov (!%p355_p0, %s354_s24), 1 }
  0x28   : > { %v383_v0 = vld [vmem:[%s353_s23] sm:$0xf]  ;;  %s742_s25 = sshll.u32 %s977_s24, 6  ;;  %s979_s29 = smov (!%p367_p1, %s366_s29), 1 }
  0x29   : > { %v930_v1 = vunpack.c.l.bf16 %v383_v0  ;;  %s359_s28 = scalar_lea.vmem %s970_s5, %s742_s25  ;;  %s743_s30 = sshll.u32 %s979_s29, 5 }
  0x2a   : > { %v802_v3 = vld [vmem:[%s359_s28 + $0x38] sm:$0xff]   ;;  %v803_v4 = vld [vmem:[%s359_s28 + $0x30] sm:$0xff]   ;;  %v804_v9 = vld [vmem:[%s359_s28 + $0x28] sm:$0xff]   ;;  %s371_s12 = scalar_lea.vmem %s972_s7, %s743_s30  ;;  %s981_s17 = smov (!%p362_p2, %s361_s17), 1 }
  0x2b   : > { %385 = vadd.xlane.f32.xlu0 %v930_v1  ;;  %759 = vmatpush3.bf16.msra.mxu0 %v802_v3  ;;  %v805_v10 = vld [vmem:[%s359_s28 + $0x20] sm:$0xff]   ;;  %v806_v11 = vld [vmem:[%s359_s28 + $0x18] sm:$0xff]   ;;  %v807_v12 = vld [vmem:[%s359_s28 + $0x10] sm:$0xff]   ;;  %s364_s22 = scalar_lea.vmem %s971_s6, %s981_s17  ;;  %s373_s23 = sld [smem:[#allocation3 + %s916_s18]] }
  0x2c   : > { %760 = vmatprep.subr.bf16.mxu0 %v852_v2  ;;  %v808_v13 = vld [vmem:[%s359_s28 + $0x8] sm:$0xff]   ;;  %v809_v14 = vld [vmem:[%s359_s28] sm:$0xff]   ;;  %v810_v15 = vld [vmem:[%s371_s12 + $0x18] sm:$0xff]   ;;  %s610_s24 = sld [smem:[#allocation4 + %s916_s18]]  ;;  %s381_s18 = scalar_lea.vmem %s974_s9, %s717_s20 }
  0x2d   : > { %779 = vmatpush3.bf16.msra.mxu1 %v810_v15  ;;  %v811_v16 = vld [vmem:[%s371_s12 + $0x10] sm:$0xff]   ;;  %v812_v27 = vld [vmem:[%s371_s12 + $0x8] sm:$0xff]   ;;  %v813_v28 = vld [vmem:[%s371_s12] sm:$0xff]  }
  0x2e   : > { %780 = vmatprep.subr.bf16.mxu1 %v852_v2  ;;  %v725_v29 = vld [vmem:[%s364_s22] ss:$0 sm:$0xff] }
  0x2f   : > { %761 = vmatpush3.bf16.msra.mxu0 %v803_v4 }
  0x30   : > { %762 = vmatprep.subr.bf16.mxu0 %v852_v2 }
  0x31   : > { %781 = vmatpush3.bf16.msra.mxu1 %v811_v16  ;;  %p374_p3 = scmp.lt.s32.totalorder %s373_s23, 1 }
  0x32   : > { %782 = vmatprep.subr.bf16.mxu1 %v852_v2  ;;  %s611_s28 = scvt.s32.f32 %s610_s24 }
  0x33   : > { %763 = vmatpush3.bf16.msra.mxu0 %v804_v9  ;;  %s983_s23 = smov (!%p374_p3, %s373_s23), 1 }
  0x34   : > { %764 = vmatprep.subr.bf16.mxu0 %v852_v2  ;;  %s376_s27 = scalar_lea.vmem %s973_s8, %s983_s23  ;;  %v612_v39 = vstv %s611_s28 }
  0x35   : > { %783 = vmatpush3.bf16.msra.mxu1 %v812_v27  ;;  %v734_v37 = vld [vmem:[%s376_s27] ss:$0 sm:$0xff] }
  0x36   : > { %784 = vmatprep.subr.bf16.mxu1 %v852_v2 }
  0x37   : > { %765 = vmatpush3.bf16.msra.mxu0 %v805_v10 }
  0x38   : > { %766 = vmatprep.subr.bf16.mxu0 %v852_v2 }
  0x39   : > { %785 = vmatpush3.bf16.msra.mxu1 %v813_v28 }
  0x3b   : > { %767 = vmatpush3.bf16.msra.mxu0 %v806_v11 }
  0x3c   : > { %768 = vmatprep.subr.bf16.mxu0 %v852_v2 }
  0x3f   : > { %769 = vmatpush3.bf16.msra.mxu0 %v807_v12 }
  0x40   : > { %770 = vmatprep.subr.bf16.mxu0 %v852_v2 }
  0x43   : > { %771 = vmatpush3.bf16.msra.mxu0 %v808_v13 }
  0x44   : > { %772 = vmatprep.subr.bf16.mxu0 %v852_v2 }
  0x47   : > { %773 = vmatpush3.bf16.msra.mxu0 %v809_v14 }
  0xb4   : > { %v386_v5 = vpop.xlane.xlu0 %385 }
  0xb5   : > { %v388_v6 = vmul.f32 0.0078125, %v386_v5 }
  0xb7   : > { %v389_v7 = vsub.f32 %v930_v1, %v388_v6 }
  0xb9   : > { %v390_v8 = vmul.f32 %v389_v7, %v389_v7 }
  0xbb   : > { %391 = vadd.xlane.f32.xlu0 %v390_v8 }
 0x144   : > { %v392_v17 = vpop.xlane.xlu0 %391 }
 0x145   : > { %v393_v18 = vmul.f32 0.0078125, %v392_v17 }
 0x147   : > { %v394_v19 = vadd.f32 1e-05, %v393_v18 }
 0x149   : > { %814 = vrsqrt.f32 %v394_v19 }
 0x156   : > { %v815_v20 = vpop.eup %814 }
 0x157   : > { %v396_v22 = vmul.f32 %v815_v20, %v389_v7 }
 0x159   : > { %v404_v24 = vmul.f32 %v723_v21, %v396_v22 }
 0x15b   : > { %v412_v25 = vadd.f32 %v724_v23, %v404_v24 }
 0x15d   : > { %v413_v26 = vpack.c.bf16 %v412_v25, %v412_v25 }
 0x15f   : > { %775 = vmatmul.mubr.bf16.vlgmr.msra.gmra.mxu0 %v413_v26 }
 0x21f   : > { %v519_v30 = vpop.f32.mrf.mxu0 }
 0x220   : > { %v520_v31 = vadd.f32 %v725_v29, %v519_v30 }
 0x221   : > { %v776_v32 = vpop.f32.mrf.mxu0 }
 0x222   : > { %v525_v33 = vmax.f32 %v520_v31, 0.0 }
 0x223   : > { %v522_v34 = vpop.f32.mrf.mxu0 }
 0x224   : > { %v526_v35 = vpack.c.bf16 %v525_v33, %v525_v33 }
 0x225   : > { %v777_v36 = vpop.f32.mrf.mxu0 }
 0x226   : > { %787 = vmatmul.mubr.msk.bf16.vlgmr.msra.gmra.mxu1 %vm566_vm1, %v526_v35 }
 0x2e6   : > { %v604_v38 = vpop.f32.mrf.mxu1 }
 0x2e7   : > { %v605_v40 = vadd.f32 %v734_v37, %v604_v38 }
 0x2e8   : > { %v788_v41 = vpop.f32.mrf.mxu1 }
 0x2e9   : > { %v613_v42 = vmul.f32 %v612_v39, %v605_v40 }
 0x2ea   : > { %v607_v43 = vpop.f32.mrf.mxu1 }
 0x2eb   : > { %v614_v44 = vadd.f32 %v613_v42, %v930_v1 }
 0x2ec   : > { %v789_v45 = vpop.f32.mrf.mxu1 }
 0x2ed   : > { %v615_v46 = vpack.c.bf16 %v614_v44, %v614_v44 }
 0x2ef   : > { %616 = vst [vmem:[%s381_s18] sm:$0xf] %v615_v46 }
 0x2f0 PF: > { %s29_s1 = sadd.s32 1, %s848_s1  }
 0x2f1   : > { %p26_p4 = scmp.ge.s32.totalorder %s29_s1, 4  }
 0x2f3   :  { %28 = sbr.rel (!%p26_p4) target bundleno = 26 (0x1a), region = 90 }

// kernel: transformer_decoder_forward.25
= control target key start
LH: loop header
LB: loop body
LE: loop exit
PB: predicated region body
PF: predicated region fallthrough
CT: control target
= control target key end

     0   :  { %v494_v13 = vmov 0.0   ;;  %v495_v35 = vmov 0   ;;  %vm496_vm0 = vmmov 0   ;;  %v116_v55 = vlaneseq  ;;  %s633_s0 = inlined_call_operand.vmem [shape: bf16[16,128], index: 0, kind: input, shape index: {}]   ;;  %s634_s3 = inlined_call_operand.vmem [shape: bf16[128,384], index: 3, kind: input, shape index: {}]   ;;  %s635_s1 = inlined_call_operand.vmem [shape: f32[1,128], index: 1, kind: input, shape index: {}]   ;;  %s636_s2 = inlined_call_operand.vmem [shape: f32[1,128], index: 2, kind: input, shape index: {}]   ;;  %s637_s4 = inlined_call_operand.vmem [shape: f32[1,384], index: 4, kind: input, shape index: {}]   ;;  %s638_s5 = inlined_call_operand.vmem [shape: bf16[16,384], index: 5, kind: output, shape index: {}]  }
   0x1   :  { %v417_v0 = vld [vmem:[%s633_s0] sm:$0xff]   ;;  %v457_v11 = vld [vmem:[%s634_s3 + $0xac] ss:$12 sps:$4 sm:$0xff]   ;;  %v459_v12 = vld [vmem:[%s634_s3 + $0xa8] ss:$12 sps:$4 sm:$0xff]   ;;  %434 = vmatprep.subr.bf16.mxu1 %v494_v13  ;;  %297 = vmatprep.mubr.bf16.mxu0 %v495_v35 }
   0x2   :  { %v418_v1 = vunpack.c.l.bf16 %v417_v0  ;;  %v419_v2 = vunpack.c.h.bf16 %v417_v0  ;;  %265 = vmatprep.subr.bf16.mxu0 %v457_v11  ;;  %v460_v14 = vld [vmem:[%s634_s3 + $0xb0] ss:$12 sps:$4 sm:$0xff]   ;;  %v461_v15 = vld [vmem:[%s634_s3 + $0x94] ss:$12 sps:$4 sm:$0xff]   ;;  %v464_v17 = vld [vmem:[%s634_s3 + $0x98] ss:$12 sps:$4 sm:$0xff]   ;;  %450 = vmatprep.mubr.msk.bf16.mxu1 %vm496_vm0, %v494_v13 }
   0x3   :  { %266 = vmatpush1.bf16.msra.mxu0 %v459_v12  ;;  %435 = vmatpush3.bf16.msra.mxu1 %v460_v14  ;;  %v463_v16 = vld [vmem:[%s634_s3 + $0x90] ss:$12 sps:$4 sm:$0xff]   ;;  %v467_v19 = vld [vmem:[%s634_s3 + $0x78] ss:$12 sps:$4 sm:$0xff]   ;;  %v468_v20 = vld [vmem:[%s634_s3 + $0x80] ss:$12 sps:$4 sm:$0xff]  }
   0x4   :  { %29 = vadd.xlane.f32.xlu0 %v418_v1  ;;  %436 = vmatprep.subr.bf16.mxu1 %v494_v13  ;;  %v465_v18 = vld [vmem:[%s634_s3 + $0x7c] ss:$12 sps:$4 sm:$0xff]   ;;  %v469_v21 = vld [vmem:[%s634_s3 + $0x64] ss:$12 sps:$4 sm:$0xff]   ;;  %v471_v22 = vld [vmem:[%s634_s3 + $0x60] ss:$12 sps:$4 sm:$0xff]  }
   0x5   :  { %267 = vmatprep.subr.bf16.mxu0 %v461_v15  ;;  %v472_v23 = vld [vmem:[%s634_s3 + $0x68] ss:$12 sps:$4 sm:$0xff]   ;;  %v473_v24 = vld [vmem:[%s634_s3 + $0x4c] ss:$12 sps:$4 sm:$0xff]   ;;  %v476_v26 = vld [vmem:[%s634_s3 + $0x50] ss:$12 sps:$4 sm:$0xff]  }
   0x6   :  { %v475_v25 = vld [vmem:[%s634_s3 + $0x48] ss:$12 sps:$4 sm:$0xff]   ;;  %v479_v28 = vld [vmem:[%s634_s3 + $0x30] ss:$12 sps:$4 sm:$0xff]   ;;  %v480_v29 = vld [vmem:[%s634_s3 + $0x38] ss:$12 sps:$4 sm:$0xff]  }
   0x7   :  { %268 = vmatpush1.bf16.msra.mxu0 %v463_v16  ;;  %437 = vmatpush3.bf16.msra.mxu1 %v464_v17  ;;  %v477_v27 = vld [vmem:[%s634_s3 + $0x34] ss:$12 sps:$4 sm:$0xff]   ;;  %v481_v30 = vld [vmem:[%s634_s3 + $0x1c] ss:$12 sps:$4 sm:$0xff]   ;;  %v483_v31 = vld [vmem:[%s634_s3 + $0x18] ss:$12 sps:$4 sm:$0xff]  }
   0x8   :  { %31 = vadd.xlane.f32.xlu0 %v419_v2  ;;  %438 = vmatprep.subr.bf16.mxu1 %v494_v13  ;;  %v484_v32 = vld [vmem:[%s634_s3 + $0x20] ss:$12 sps:$4 sm:$0xff]   ;;  %v485_v33 = vld [vmem:[%s634_s3 + $0x4] ss:$12 sps:$4 sm:$0xff]   ;;  %v488_v36 = vld [vmem:[%s634_s3 + $0x8] ss:$12 sps:$4 sm:$0xff]  }
   0x9   :  { %269 = vmatprep.subr.bf16.mxu0 %v465_v18  ;;  %v487_v34 = vld [vmem:[%s634_s3] ss:$12 sps:$4 sm:$0xff]   ;;  %v117_v56 = vshrl.u32 %v116_v55, 7 }
   0xa   :  { %v377_v45 = vld [vmem:[%s635_s1] ss:$0 sm:$0xff] }
   0xb   :  { %270 = vmatpush1.bf16.msra.mxu0 %v467_v19  ;;  %439 = vmatpush3.bf16.msra.mxu1 %v468_v20  ;;  %v378_v49 = vld [vmem:[%s636_s2] ss:$0 sm:$0xff]  ;;  %v126_v57 = vsub.s32 2, %v117_v56  ;;  %v118_v59 = vsub.s32 0, %v117_v56  ;;  %v122_v60 = vsub.s32 1, %v117_v56 }
   0xc   :  { %440 = vmatprep.subr.bf16.mxu1 %v494_v13  ;;  %271 = vmatprep.subr.bf16.mxu0 %v469_v21  ;;  %v114_v58 = vld [vmem:[%s637_s4] sm:$0x7] }
   0xd   :  { %v127_v61 = vrot.slane %v114_v58, %v126_v57  ;;  %v119_v62 = vrot.slane %v114_v58, %v118_v59  ;;  %v123_v63 = vrot.slane %v114_v58, %v122_v60 }
   0xf   :  { %272 = vmatpush1.bf16.msra.mxu0 %v471_v22  ;;  %441 = vmatpush3.bf16.msra.mxu1 %v472_v23 }
  0x10   :  { %442 = vmatprep.subr.bf16.mxu1 %v494_v13  ;;  %273 = vmatprep.subr.bf16.mxu0 %v473_v24 }
  0x13   :  { %274 = vmatpush1.bf16.msra.mxu0 %v475_v25  ;;  %443 = vmatpush3.bf16.msra.mxu1 %v476_v26 }
  0x14   :  { %444 = vmatprep.subr.bf16.mxu1 %v494_v13  ;;  %275 = vmatprep.subr.bf16.mxu0 %v477_v27 }
  0x17   :  { %276 = vmatpush1.bf16.msra.mxu0 %v479_v28  ;;  %445 = vmatpush3.bf16.msra.mxu1 %v480_v29 }
  0x18   :  { %446 = vmatprep.subr.bf16.mxu1 %v494_v13  ;;  %277 = vmatprep.subr.bf16.mxu0 %v481_v30 }
  0x1b   :  { %278 = vmatpush1.bf16.msra.mxu0 %v483_v31  ;;  %447 = vmatpush3.bf16.msra.mxu1 %v484_v32 }
  0x1c   :  { %279 = vmatprep.subr.bf16.mxu0 %v485_v33  ;;  %448 = vmatprep.subr.bf16.mxu1 %v494_v13 }
  0x1f   :  { %280 = vmatpush1.bf16.msra.mxu0 %v487_v34  ;;  %449 = vmatpush3.bf16.msra.mxu1 %v488_v36 }
  0x8d   :  { %v30_v3 = vpop.xlane.xlu0 %29 }
  0x8e   :  { %v34_v4 = vmul.f32 0.0078125, %v30_v3 }
  0x90   :  { %v530_v5 = vsub.f32 %v418_v1, %v34_v4 }
  0x91   :  { %v32_v6 = vpop.xlane.xlu0 %31 }
  0x92   :  { %v35_v7 = vmul.f32 0.0078125, %v32_v6  ;;  %v38_v8 = vmul.f32 %v530_v5, %v530_v5 }
  0x94   :  { %v534_v9 = vsub.f32 %v419_v2, %v35_v7  ;;  %40 = vadd.xlane.f32.xlu1 %v38_v8 }
  0x96   :  { %v39_v10 = vmul.f32 %v534_v9, %v534_v9 }
  0x98   :  { %42 = vadd.xlane.f32.xlu1 %v39_v10 }
 0x11d   :  { %v41_v37 = vpop.xlane.xlu1 %40 }
 0x11e   :  { %v44_v38 = vmul.f32 0.0078125, %v41_v37 }
 0x120   :  { %v46_v39 = vadd.f32 1e-05, %v44_v38 }
 0x121   :  { %v43_v40 = vpop.xlane.xlu1 %42 }
 0x122   :  { %490 = vrsqrt.f32 %v46_v39  ;;  %v45_v41 = vmul.f32 0.0078125, %v43_v40 }
 0x124   :  { %v47_v42 = vadd.f32 1e-05, %v45_v41 }
 0x126   :  { %492 = vrsqrt.f32 %v47_v42 }
 0x12f   :  { %v491_v43 = vpop.eup %490 }
 0x130   :  { %v50_v44 = vmul.f32 %v491_v43, %v530_v5 }
 0x132   :  { %v59_v47 = vmul.f32 %v377_v45, %v50_v44 }
 0x133   :  { %v493_v46 = vpop.eup %492 }
 0x134   :  { %v51_v48 = vmul.f32 %v493_v46, %v534_v9  ;;  %v68_v51 = vadd.f32 %v378_v49, %v59_v47 }
 0x136   :  { %v60_v50 = vmul.f32 %v377_v45, %v51_v48 }
 0x138   :  { %v69_v52 = vadd.f32 %v378_v49, %v60_v50 }
 0x13a   :  { %v423_v53 = vpack.c.bf16 %v69_v52, %v68_v51 }
 0x13c   :  { %424 = vst [vmem:[#allocation2] sm:$0xff] %v423_v53  }
 0x143   :  { %v489_v54 = vld [vmem:[#allocation2] sm:$0xff]  }
 0x144   :  { %298 = vmatmul.mubr.bf16.vlgmr.msra.gmra.mxu0 %v489_v54  ;;  %451 = vmatmul.mubr.bf16.vlgmr.msra.gmra.mxu1 %v489_v54 }
 0x204   :  { %v299_v0 = vpop.f32.mrf.mxu0  ;;  %v342_v1 = vpop.f32.mrf.mxu1 }
 0x205   :  { %v343_v2 = vadd.f32 %v342_v1, %v127_v61  ;;  %v300_v5 = vadd.f32 %v299_v0, %v119_v62 }
 0x206   :  { %v301_v3 = vpop.f32.mrf.mxu0  ;;  %v452_v4 = vpop.f32.mrf.mxu1 }
 0x207   :  { %v413_v6 = vpack.c.bf16 %v343_v2, %v343_v2  ;;  %v302_v7 = vadd.f32 %v301_v3, %v123_v63 }
 0x208   :  { %v303_v8 = vpop.f32.mrf.mxu0  ;;  %v345_v9 = vpop.f32.mrf.mxu1 }
 0x209   :  { %370 = vst [vmem:[%s638_s5 + $0x8] sm:$0xf] %v413_v6  ;;  %v412_v10 = vpack.c.bf16 %v302_v7, %v300_v5  ;;  %v346_v11 = vadd.f32 %v345_v9, %v127_v61  ;;  %v304_v14 = vadd.f32 %v303_v8, %v119_v62 }
 0x20a   :  { %v305_v12 = vpop.f32.mrf.mxu0  ;;  %v453_v13 = vpop.f32.mrf.mxu1 }
 0x20b   :  { %369 = vst [vmem:[%s638_s5] sm:$0xff] %v412_v10  ;;  %v415_v15 = vpack.c.bf16 %v346_v11, %v346_v11  ;;  %v306_v16 = vadd.f32 %v305_v12, %v123_v63 }
 0x20d   :  { %372 = vst [vmem:[%s638_s5 + $0x14] sm:$0xf] %v415_v15  ;;  %v414_v17 = vpack.c.bf16 %v306_v16, %v304_v14 }
 0x20f   :  { %371 = vst [vmem:[%s638_s5 + $0xc] sm:$0xff] %v414_v17 }

</bundles_post_ra>
